<compile_context>
chip_gen: v5e
topology: v5e:2x2
jax: 0.10.0
libtpu: 0.0.40
codegen_flags: <defaults>
</compile_context>

<pallas_src>
import functools

import jax
import jax.numpy as jnp
from jax.experimental import pallas as pl
from jax.experimental.pallas import tpu as pltpu


# --------------------------------------------------------------------------- #
# Kernel
# --------------------------------------------------------------------------- #
def _cross_attn_kernel(x1_ref, x2_ref, x3_ref,
                       wq_ref, wk_ref, wv_ref, wp_ref, bp_ref,
                       o_ref, *, num_heads):
    bb, nq, C = x1_ref.shape          # batch block, query tokens, channels
    nk = x2_ref.shape[1]              # key/value tokens (full N)
    H = num_heads
    D = C // H
    cdt = x1_ref.dtype                # compute dtype (cast in the wrapper)

    # ---- lane-dense Q/K/V projections: one (rows, C) x (C, C) MXU matmul each.
    # (bb, n, C) -> (bb*n, C) merges leading dims only (the wrapper keeps n
    # sublane-aligned whenever bb > 1), so there is no lane relayout here.
    # TODO(synk): emit matmul results directly in cdt (preferred_element_type)
    # once bf16 MXU result dtype is confirmed on this Mosaic version; the
    # f32 -> cdt casts below are a small VPU-only cost.
    def proj(x_ref, w_ref, rows):
        x2d = x_ref[...].reshape(rows, C)
        return jnp.dot(x2d, w_ref[...],
                       preferred_element_type=jnp.float32).astype(cdt)

    q = proj(x1_ref, wq_ref, bb * nq)      # softmax scale pre-folded into Wq
    k = proj(x2_ref, wk_ref, bb * nk)
    v = proj(x3_ref, wv_ref, bb * nk)

    # ---- per-head attention (static unroll; static lane slices of width D).
    av_heads = []
    for h in range(H):
        sl = slice(h * D, (h + 1) * D)
        qh = q[:, sl].reshape(bb, nq, D)
        kh = k[:, sl].reshape(bb, nk, D)
        vh = v[:, sl].reshape(bb, nk, D)

        # Scores + softmax in f32 over the full key length (no online pass
        # needed because K/V are never tiled along N).
        s = jax.lax.dot_general(qh, kh, (((2,), (2,)), ((0,), (0,))),
                                preferred_element_type=jnp.float32)  # (bb,nq,nk)
        s = s - jnp.max(s, axis=-1, keepdims=True)
        p = jnp.exp(s)
        p = p * pl.reciprocal(jnp.sum(p, axis=-1, keepdims=True), approx=True)

        av_heads.append(
            jax.lax.dot_general(p.astype(cdt), vh, (((2,), (1,)), ((0,), (0,))),
                                preferred_element_type=jnp.float32
                                ).astype(cdt))                        # (bb,nq,D)

    # ---- re-concat heads along the lane dim; one dense output projection.
    avc = jnp.concatenate(av_heads, axis=-1).reshape(bb * nq, C)
    y = jnp.dot(avc, wp_ref[...], preferred_element_type=jnp.float32)
    y = y + bp_ref[...].astype(jnp.float32)                          # (1, C)
    o_ref[...] = y.reshape(bb, nq, C).astype(o_ref.dtype)


# --------------------------------------------------------------------------- #
# Host-side helpers
# --------------------------------------------------------------------------- #
def _prep_params(params, num_heads, compute_dtype):
    """One-time host-side weight prep (load-time cost in a real deployment)."""
    wq, wk, wv, wp, bp = (params["wq"], params["wk"], params["wv"],
                          params["wp"], params["bp"])
    C = wq.shape[0]
    assert C % num_heads == 0
    scale = float(C // num_heads) ** -0.5
    wq_d = (wq.T * scale).astype(compute_dtype)   # x @ (Wq^T * scale)
    wk_d = wk.T.astype(compute_dtype)
    wv_d = wv.T.astype(compute_dtype)
    wp_d = wp.T.astype(compute_dtype)
    bp2d = bp.reshape(1, C).astype(jnp.float32)
    return wq_d, wk_d, wv_d, wp_d, bp2d


def _choose_batch_block(B, N, num_heads, batch_block,
                        score_budget_bytes=8 << 20, min_steps=4):
    """Largest batch block that keeps >=min_steps grid steps and a bounded
    f32 score working set; bb > 1 only when N keeps row merges sublane aligned."""
    if batch_block is not None:
        assert B % batch_block == 0
        return batch_block
    if N % 16:
        return 1
    best = 1
    for bb in range(1, B + 1):
        if B % bb:
            continue
        if B // bb < min(min_steps, B):
            continue
        if 2 * bb * num_heads * N * N * 4 <= score_budget_bytes:
            best = bb
    return best


def _choose_q_block(batch_block, N, num_heads, q_block,
                    score_budget_bytes=8 << 20):
    """Query-block length bounding the f32 score/prob working set per step."""
    if q_block is not None:
        assert N % q_block == 0
        return q_block

    def score_bytes(tq):  # s + p slabs, f32, per grid step
        return 2 * batch_block * num_heads * tq * N * 4

    if score_bytes(N) <= score_budget_bytes:
        return N
    cands = [d for d in range(16, N, 16) if N % d == 0]
    for d in sorted(cands, reverse=True):
        if score_bytes(d) <= score_budget_bytes:
            return d
    return cands[0] if cands else N


# --------------------------------------------------------------------------- #
# Public wrapper
# --------------------------------------------------------------------------- #
def cross_attention(x1, x2, x3, params, *, num_heads,
                    compute_dtype=jnp.bfloat16,
                    batch_block=None, q_block=None,
                    single_buffer_weights=True):
    """x1, x2, x3: (B, N, C).  Returns (B, N, C) in the dtype of x1."""
    B, N, C = x1.shape
    assert x2.shape == (B, N, C) and x3.shape == (B, N, C)
    assert C % num_heads == 0
    out_dtype = x1.dtype

    wq_d, wk_d, wv_d, wp_d, bp2d = _prep_params(params, num_heads, compute_dtype)

    # Cast activations at the pallas_call boundary: halves HBM->VMEM DMA bytes
    # and VMEM block footprint when compute_dtype is bf16.
    x1c = x1.astype(compute_dtype)
    x2c = x2.astype(compute_dtype)
    x3c = x3.astype(compute_dtype)

    batch_block = _choose_batch_block(B, N, num_heads, batch_block)
    q_block = _choose_q_block(batch_block, N, num_heads, q_block)
    n_b, n_q = B // batch_block, N // q_block

    # Generation-aware VMEM limit (<= 7/8 of physical, capped at 100 MiB):
    # ~56 MiB on v7x (64 MiB physical), 100 MiB on v5e/v6e (128 MiB physical).
    try:
        vmem_cap = pltpu.get_tpu_info().vmem_capacity_bytes
    except Exception:
        vmem_cap = 64 * 1024 * 1024
    vmem_limit = int(min(100 * 1024 * 1024, (vmem_cap * 7) // 8))

    kernel = functools.partial(_cross_attn_kernel, num_heads=num_heads)

    def build(single_buf_weights):
        w_kw = ({"pipeline_mode": pl.Buffered(1)} if single_buf_weights else {})
        q_spec = pl.BlockSpec((batch_block, q_block, C), lambda i, j: (i, j, 0))
        kv_spec = pl.BlockSpec((batch_block, N, C), lambda i, j: (i, 0, 0))
        w_spec = pl.BlockSpec((C, C), lambda i, j: (0, 0), **w_kw)
        b_spec = pl.BlockSpec((1, C), lambda i, j: (0, 0), **w_kw)
        out_spec = pl.BlockSpec((batch_block, q_block, C), lambda i, j: (i, j, 0))
        return pl.pallas_call(
            kernel,
            out_shape=jax.ShapeDtypeStruct((B, N, C), out_dtype),
            grid_spec=pltpu.PrefetchScalarGridSpec(
                num_scalar_prefetch=0,
                grid=(n_b, n_q),
                in_specs=[q_spec, kv_spec, kv_spec,
                          w_spec, w_spec, w_spec, w_spec, b_spec],
                out_specs=out_spec),
            compiler_params=pltpu.CompilerParams(
                dimension_semantics=("parallel", "parallel"),
                vmem_limit_bytes=vmem_limit),
        )

    args = (x1c, x2c, x3c, wq_d, wk_d, wv_d, wp_d, bp2d)
    if single_buffer_weights:
        try:
            return build(True)(*args)
        except Exception:
            # This JAX/Mosaic version rejected single-buffered (Buffered(1))
            # weight specs; fall back to default double buffering (identical
            # numerics, slightly more VMEM).
            pass
    return build(False)(*args)


# --------------------------------------------------------------------------- #
# Pure-JAX reference (mirrors the PyTorch forward) and demo
# --------------------------------------------------------------------------- #
def cross_attention_ref(x1, x2, x3, params, *, num_heads):
    B, N, C = x1.shape
    D = C // num_heads
    scale = float(D) ** -0.5

    q = x1 @ params["wq"].T
    k = x2 @ params["wk"].T
    v = x3 @ params["wv"].T

    def split(t):  # (B, N, C) -> (B, H, N, D)
        return t.reshape(B, N, num_heads, D).transpose(0, 2, 1, 3)

    q, k, v = split(q), split(k), split(v)
    attn = jax.nn.softmax((q @ k.transpose(0, 1, 3, 2)) * scale, axis=-1)
    out = (attn @ v).transpose(0, 2, 1, 3).reshape(B, N, C)
    return out @ params["wp"].T + params["bp"]


def init_params(key, dim):
    k1, k2, k3, k4, k5 = jax.random.split(key, 5)
    s = 0.05
    return {
        "wq": s * jax.random.normal(k1, (dim, dim), jnp.float32),
        "wk": s * jax.random.normal(k2, (dim, dim), jnp.float32),
        "wv": s * jax.random.normal(k3, (dim, dim), jnp.float32),
        "wp": s * jax.random.normal(k4, (dim, dim), jnp.float32),
        "bp": s * jax.random.normal(k5, (dim,), jnp.float32),
    }


if __name__ == "__main__":
    B, N, C = 4, 32, 128
    NUM_HEADS = 8  # head_dim = 16

    key = jax.random.PRNGKey(0)
    kx1, kx2, kx3, kp = jax.random.split(key, 4)
    x1 = jax.random.normal(kx1, (B, N, C), jnp.float32)
    x2 = jax.random.normal(kx2, (B, N, C), jnp.float32)
    x3 = jax.random.normal(kx3, (B, N, C), jnp.float32)
    params = init_params(kp, C)

    ref = cross_attention_ref(x1, x2, x3, params, num_heads=NUM_HEADS)

    # f32 compute path (tight check; only the EUP approx reciprocal differs).
    out_f32 = jax.block_until_ready(
        cross_attention(x1, x2, x3, params, num_heads=NUM_HEADS,
                        compute_dtype=jnp.float32))
    assert out_f32.shape == (B, N, C)
    assert jnp.allclose(out_f32, ref, atol=5e-3, rtol=5e-3), "f32 path mismatch"

    # bf16 fast path (default heuristics: grid = (4, 1)).
    out_bf16 = jax.block_until_ready(
        cross_attention(x1, x2, x3, params, num_heads=NUM_HEADS))
    assert out_bf16.shape == (B, N, C)
    assert jnp.allclose(out_bf16, ref, atol=3e-2, rtol=3e-2), "bf16 path mismatch"

    # bf16 with explicit batch- and query-block tiling (grid = (2, 2) path).
    out_tiled = jax.block_until_ready(
        cross_attention(x1, x2, x3, params, num_heads=NUM_HEADS,
                        batch_block=2, q_block=16))
    assert jnp.allclose(out_tiled, ref, atol=3e-2, rtol=3e-2), "tiled path mismatch"

    print("KERNEL_OK")
</pallas_src>

<mosaic_0001>
module attributes {stable_mosaic.version = 11 : i64} {
  func.func @_cross_attn_kernel(%arg0: i32, %arg1: i32, %arg2: memref<1x32x128xf32, #tpu.memory_space<vmem>>, %arg3: memref<1x32x128xf32, #tpu.memory_space<vmem>>, %arg4: memref<1x32x128xf32, #tpu.memory_space<vmem>>, %arg5: memref<128x128xf32, #tpu.memory_space<vmem>>, %arg6: memref<128x128xf32, #tpu.memory_space<vmem>>, %arg7: memref<128x128xf32, #tpu.memory_space<vmem>>, %arg8: memref<128x128xf32, #tpu.memory_space<vmem>>, %arg9: memref<1x128xf32, #tpu.memory_space<vmem>>, %arg10: memref<1x32x128xf32, #tpu.memory_space<vmem>>) attributes {dimension_semantics = [#tpu.dimension_semantics<parallel>, #tpu.dimension_semantics<parallel>], iteration_bounds = array<i64: 4, 1>, scalar_prefetch = 0 : i64, scratch_operands = 0 : i64, tpu.core_type = #tpu.core_type<tc>, window_params = [{transform_indices = @transform_0, window_bounds = array<i64: 1, 32, 128>}, {transform_indices = @transform_1, window_bounds = array<i64: 1, 32, 128>}, {transform_indices = @transform_2, window_bounds = array<i64: 1, 32, 128>}, {pipeline_mode = #tpu.pipeline_mode<synchronous>, transform_indices = @transform_3, window_bounds = array<i64: 128, 128>}, {pipeline_mode = #tpu.pipeline_mode<synchronous>, transform_indices = @transform_4, window_bounds = array<i64: 128, 128>}, {pipeline_mode = #tpu.pipeline_mode<synchronous>, transform_indices = @transform_5, window_bounds = array<i64: 128, 128>}, {pipeline_mode = #tpu.pipeline_mode<synchronous>, transform_indices = @transform_6, window_bounds = array<i64: 128, 128>}, {pipeline_mode = #tpu.pipeline_mode<synchronous>, transform_indices = @transform_7, window_bounds = array<i64: 1, 128>}, {transform_indices = @transform_8, window_bounds = array<i64: 1, 32, 128>}]} {
    %c0 = arith.constant 0 : index
    %c0_0 = arith.constant 0 : index
    %c0_1 = arith.constant 0 : index
    %0 = vector.load %arg2[%c0, %c0_0, %c0_1] : memref<1x32x128xf32, #tpu.memory_space<vmem>>, vector<1x32x128xf32>
    %1 = vector.shape_cast %0 : vector<1x32x128xf32> to vector<32x128xf32>
    %c0_2 = arith.constant 0 : index
    %c0_3 = arith.constant 0 : index
    %2 = vector.load %arg5[%c0_2, %c0_3] : memref<128x128xf32, #tpu.memory_space<vmem>>, vector<128x128xf32>
    %cst = arith.constant dense<0.000000e+00> : vector<32x128xf32>
    %3 = tpu.matmul %1, %2, %cst {dimension_numbers = #tpu.dot_dimension_numbers<[1], [0], [0], [1], [0, 0, 1, 1], [], []>} : vector<32x128xf32>, vector<128x128xf32>, vector<32x128xf32> -> vector<32x128xf32>
    %c0_4 = arith.constant 0 : index
    %c0_5 = arith.constant 0 : index
    %c0_6 = arith.constant 0 : index
    %4 = vector.load %arg3[%c0_4, %c0_5, %c0_6] : memref<1x32x128xf32, #tpu.memory_space<vmem>>, vector<1x32x128xf32>
    %5 = vector.shape_cast %4 : vector<1x32x128xf32> to vector<32x128xf32>
    %c0_7 = arith.constant 0 : index
    %c0_8 = arith.constant 0 : index
    %6 = vector.load %arg6[%c0_7, %c0_8] : memref<128x128xf32, #tpu.memory_space<vmem>>, vector<128x128xf32>
    %cst_9 = arith.constant dense<0.000000e+00> : vector<32x128xf32>
    %7 = tpu.matmul %5, %6, %cst_9 {dimension_numbers = #tpu.dot_dimension_numbers<[1], [0], [0], [1], [0, 0, 1, 1], [], []>} : vector<32x128xf32>, vector<128x128xf32>, vector<32x128xf32> -> vector<32x128xf32>
    %c0_10 = arith.constant 0 : index
    %c0_11 = arith.constant 0 : index
    %c0_12 = arith.constant 0 : index
    %8 = vector.load %arg4[%c0_10, %c0_11, %c0_12] : memref<1x32x128xf32, #tpu.memory_space<vmem>>, vector<1x32x128xf32>
    %9 = vector.shape_cast %8 : vector<1x32x128xf32> to vector<32x128xf32>
    %c0_13 = arith.constant 0 : index
    %c0_14 = arith.constant 0 : index
    %10 = vector.load %arg7[%c0_13, %c0_14] : memref<128x128xf32, #tpu.memory_space<vmem>>, vector<128x128xf32>
    %cst_15 = arith.constant dense<0.000000e+00> : vector<32x128xf32>
    %11 = tpu.matmul %9, %10, %cst_15 {dimension_numbers = #tpu.dot_dimension_numbers<[1], [0], [0], [1], [0, 0, 1, 1], [], []>} : vector<32x128xf32>, vector<128x128xf32>, vector<32x128xf32> -> vector<32x128xf32>
    %12 = vector.extract_strided_slice %3 {offsets = [0, 0], sizes = [32, 16], strides = [1, 1]} : vector<32x128xf32> to vector<32x16xf32>
    %13 = vector.shape_cast %12 : vector<32x16xf32> to vector<1x32x16xf32>
    %14 = vector.extract_strided_slice %7 {offsets = [0, 0], sizes = [32, 16], strides = [1, 1]} : vector<32x128xf32> to vector<32x16xf32>
    %15 = vector.shape_cast %14 : vector<32x16xf32> to vector<1x32x16xf32>
    %16 = vector.extract_strided_slice %11 {offsets = [0, 0], sizes = [32, 16], strides = [1, 1]} : vector<32x128xf32> to vector<32x16xf32>
    %17 = vector.shape_cast %16 : vector<32x16xf32> to vector<1x32x16xf32>
    %cst_16 = arith.constant dense<0.000000e+00> : vector<1x32x32xf32>
    %18 = tpu.matmul %13, %15, %cst_16 {dimension_numbers = #tpu.dot_dimension_numbers<[2], [2], [1], [1], [0, 0, 0, 1, 1, 1], [0], [0]>} : vector<1x32x16xf32>, vector<1x32x16xf32>, vector<1x32x32xf32> -> vector<1x32x32xf32>
    %cst_17 = arith.constant dense<0xFF800000> : vector<1x32xf32>
    %19 = vector.multi_reduction <maximumf>, %18, %cst_17 [2] : vector<1x32x32xf32> to vector<1x32xf32>
    %20 = vector.shape_cast %19 : vector<1x32xf32> to vector<1x32x1xf32>
    %21 = vector.broadcast %20 : vector<1x32x1xf32> to vector<1x32x32xf32>
    %22 = arith.subf %18, %21 : vector<1x32x32xf32>
    %23 = math.exp %22 : vector<1x32x32xf32>
    %cst_18 = arith.constant dense<0.000000e+00> : vector<1x32xf32>
    %24 = vector.multi_reduction <add>, %23, %cst_18 [2] : vector<1x32x32xf32> to vector<1x32xf32>
    %25 = vector.shape_cast %24 : vector<1x32xf32> to vector<1x32x1xf32>
    %26 = tpu.reciprocal %25 {approx = true} : vector<1x32x1xf32> -> vector<1x32x1xf32>
    %27 = vector.broadcast %26 : vector<1x32x1xf32> to vector<1x32x32xf32>
    %28 = arith.mulf %23, %27 : vector<1x32x32xf32>
    %cst_19 = arith.constant dense<0.000000e+00> : vector<1x32x16xf32>
    %29 = tpu.matmul %28, %17, %cst_19 {dimension_numbers = #tpu.dot_dimension_numbers<[2], [1], [1], [2], [0, 0, 0, 1, 1, 2], [0], [0]>} : vector<1x32x32xf32>, vector<1x32x16xf32>, vector<1x32x16xf32> -> vector<1x32x16xf32>
    %30 = vector.extract_strided_slice %3 {offsets = [0, 16], sizes = [32, 16], strides = [1, 1]} : vector<32x128xf32> to vector<32x16xf32>
    %31 = vector.shape_cast %30 : vector<32x16xf32> to vector<1x32x16xf32>
    %32 = vector.extract_strided_slice %7 {offsets = [0, 16], sizes = [32, 16], strides = [1, 1]} : vector<32x128xf32> to vector<32x16xf32>
    %33 = vector.shape_cast %32 : vector<32x16xf32> to vector<1x32x16xf32>
    %34 = vector.extract_strided_slice %11 {offsets = [0, 16], sizes = [32, 16], strides = [1, 1]} : vector<32x128xf32> to vector<32x16xf32>
    %35 = vector.shape_cast %34 : vector<32x16xf32> to vector<1x32x16xf32>
    %cst_20 = arith.constant dense<0.000000e+00> : vector<1x32x32xf32>
    %36 = tpu.matmul %31, %33, %cst_20 {dimension_numbers = #tpu.dot_dimension_numbers<[2], [2], [1], [1], [0, 0, 0, 1, 1, 1], [0], [0]>} : vector<1x32x16xf32>, vector<1x32x16xf32>, vector<1x32x32xf32> -> vector<1x32x32xf32>
    %cst_21 = arith.constant dense<0xFF800000> : vector<1x32xf32>
    %37 = vector.multi_reduction <maximumf>, %36, %cst_21 [2] : vector<1x32x32xf32> to vector<1x32xf32>
    %38 = vector.shape_cast %37 : vector<1x32xf32> to vector<1x32x1xf32>
    %39 = vector.broadcast %38 : vector<1x32x1xf32> to vector<1x32x32xf32>
    %40 = arith.subf %36, %39 : vector<1x32x32xf32>
    %41 = math.exp %40 : vector<1x32x32xf32>
    %cst_22 = arith.constant dense<0.000000e+00> : vector<1x32xf32>
    %42 = vector.multi_reduction <add>, %41, %cst_22 [2] : vector<1x32x32xf32> to vector<1x32xf32>
    %43 = vector.shape_cast %42 : vector<1x32xf32> to vector<1x32x1xf32>
    %44 = tpu.reciprocal %43 {approx = true} : vector<1x32x1xf32> -> vector<1x32x1xf32>
    %45 = vector.broadcast %44 : vector<1x32x1xf32> to vector<1x32x32xf32>
    %46 = arith.mulf %41, %45 : vector<1x32x32xf32>
    %cst_23 = arith.constant dense<0.000000e+00> : vector<1x32x16xf32>
    %47 = tpu.matmul %46, %35, %cst_23 {dimension_numbers = #tpu.dot_dimension_numbers<[2], [1], [1], [2], [0, 0, 0, 1, 1, 2], [0], [0]>} : vector<1x32x32xf32>, vector<1x32x16xf32>, vector<1x32x16xf32> -> vector<1x32x16xf32>
    %48 = vector.extract_strided_slice %3 {offsets = [0, 32], sizes = [32, 16], strides = [1, 1]} : vector<32x128xf32> to vector<32x16xf32>
    %49 = vector.shape_cast %48 : vector<32x16xf32> to vector<1x32x16xf32>
    %50 = vector.extract_strided_slice %7 {offsets = [0, 32], sizes = [32, 16], strides = [1, 1]} : vector<32x128xf32> to vector<32x16xf32>
    %51 = vector.shape_cast %50 : vector<32x16xf32> to vector<1x32x16xf32>
    %52 = vector.extract_strided_slice %11 {offsets = [0, 32], sizes = [32, 16], strides = [1, 1]} : vector<32x128xf32> to vector<32x16xf32>
    %53 = vector.shape_cast %52 : vector<32x16xf32> to vector<1x32x16xf32>
    %cst_24 = arith.constant dense<0.000000e+00> : vector<1x32x32xf32>
    %54 = tpu.matmul %49, %51, %cst_24 {dimension_numbers = #tpu.dot_dimension_numbers<[2], [2], [1], [1], [0, 0, 0, 1, 1, 1], [0], [0]>} : vector<1x32x16xf32>, vector<1x32x16xf32>, vector<1x32x32xf32> -> vector<1x32x32xf32>
    %cst_25 = arith.constant dense<0xFF800000> : vector<1x32xf32>
    %55 = vector.multi_reduction <maximumf>, %54, %cst_25 [2] : vector<1x32x32xf32> to vector<1x32xf32>
    %56 = vector.shape_cast %55 : vector<1x32xf32> to vector<1x32x1xf32>
    %57 = vector.broadcast %56 : vector<1x32x1xf32> to vector<1x32x32xf32>
    %58 = arith.subf %54, %57 : vector<1x32x32xf32>
    %59 = math.exp %58 : vector<1x32x32xf32>
    %cst_26 = arith.constant dense<0.000000e+00> : vector<1x32xf32>
    %60 = vector.multi_reduction <add>, %59, %cst_26 [2] : vector<1x32x32xf32> to vector<1x32xf32>
    %61 = vector.shape_cast %60 : vector<1x32xf32> to vector<1x32x1xf32>
    %62 = tpu.reciprocal %61 {approx = true} : vector<1x32x1xf32> -> vector<1x32x1xf32>
    %63 = vector.broadcast %62 : vector<1x32x1xf32> to vector<1x32x32xf32>
    %64 = arith.mulf %59, %63 : vector<1x32x32xf32>
    %cst_27 = arith.constant dense<0.000000e+00> : vector<1x32x16xf32>
    %65 = tpu.matmul %64, %53, %cst_27 {dimension_numbers = #tpu.dot_dimension_numbers<[2], [1], [1], [2], [0, 0, 0, 1, 1, 2], [0], [0]>} : vector<1x32x32xf32>, vector<1x32x16xf32>, vector<1x32x16xf32> -> vector<1x32x16xf32>
    %66 = vector.extract_strided_slice %3 {offsets = [0, 48], sizes = [32, 16], strides = [1, 1]} : vector<32x128xf32> to vector<32x16xf32>
    %67 = vector.shape_cast %66 : vector<32x16xf32> to vector<1x32x16xf32>
    %68 = vector.extract_strided_slice %7 {offsets = [0, 48], sizes = [32, 16], strides = [1, 1]} : vector<32x128xf32> to vector<32x16xf32>
    %69 = vector.shape_cast %68 : vector<32x16xf32> to vector<1x32x16xf32>
    %70 = vector.extract_strided_slice %11 {offsets = [0, 48], sizes = [32, 16], strides = [1, 1]} : vector<32x128xf32> to vector<32x16xf32>
    %71 = vector.shape_cast %70 : vector<32x16xf32> to vector<1x32x16xf32>
    %cst_28 = arith.constant dense<0.000000e+00> : vector<1x32x32xf32>
    %72 = tpu.matmul %67, %69, %cst_28 {dimension_numbers = #tpu.dot_dimension_numbers<[2], [2], [1], [1], [0, 0, 0, 1, 1, 1], [0], [0]>} : vector<1x32x16xf32>, vector<1x32x16xf32>, vector<1x32x32xf32> -> vector<1x32x32xf32>
    %cst_29 = arith.constant dense<0xFF800000> : vector<1x32xf32>
    %73 = vector.multi_reduction <maximumf>, %72, %cst_29 [2] : vector<1x32x32xf32> to vector<1x32xf32>
    %74 = vector.shape_cast %73 : vector<1x32xf32> to vector<1x32x1xf32>
    %75 = vector.broadcast %74 : vector<1x32x1xf32> to vector<1x32x32xf32>
    %76 = arith.subf %72, %75 : vector<1x32x32xf32>
    %77 = math.exp %76 : vector<1x32x32xf32>
    %cst_30 = arith.constant dense<0.000000e+00> : vector<1x32xf32>
    %78 = vector.multi_reduction <add>, %77, %cst_30 [2] : vector<1x32x32xf32> to vector<1x32xf32>
    %79 = vector.shape_cast %78 : vector<1x32xf32> to vector<1x32x1xf32>
    %80 = tpu.reciprocal %79 {approx = true} : vector<1x32x1xf32> -> vector<1x32x1xf32>
    %81 = vector.broadcast %80 : vector<1x32x1xf32> to vector<1x32x32xf32>
    %82 = arith.mulf %77, %81 : vector<1x32x32xf32>
    %cst_31 = arith.constant dense<0.000000e+00> : vector<1x32x16xf32>
    %83 = tpu.matmul %82, %71, %cst_31 {dimension_numbers = #tpu.dot_dimension_numbers<[2], [1], [1], [2], [0, 0, 0, 1, 1, 2], [0], [0]>} : vector<1x32x32xf32>, vector<1x32x16xf32>, vector<1x32x16xf32> -> vector<1x32x16xf32>
    %84 = vector.extract_strided_slice %3 {offsets = [0, 64], sizes = [32, 16], strides = [1, 1]} : vector<32x128xf32> to vector<32x16xf32>
    %85 = vector.shape_cast %84 : vector<32x16xf32> to vector<1x32x16xf32>
    %86 = vector.extract_strided_slice %7 {offsets = [0, 64], sizes = [32, 16], strides = [1, 1]} : vector<32x128xf32> to vector<32x16xf32>
    %87 = vector.shape_cast %86 : vector<32x16xf32> to vector<1x32x16xf32>
    %88 = vector.extract_strided_slice %11 {offsets = [0, 64], sizes = [32, 16], strides = [1, 1]} : vector<32x128xf32> to vector<32x16xf32>
    %89 = vector.shape_cast %88 : vector<32x16xf32> to vector<1x32x16xf32>
    %cst_32 = arith.constant dense<0.000000e+00> : vector<1x32x32xf32>
    %90 = tpu.matmul %85, %87, %cst_32 {dimension_numbers = #tpu.dot_dimension_numbers<[2], [2], [1], [1], [0, 0, 0, 1, 1, 1], [0], [0]>} : vector<1x32x16xf32>, vector<1x32x16xf32>, vector<1x32x32xf32> -> vector<1x32x32xf32>
    %cst_33 = arith.constant dense<0xFF800000> : vector<1x32xf32>
    %91 = vector.multi_reduction <maximumf>, %90, %cst_33 [2] : vector<1x32x32xf32> to vector<1x32xf32>
    %92 = vector.shape_cast %91 : vector<1x32xf32> to vector<1x32x1xf32>
    %93 = vector.broadcast %92 : vector<1x32x1xf32> to vector<1x32x32xf32>
    %94 = arith.subf %90, %93 : vector<1x32x32xf32>
    %95 = math.exp %94 : vector<1x32x32xf32>
    %cst_34 = arith.constant dense<0.000000e+00> : vector<1x32xf32>
    %96 = vector.multi_reduction <add>, %95, %cst_34 [2] : vector<1x32x32xf32> to vector<1x32xf32>
    %97 = vector.shape_cast %96 : vector<1x32xf32> to vector<1x32x1xf32>
    %98 = tpu.reciprocal %97 {approx = true} : vector<1x32x1xf32> -> vector<1x32x1xf32>
    %99 = vector.broadcast %98 : vector<1x32x1xf32> to vector<1x32x32xf32>
    %100 = arith.mulf %95, %99 : vector<1x32x32xf32>
    %cst_35 = arith.constant dense<0.000000e+00> : vector<1x32x16xf32>
    %101 = tpu.matmul %100, %89, %cst_35 {dimension_numbers = #tpu.dot_dimension_numbers<[2], [1], [1], [2], [0, 0, 0, 1, 1, 2], [0], [0]>} : vector<1x32x32xf32>, vector<1x32x16xf32>, vector<1x32x16xf32> -> vector<1x32x16xf32>
    %102 = vector.extract_strided_slice %3 {offsets = [0, 80], sizes = [32, 16], strides = [1, 1]} : vector<32x128xf32> to vector<32x16xf32>
    %103 = vector.shape_cast %102 : vector<32x16xf32> to vector<1x32x16xf32>
    %104 = vector.extract_strided_slice %7 {offsets = [0, 80], sizes = [32, 16], strides = [1, 1]} : vector<32x128xf32> to vector<32x16xf32>
    %105 = vector.shape_cast %104 : vector<32x16xf32> to vector<1x32x16xf32>
    %106 = vector.extract_strided_slice %11 {offsets = [0, 80], sizes = [32, 16], strides = [1, 1]} : vector<32x128xf32> to vector<32x16xf32>
    %107 = vector.shape_cast %106 : vector<32x16xf32> to vector<1x32x16xf32>
    %cst_36 = arith.constant dense<0.000000e+00> : vector<1x32x32xf32>
    %108 = tpu.matmul %103, %105, %cst_36 {dimension_numbers = #tpu.dot_dimension_numbers<[2], [2], [1], [1], [0, 0, 0, 1, 1, 1], [0], [0]>} : vector<1x32x16xf32>, vector<1x32x16xf32>, vector<1x32x32xf32> -> vector<1x32x32xf32>
    %cst_37 = arith.constant dense<0xFF800000> : vector<1x32xf32>
    %109 = vector.multi_reduction <maximumf>, %108, %cst_37 [2] : vector<1x32x32xf32> to vector<1x32xf32>
    %110 = vector.shape_cast %109 : vector<1x32xf32> to vector<1x32x1xf32>
    %111 = vector.broadcast %110 : vector<1x32x1xf32> to vector<1x32x32xf32>
    %112 = arith.subf %108, %111 : vector<1x32x32xf32>
    %113 = math.exp %112 : vector<1x32x32xf32>
    %cst_38 = arith.constant dense<0.000000e+00> : vector<1x32xf32>
    %114 = vector.multi_reduction <add>, %113, %cst_38 [2] : vector<1x32x32xf32> to vector<1x32xf32>
    %115 = vector.shape_cast %114 : vector<1x32xf32> to vector<1x32x1xf32>
    %116 = tpu.reciprocal %115 {approx = true} : vector<1x32x1xf32> -> vector<1x32x1xf32>
    %117 = vector.broadcast %116 : vector<1x32x1xf32> to vector<1x32x32xf32>
    %118 = arith.mulf %113, %117 : vector<1x32x32xf32>
    %cst_39 = arith.constant dense<0.000000e+00> : vector<1x32x16xf32>
    %119 = tpu.matmul %118, %107, %cst_39 {dimension_numbers = #tpu.dot_dimension_numbers<[2], [1], [1], [2], [0, 0, 0, 1, 1, 2], [0], [0]>} : vector<1x32x32xf32>, vector<1x32x16xf32>, vector<1x32x16xf32> -> vector<1x32x16xf32>
    %120 = vector.extract_strided_slice %3 {offsets = [0, 96], sizes = [32, 16], strides = [1, 1]} : vector<32x128xf32> to vector<32x16xf32>
    %121 = vector.shape_cast %120 : vector<32x16xf32> to vector<1x32x16xf32>
    %122 = vector.extract_strided_slice %7 {offsets = [0, 96], sizes = [32, 16], strides = [1, 1]} : vector<32x128xf32> to vector<32x16xf32>
    %123 = vector.shape_cast %122 : vector<32x16xf32> to vector<1x32x16xf32>
    %124 = vector.extract_strided_slice %11 {offsets = [0, 96], sizes = [32, 16], strides = [1, 1]} : vector<32x128xf32> to vector<32x16xf32>
    %125 = vector.shape_cast %124 : vector<32x16xf32> to vector<1x32x16xf32>
    %cst_40 = arith.constant dense<0.000000e+00> : vector<1x32x32xf32>
    %126 = tpu.matmul %121, %123, %cst_40 {dimension_numbers = #tpu.dot_dimension_numbers<[2], [2], [1], [1], [0, 0, 0, 1, 1, 1], [0], [0]>} : vector<1x32x16xf32>, vector<1x32x16xf32>, vector<1x32x32xf32> -> vector<1x32x32xf32>
    %cst_41 = arith.constant dense<0xFF800000> : vector<1x32xf32>
    %127 = vector.multi_reduction <maximumf>, %126, %cst_41 [2] : vector<1x32x32xf32> to vector<1x32xf32>
    %128 = vector.shape_cast %127 : vector<1x32xf32> to vector<1x32x1xf32>
    %129 = vector.broadcast %128 : vector<1x32x1xf32> to vector<1x32x32xf32>
    %130 = arith.subf %126, %129 : vector<1x32x32xf32>
    %131 = math.exp %130 : vector<1x32x32xf32>
    %cst_42 = arith.constant dense<0.000000e+00> : vector<1x32xf32>
    %132 = vector.multi_reduction <add>, %131, %cst_42 [2] : vector<1x32x32xf32> to vector<1x32xf32>
    %133 = vector.shape_cast %132 : vector<1x32xf32> to vector<1x32x1xf32>
    %134 = tpu.reciprocal %133 {approx = true} : vector<1x32x1xf32> -> vector<1x32x1xf32>
    %135 = vector.broadcast %134 : vector<1x32x1xf32> to vector<1x32x32xf32>
    %136 = arith.mulf %131, %135 : vector<1x32x32xf32>
    %cst_43 = arith.constant dense<0.000000e+00> : vector<1x32x16xf32>
    %137 = tpu.matmul %136, %125, %cst_43 {dimension_numbers = #tpu.dot_dimension_numbers<[2], [1], [1], [2], [0, 0, 0, 1, 1, 2], [0], [0]>} : vector<1x32x32xf32>, vector<1x32x16xf32>, vector<1x32x16xf32> -> vector<1x32x16xf32>
    %138 = vector.extract_strided_slice %3 {offsets = [0, 112], sizes = [32, 16], strides = [1, 1]} : vector<32x128xf32> to vector<32x16xf32>
    %139 = vector.shape_cast %138 : vector<32x16xf32> to vector<1x32x16xf32>
    %140 = vector.extract_strided_slice %7 {offsets = [0, 112], sizes = [32, 16], strides = [1, 1]} : vector<32x128xf32> to vector<32x16xf32>
    %141 = vector.shape_cast %140 : vector<32x16xf32> to vector<1x32x16xf32>
    %142 = vector.extract_strided_slice %11 {offsets = [0, 112], sizes = [32, 16], strides = [1, 1]} : vector<32x128xf32> to vector<32x16xf32>
    %143 = vector.shape_cast %142 : vector<32x16xf32> to vector<1x32x16xf32>
    %cst_44 = arith.constant dense<0.000000e+00> : vector<1x32x32xf32>
    %144 = tpu.matmul %139, %141, %cst_44 {dimension_numbers = #tpu.dot_dimension_numbers<[2], [2], [1], [1], [0, 0, 0, 1, 1, 1], [0], [0]>} : vector<1x32x16xf32>, vector<1x32x16xf32>, vector<1x32x32xf32> -> vector<1x32x32xf32>
    %cst_45 = arith.constant dense<0xFF800000> : vector<1x32xf32>
    %145 = vector.multi_reduction <maximumf>, %144, %cst_45 [2] : vector<1x32x32xf32> to vector<1x32xf32>
    %146 = vector.shape_cast %145 : vector<1x32xf32> to vector<1x32x1xf32>
    %147 = vector.broadcast %146 : vector<1x32x1xf32> to vector<1x32x32xf32>
    %148 = arith.subf %144, %147 : vector<1x32x32xf32>
    %149 = math.exp %148 : vector<1x32x32xf32>
    %cst_46 = arith.constant dense<0.000000e+00> : vector<1x32xf32>
    %150 = vector.multi_reduction <add>, %149, %cst_46 [2] : vector<1x32x32xf32> to vector<1x32xf32>
    %151 = vector.shape_cast %150 : vector<1x32xf32> to vector<1x32x1xf32>
    %152 = tpu.reciprocal %151 {approx = true} : vector<1x32x1xf32> -> vector<1x32x1xf32>
    %153 = vector.broadcast %152 : vector<1x32x1xf32> to vector<1x32x32xf32>
    %154 = arith.mulf %149, %153 : vector<1x32x32xf32>
    %cst_47 = arith.constant dense<0.000000e+00> : vector<1x32x16xf32>
    %155 = tpu.matmul %154, %143, %cst_47 {dimension_numbers = #tpu.dot_dimension_numbers<[2], [1], [1], [2], [0, 0, 0, 1, 1, 2], [0], [0]>} : vector<1x32x32xf32>, vector<1x32x16xf32>, vector<1x32x16xf32> -> vector<1x32x16xf32>
    %156 = tpu.concatenate %29, %47, %65, %83, %101, %119, %137, %155 in 2 : vector<1x32x16xf32>, vector<1x32x16xf32>, vector<1x32x16xf32>, vector<1x32x16xf32>, vector<1x32x16xf32>, vector<1x32x16xf32>, vector<1x32x16xf32>, vector<1x32x16xf32> -> vector<1x32x128xf32>
    %157 = vector.shape_cast %156 : vector<1x32x128xf32> to vector<32x128xf32>
    %c0_48 = arith.constant 0 : index
    %c0_49 = arith.constant 0 : index
    %158 = vector.load %arg8[%c0_48, %c0_49] : memref<128x128xf32, #tpu.memory_space<vmem>>, vector<128x128xf32>
    %cst_50 = arith.constant dense<0.000000e+00> : vector<32x128xf32>
    %159 = tpu.matmul %157, %158, %cst_50 {dimension_numbers = #tpu.dot_dimension_numbers<[1], [0], [0], [1], [0, 0, 1, 1], [], []>} : vector<32x128xf32>, vector<128x128xf32>, vector<32x128xf32> -> vector<32x128xf32>
    %c0_51 = arith.constant 0 : index
    %c0_52 = arith.constant 0 : index
    %160 = vector.load %arg9[%c0_51, %c0_52] : memref<1x128xf32, #tpu.memory_space<vmem>>, vector<1x128xf32>
    %161 = vector.broadcast %160 : vector<1x128xf32> to vector<32x128xf32>
    %162 = arith.addf %159, %161 : vector<32x128xf32>
    %163 = vector.shape_cast %162 : vector<32x128xf32> to vector<1x32x128xf32>
    %c0_53 = arith.constant 0 : index
    %c0_54 = arith.constant 0 : index
    %c0_55 = arith.constant 0 : index
    %164 = vector.load %arg10[%c0_53, %c0_54, %c0_55] : memref<1x32x128xf32, #tpu.memory_space<vmem>>, vector<1x32x128xf32>
    tpu.vector_store %arg10[%c0_53, %c0_54, %c0_55], %163 {strides = array<i32>} : memref<1x32x128xf32, #tpu.memory_space<vmem>>, vector<1x32x128xf32>,
    return
  }
  func.func @transform_0(%arg0: i32, %arg1: i32) -> (i32, i32, i32) {
    %c0_i32 = arith.constant 0 : i32
    %c0_i32_0 = arith.constant 0 : i32
    return %arg0, %arg1, %c0_i32 : i32, i32, i32
  }
  func.func @transform_1(%arg0: i32, %arg1: i32) -> (i32, i32, i32) {
    %c0_i32 = arith.constant 0 : i32
    %c0_i32_0 = arith.constant 0 : i32
    %c0_i32_1 = arith.constant 0 : i32
    return %arg0, %c0_i32, %c0_i32_0 : i32, i32, i32
  }
  func.func @transform_2(%arg0: i32, %arg1: i32) -> (i32, i32, i32) {
    %c0_i32 = arith.constant 0 : i32
    %c0_i32_0 = arith.constant 0 : i32
    %c0_i32_1 = arith.constant 0 : i32
    return %arg0, %c0_i32, %c0_i32_0 : i32, i32, i32
  }
  func.func @transform_3(%arg0: i32, %arg1: i32) -> (i32, i32) {
    %c0_i32 = arith.constant 0 : i32
    %c0_i32_0 = arith.constant 0 : i32
    %c0_i32_1 = arith.constant 0 : i32
    return %c0_i32, %c0_i32_0 : i32, i32
  }
  func.func @transform_4(%arg0: i32, %arg1: i32) -> (i32, i32) {
    %c0_i32 = arith.constant 0 : i32
    %c0_i32_0 = arith.constant 0 : i32
    %c0_i32_1 = arith.constant 0 : i32
    return %c0_i32, %c0_i32_0 : i32, i32
  }
  func.func @transform_5(%arg0: i32, %arg1: i32) -> (i32, i32) {
    %c0_i32 = arith.constant 0 : i32
    %c0_i32_0 = arith.constant 0 : i32
    %c0_i32_1 = arith.constant 0 : i32
    return %c0_i32, %c0_i32_0 : i32, i32
  }
  func.func @transform_6(%arg0: i32, %arg1: i32) -> (i32, i32) {
    %c0_i32 = arith.constant 0 : i32
    %c0_i32_0 = arith.constant 0 : i32
    %c0_i32_1 = arith.constant 0 : i32
    return %c0_i32, %c0_i32_0 : i32, i32
  }
  func.func @transform_7(%arg0: i32, %arg1: i32) -> (i32, i32) {
    %c0_i32 = arith.constant 0 : i32
    %c0_i32_0 = arith.constant 0 : i32
    %c0_i32_1 = arith.constant 0 : i32
    return %c0_i32, %c0_i32_0 : i32, i32
  }
  func.func @transform_8(%arg0: i32, %arg1: i32) -> (i32, i32, i32) {
    %c0_i32 = arith.constant 0 : i32
    %c0_i32_0 = arith.constant 0 : i32
    return %arg0, %arg1, %c0_i32 : i32, i32, i32
  }
}

module attributes {stable_mosaic.version = 11 : i64} {
  func.func @_cross_attn_kernel(%arg0: i32, %arg1: i32, %arg2: memref<1x32x128xf32, #tpu.memory_space<vmem>>, %arg3: memref<1x32x128xf32, #tpu.memory_space<vmem>>, %arg4: memref<1x32x128xf32, #tpu.memory_space<vmem>>, %arg5: memref<128x128xf32, #tpu.memory_space<vmem>>, %arg6: memref<128x128xf32, #tpu.memory_space<vmem>>, %arg7: memref<128x128xf32, #tpu.memory_space<vmem>>, %arg8: memref<128x128xf32, #tpu.memory_space<vmem>>, %arg9: memref<1x128xf32, #tpu.memory_space<vmem>>, %arg10: memref<1x32x128xf32, #tpu.memory_space<vmem>>) attributes {dimension_semantics = [#tpu.dimension_semantics<parallel>, #tpu.dimension_semantics<parallel>], iteration_bounds = array<i64: 4, 1>, scalar_prefetch = 0 : i64, scratch_operands = 0 : i64, tpu.core_type = #tpu.core_type<tc>, window_params = [{transform_indices = @transform_0, window_bounds = array<i64: 1, 32, 128>}, {transform_indices = @transform_1, window_bounds = array<i64: 1, 32, 128>}, {transform_indices = @transform_2, window_bounds = array<i64: 1, 32, 128>}, {pipeline_mode = #tpu.pipeline_mode<synchronous>, transform_indices = @transform_3, window_bounds = array<i64: 128, 128>}, {pipeline_mode = #tpu.pipeline_mode<synchronous>, transform_indices = @transform_4, window_bounds = array<i64: 128, 128>}, {pipeline_mode = #tpu.pipeline_mode<synchronous>, transform_indices = @transform_5, window_bounds = array<i64: 128, 128>}, {pipeline_mode = #tpu.pipeline_mode<synchronous>, transform_indices = @transform_6, window_bounds = array<i64: 128, 128>}, {pipeline_mode = #tpu.pipeline_mode<synchronous>, transform_indices = @transform_7, window_bounds = array<i64: 1, 128>}, {transform_indices = @transform_8, window_bounds = array<i64: 1, 32, 128>}]} {
    %c0 = arith.constant 0 : index
    %c0_0 = arith.constant 0 : index
    %c0_1 = arith.constant 0 : index
    %0 = vector.load %arg2[%c0, %c0_0, %c0_1] : memref<1x32x128xf32, #tpu.memory_space<vmem>>, vector<1x32x128xf32>
    %1 = vector.shape_cast %0 : vector<1x32x128xf32> to vector<32x128xf32>
    %c0_2 = arith.constant 0 : index
    %c0_3 = arith.constant 0 : index
    %2 = vector.load %arg5[%c0_2, %c0_3] : memref<128x128xf32, #tpu.memory_space<vmem>>, vector<128x128xf32>
    %cst = arith.constant dense<0.000000e+00> : vector<32x128xf32>
    %3 = tpu.matmul %1, %2, %cst {dimension_numbers = #tpu.dot_dimension_numbers<[1], [0], [0], [1], [0, 0, 1, 1], [], []>} : vector<32x128xf32>, vector<128x128xf32>, vector<32x128xf32> -> vector<32x128xf32>
    %c0_4 = arith.constant 0 : index
    %c0_5 = arith.constant 0 : index
    %c0_6 = arith.constant 0 : index
    %4 = vector.load %arg3[%c0_4, %c0_5, %c0_6] : memref<1x32x128xf32, #tpu.memory_space<vmem>>, vector<1x32x128xf32>
    %5 = vector.shape_cast %4 : vector<1x32x128xf32> to vector<32x128xf32>
    %c0_7 = arith.constant 0 : index
    %c0_8 = arith.constant 0 : index
    %6 = vector.load %arg6[%c0_7, %c0_8] : memref<128x128xf32, #tpu.memory_space<vmem>>, vector<128x128xf32>
    %cst_9 = arith.constant dense<0.000000e+00> : vector<32x128xf32>
    %7 = tpu.matmul %5, %6, %cst_9 {dimension_numbers = #tpu.dot_dimension_numbers<[1], [0], [0], [1], [0, 0, 1, 1], [], []>} : vector<32x128xf32>, vector<128x128xf32>, vector<32x128xf32> -> vector<32x128xf32>
    %c0_10 = arith.constant 0 : index
    %c0_11 = arith.constant 0 : index
    %c0_12 = arith.constant 0 : index
    %8 = vector.load %arg4[%c0_10, %c0_11, %c0_12] : memref<1x32x128xf32, #tpu.memory_space<vmem>>, vector<1x32x128xf32>
    %9 = vector.shape_cast %8 : vector<1x32x128xf32> to vector<32x128xf32>
    %c0_13 = arith.constant 0 : index
    %c0_14 = arith.constant 0 : index
    %10 = vector.load %arg7[%c0_13, %c0_14] : memref<128x128xf32, #tpu.memory_space<vmem>>, vector<128x128xf32>
    %cst_15 = arith.constant dense<0.000000e+00> : vector<32x128xf32>
    %11 = tpu.matmul %9, %10, %cst_15 {dimension_numbers = #tpu.dot_dimension_numbers<[1], [0], [0], [1], [0, 0, 1, 1], [], []>} : vector<32x128xf32>, vector<128x128xf32>, vector<32x128xf32> -> vector<32x128xf32>
    %12 = vector.extract_strided_slice %3 {offsets = [0, 0], sizes = [32, 16], strides = [1, 1]} : vector<32x128xf32> to vector<32x16xf32>
    %13 = vector.shape_cast %12 : vector<32x16xf32> to vector<1x32x16xf32>
    %14 = vector.extract_strided_slice %7 {offsets = [0, 0], sizes = [32, 16], strides = [1, 1]} : vector<32x128xf32> to vector<32x16xf32>
    %15 = vector.shape_cast %14 : vector<32x16xf32> to vector<1x32x16xf32>
    %16 = vector.extract_strided_slice %11 {offsets = [0, 0], sizes = [32, 16], strides = [1, 1]} : vector<32x128xf32> to vector<32x16xf32>
    %17 = vector.shape_cast %16 : vector<32x16xf32> to vector<1x32x16xf32>
    %cst_16 = arith.constant dense<0.000000e+00> : vector<1x32x32xf32>
    %18 = tpu.matmul %13, %15, %cst_16 {dimension_numbers = #tpu.dot_dimension_numbers<[2], [2], [1], [1], [0, 0, 0, 1, 1, 1], [0], [0]>} : vector<1x32x16xf32>, vector<1x32x16xf32>, vector<1x32x32xf32> -> vector<1x32x32xf32>
    %cst_17 = arith.constant dense<0xFF800000> : vector<1x32xf32>
    %19 = vector.multi_reduction <maximumf>, %18, %cst_17 [2] : vector<1x32x32xf32> to vector<1x32xf32>
    %20 = vector.shape_cast %19 : vector<1x32xf32> to vector<1x32x1xf32>
    %21 = vector.broadcast %20 : vector<1x32x1xf32> to vector<1x32x32xf32>
    %22 = arith.subf %18, %21 : vector<1x32x32xf32>
    %23 = math.exp %22 : vector<1x32x32xf32>
    %cst_18 = arith.constant dense<0.000000e+00> : vector<1x32xf32>
    %24 = vector.multi_reduction <add>, %23, %cst_18 [2] : vector<1x32x32xf32> to vector<1x32xf32>
    %25 = vector.shape_cast %24 : vector<1x32xf32> to vector<1x32x1xf32>
    %26 = tpu.reciprocal %25 {approx = true} : vector<1x32x1xf32> -> vector<1x32x1xf32>
    %27 = vector.broadcast %26 : vector<1x32x1xf32> to vector<1x32x32xf32>
    %28 = arith.mulf %23, %27 : vector<1x32x32xf32>
    %cst_19 = arith.constant dense<0.000000e+00> : vector<1x32x16xf32>
    %29 = tpu.matmul %28, %17, %cst_19 {dimension_numbers = #tpu.dot_dimension_numbers<[2], [1], [1], [2], [0, 0, 0, 1, 1, 2], [0], [0]>} : vector<1x32x32xf32>, vector<1x32x16xf32>, vector<1x32x16xf32> -> vector<1x32x16xf32>
    %30 = vector.extract_strided_slice %3 {offsets = [0, 16], sizes = [32, 16], strides = [1, 1]} : vector<32x128xf32> to vector<32x16xf32>
    %31 = vector.shape_cast %30 : vector<32x16xf32> to vector<1x32x16xf32>
    %32 = vector.extract_strided_slice %7 {offsets = [0, 16], sizes = [32, 16], strides = [1, 1]} : vector<32x128xf32> to vector<32x16xf32>
    %33 = vector.shape_cast %32 : vector<32x16xf32> to vector<1x32x16xf32>
    %34 = vector.extract_strided_slice %11 {offsets = [0, 16], sizes = [32, 16], strides = [1, 1]} : vector<32x128xf32> to vector<32x16xf32>
    %35 = vector.shape_cast %34 : vector<32x16xf32> to vector<1x32x16xf32>
    %cst_20 = arith.constant dense<0.000000e+00> : vector<1x32x32xf32>
    %36 = tpu.matmul %31, %33, %cst_20 {dimension_numbers = #tpu.dot_dimension_numbers<[2], [2], [1], [1], [0, 0, 0, 1, 1, 1], [0], [0]>} : vector<1x32x16xf32>, vector<1x32x16xf32>, vector<1x32x32xf32> -> vector<1x32x32xf32>
    %cst_21 = arith.constant dense<0xFF800000> : vector<1x32xf32>
    %37 = vector.multi_reduction <maximumf>, %36, %cst_21 [2] : vector<1x32x32xf32> to vector<1x32xf32>
    %38 = vector.shape_cast %37 : vector<1x32xf32> to vector<1x32x1xf32>
    %39 = vector.broadcast %38 : vector<1x32x1xf32> to vector<1x32x32xf32>
    %40 = arith.subf %36, %39 : vector<1x32x32xf32>
    %41 = math.exp %40 : vector<1x32x32xf32>
    %cst_22 = arith.constant dense<0.000000e+00> : vector<1x32xf32>
    %42 = vector.multi_reduction <add>, %41, %cst_22 [2] : vector<1x32x32xf32> to vector<1x32xf32>
    %43 = vector.shape_cast %42 : vector<1x32xf32> to vector<1x32x1xf32>
    %44 = tpu.reciprocal %43 {approx = true} : vector<1x32x1xf32> -> vector<1x32x1xf32>
    %45 = vector.broadcast %44 : vector<1x32x1xf32> to vector<1x32x32xf32>
    %46 = arith.mulf %41, %45 : vector<1x32x32xf32>
    %cst_23 = arith.constant dense<0.000000e+00> : vector<1x32x16xf32>
    %47 = tpu.matmul %46, %35, %cst_23 {dimension_numbers = #tpu.dot_dimension_numbers<[2], [1], [1], [2], [0, 0, 0, 1, 1, 2], [0], [0]>} : vector<1x32x32xf32>, vector<1x32x16xf32>, vector<1x32x16xf32> -> vector<1x32x16xf32>
    %48 = vector.extract_strided_slice %3 {offsets = [0, 32], sizes = [32, 16], strides = [1, 1]} : vector<32x128xf32> to vector<32x16xf32>
    %49 = vector.shape_cast %48 : vector<32x16xf32> to vector<1x32x16xf32>
    %50 = vector.extract_strided_slice %7 {offsets = [0, 32], sizes = [32, 16], strides = [1, 1]} : vector<32x128xf32> to vector<32x16xf32>
    %51 = vector.shape_cast %50 : vector<32x16xf32> to vector<1x32x16xf32>
    %52 = vector.extract_strided_slice %11 {offsets = [0, 32], sizes = [32, 16], strides = [1, 1]} : vector<32x128xf32> to vector<32x16xf32>
    %53 = vector.shape_cast %52 : vector<32x16xf32> to vector<1x32x16xf32>
    %cst_24 = arith.constant dense<0.000000e+00> : vector<1x32x32xf32>
    %54 = tpu.matmul %49, %51, %cst_24 {dimension_numbers = #tpu.dot_dimension_numbers<[2], [2], [1], [1], [0, 0, 0, 1, 1, 1], [0], [0]>} : vector<1x32x16xf32>, vector<1x32x16xf32>, vector<1x32x32xf32> -> vector<1x32x32xf32>
    %cst_25 = arith.constant dense<0xFF800000> : vector<1x32xf32>
    %55 = vector.multi_reduction <maximumf>, %54, %cst_25 [2] : vector<1x32x32xf32> to vector<1x32xf32>
    %56 = vector.shape_cast %55 : vector<1x32xf32> to vector<1x32x1xf32>
    %57 = vector.broadcast %56 : vector<1x32x1xf32> to vector<1x32x32xf32>
    %58 = arith.subf %54, %57 : vector<1x32x32xf32>
    %59 = math.exp %58 : vector<1x32x32xf32>
    %cst_26 = arith.constant dense<0.000000e+00> : vector<1x32xf32>
    %60 = vector.multi_reduction <add>, %59, %cst_26 [2] : vector<1x32x32xf32> to vector<1x32xf32>
    %61 = vector.shape_cast %60 : vector<1x32xf32> to vector<1x32x1xf32>
    %62 = tpu.reciprocal %61 {approx = true} : vector<1x32x1xf32> -> vector<1x32x1xf32>
    %63 = vector.broadcast %62 : vector<1x32x1xf32> to vector<1x32x32xf32>
    %64 = arith.mulf %59, %63 : vector<1x32x32xf32>
    %cst_27 = arith.constant dense<0.000000e+00> : vector<1x32x16xf32>
    %65 = tpu.matmul %64, %53, %cst_27 {dimension_numbers = #tpu.dot_dimension_numbers<[2], [1], [1], [2], [0, 0, 0, 1, 1, 2], [0], [0]>} : vector<1x32x32xf32>, vector<1x32x16xf32>, vector<1x32x16xf32> -> vector<1x32x16xf32>
    %66 = vector.extract_strided_slice %3 {offsets = [0, 48], sizes = [32, 16], strides = [1, 1]} : vector<32x128xf32> to vector<32x16xf32>
    %67 = vector.shape_cast %66 : vector<32x16xf32> to vector<1x32x16xf32>
    %68 = vector.extract_strided_slice %7 {offsets = [0, 48], sizes = [32, 16], strides = [1, 1]} : vector<32x128xf32> to vector<32x16xf32>
    %69 = vector.shape_cast %68 : vector<32x16xf32> to vector<1x32x16xf32>
    %70 = vector.extract_strided_slice %11 {offsets = [0, 48], sizes = [32, 16], strides = [1, 1]} : vector<32x128xf32> to vector<32x16xf32>
    %71 = vector.shape_cast %70 : vector<32x16xf32> to vector<1x32x16xf32>
    %cst_28 = arith.constant dense<0.000000e+00> : vector<1x32x32xf32>
    %72 = tpu.matmul %67, %69, %cst_28 {dimension_numbers = #tpu.dot_dimension_numbers<[2], [2], [1], [1], [0, 0, 0, 1, 1, 1], [0], [0]>} : vector<1x32x16xf32>, vector<1x32x16xf32>, vector<1x32x32xf32> -> vector<1x32x32xf32>
    %cst_29 = arith.constant dense<0xFF800000> : vector<1x32xf32>
    %73 = vector.multi_reduction <maximumf>, %72, %cst_29 [2] : vector<1x32x32xf32> to vector<1x32xf32>
    %74 = vector.shape_cast %73 : vector<1x32xf32> to vector<1x32x1xf32>
    %75 = vector.broadcast %74 : vector<1x32x1xf32> to vector<1x32x32xf32>
    %76 = arith.subf %72, %75 : vector<1x32x32xf32>
    %77 = math.exp %76 : vector<1x32x32xf32>
    %cst_30 = arith.constant dense<0.000000e+00> : vector<1x32xf32>
    %78 = vector.multi_reduction <add>, %77, %cst_30 [2] : vector<1x32x32xf32> to vector<1x32xf32>
    %79 = vector.shape_cast %78 : vector<1x32xf32> to vector<1x32x1xf32>
    %80 = tpu.reciprocal %79 {approx = true} : vector<1x32x1xf32> -> vector<1x32x1xf32>
    %81 = vector.broadcast %80 : vector<1x32x1xf32> to vector<1x32x32xf32>
    %82 = arith.mulf %77, %81 : vector<1x32x32xf32>
    %cst_31 = arith.constant dense<0.000000e+00> : vector<1x32x16xf32>
    %83 = tpu.matmul %82, %71, %cst_31 {dimension_numbers = #tpu.dot_dimension_numbers<[2], [1], [1], [2], [0, 0, 0, 1, 1, 2], [0], [0]>} : vector<1x32x32xf32>, vector<1x32x16xf32>, vector<1x32x16xf32> -> vector<1x32x16xf32>
    %84 = vector.extract_strided_slice %3 {offsets = [0, 64], sizes = [32, 16], strides = [1, 1]} : vector<32x128xf32> to vector<32x16xf32>
    %85 = vector.shape_cast %84 : vector<32x16xf32> to vector<1x32x16xf32>
    %86 = vector.extract_strided_slice %7 {offsets = [0, 64], sizes = [32, 16], strides = [1, 1]} : vector<32x128xf32> to vector<32x16xf32>
    %87 = vector.shape_cast %86 : vector<32x16xf32> to vector<1x32x16xf32>
    %88 = vector.extract_strided_slice %11 {offsets = [0, 64], sizes = [32, 16], strides = [1, 1]} : vector<32x128xf32> to vector<32x16xf32>
    %89 = vector.shape_cast %88 : vector<32x16xf32> to vector<1x32x16xf32>
    %cst_32 = arith.constant dense<0.000000e+00> : vector<1x32x32xf32>
    %90 = tpu.matmul %85, %87, %cst_32 {dimension_numbers = #tpu.dot_dimension_numbers<[2], [2], [1], [1], [0, 0, 0, 1, 1, 1], [0], [0]>} : vector<1x32x16xf32>, vector<1x32x16xf32>, vector<1x32x32xf32> -> vector<1x32x32xf32>
    %cst_33 = arith.constant dense<0xFF800000> : vector<1x32xf32>
    %91 = vector.multi_reduction <maximumf>, %90, %cst_33 [2] : vector<1x32x32xf32> to vector<1x32xf32>
    %92 = vector.shape_cast %91 : vector<1x32xf32> to vector<1x32x1xf32>
    %93 = vector.broadcast %92 : vector<1x32x1xf32> to vector<1x32x32xf32>
    %94 = arith.subf %90, %93 : vector<1x32x32xf32>
    %95 = math.exp %94 : vector<1x32x32xf32>
    %cst_34 = arith.constant dense<0.000000e+00> : vector<1x32xf32>
    %96 = vector.multi_reduction <add>, %95, %cst_34 [2] : vector<1x32x32xf32> to vector<1x32xf32>
    %97 = vector.shape_cast %96 : vector<1x32xf32> to vector<1x32x1xf32>
    %98 = tpu.reciprocal %97 {approx = true} : vector<1x32x1xf32> -> vector<1x32x1xf32>
    %99 = vector.broadcast %98 : vector<1x32x1xf32> to vector<1x32x32xf32>
    %100 = arith.mulf %95, %99 : vector<1x32x32xf32>
    %cst_35 = arith.constant dense<0.000000e+00> : vector<1x32x16xf32>
    %101 = tpu.matmul %100, %89, %cst_35 {dimension_numbers = #tpu.dot_dimension_numbers<[2], [1], [1], [2], [0, 0, 0, 1, 1, 2], [0], [0]>} : vector<1x32x32xf32>, vector<1x32x16xf32>, vector<1x32x16xf32> -> vector<1x32x16xf32>
    %102 = vector.extract_strided_slice %3 {offsets = [0, 80], sizes = [32, 16], strides = [1, 1]} : vector<32x128xf32> to vector<32x16xf32>
    %103 = vector.shape_cast %102 : vector<32x16xf32> to vector<1x32x16xf32>
    %104 = vector.extract_strided_slice %7 {offsets = [0, 80], sizes = [32, 16], strides = [1, 1]} : vector<32x128xf32> to vector<32x16xf32>
    %105 = vector.shape_cast %104 : vector<32x16xf32> to vector<1x32x16xf32>
    %106 = vector.extract_strided_slice %11 {offsets = [0, 80], sizes = [32, 16], strides = [1, 1]} : vector<32x128xf32> to vector<32x16xf32>
    %107 = vector.shape_cast %106 : vector<32x16xf32> to vector<1x32x16xf32>
    %cst_36 = arith.constant dense<0.000000e+00> : vector<1x32x32xf32>
    %108 = tpu.matmul %103, %105, %cst_36 {dimension_numbers = #tpu.dot_dimension_numbers<[2], [2], [1], [1], [0, 0, 0, 1, 1, 1], [0], [0]>} : vector<1x32x16xf32>, vector<1x32x16xf32>, vector<1x32x32xf32> -> vector<1x32x32xf32>
    %cst_37 = arith.constant dense<0xFF800000> : vector<1x32xf32>
    %109 = vector.multi_reduction <maximumf>, %108, %cst_37 [2] : vector<1x32x32xf32> to vector<1x32xf32>
    %110 = vector.shape_cast %109 : vector<1x32xf32> to vector<1x32x1xf32>
    %111 = vector.broadcast %110 : vector<1x32x1xf32> to vector<1x32x32xf32>
    %112 = arith.subf %108, %111 : vector<1x32x32xf32>
    %113 = math.exp %112 : vector<1x32x32xf32>
    %cst_38 = arith.constant dense<0.000000e+00> : vector<1x32xf32>
    %114 = vector.multi_reduction <add>, %113, %cst_38 [2] : vector<1x32x32xf32> to vector<1x32xf32>
    %115 = vector.shape_cast %114 : vector<1x32xf32> to vector<1x32x1xf32>
    %116 = tpu.reciprocal %115 {approx = true} : vector<1x32x1xf32> -> vector<1x32x1xf32>
    %117 = vector.broadcast %116 : vector<1x32x1xf32> to vector<1x32x32xf32>
    %118 = arith.mulf %113, %117 : vector<1x32x32xf32>
    %cst_39 = arith.constant dense<0.000000e+00> : vector<1x32x16xf32>
    %119 = tpu.matmul %118, %107, %cst_39 {dimension_numbers = #tpu.dot_dimension_numbers<[2], [1], [1], [2], [0, 0, 0, 1, 1, 2], [0], [0]>} : vector<1x32x32xf32>, vector<1x32x16xf32>, vector<1x32x16xf32> -> vector<1x32x16xf32>
    %120 = vector.extract_strided_slice %3 {offsets = [0, 96], sizes = [32, 16], strides = [1, 1]} : vector<32x128xf32> to vector<32x16xf32>
    %121 = vector.shape_cast %120 : vector<32x16xf32> to vector<1x32x16xf32>
    %122 = vector.extract_strided_slice %7 {offsets = [0, 96], sizes = [32, 16], strides = [1, 1]} : vector<32x128xf32> to vector<32x16xf32>
    %123 = vector.shape_cast %122 : vector<32x16xf32> to vector<1x32x16xf32>
    %124 = vector.extract_strided_slice %11 {offsets = [0, 96], sizes = [32, 16], strides = [1, 1]} : vector<32x128xf32> to vector<32x16xf32>
    %125 = vector.shape_cast %124 : vector<32x16xf32> to vector<1x32x16xf32>
    %cst_40 = arith.constant dense<0.000000e+00> : vector<1x32x32xf32>
    %126 = tpu.matmul %121, %123, %cst_40 {dimension_numbers = #tpu.dot_dimension_numbers<[2], [2], [1], [1], [0, 0, 0, 1, 1, 1], [0], [0]>} : vector<1x32x16xf32>, vector<1x32x16xf32>, vector<1x32x32xf32> -> vector<1x32x32xf32>
    %cst_41 = arith.constant dense<0xFF800000> : vector<1x32xf32>
    %127 = vector.multi_reduction <maximumf>, %126, %cst_41 [2] : vector<1x32x32xf32> to vector<1x32xf32>
    %128 = vector.shape_cast %127 : vector<1x32xf32> to vector<1x32x1xf32>
    %129 = vector.broadcast %128 : vector<1x32x1xf32> to vector<1x32x32xf32>
    %130 = arith.subf %126, %129 : vector<1x32x32xf32>
    %131 = math.exp %130 : vector<1x32x32xf32>
    %cst_42 = arith.constant dense<0.000000e+00> : vector<1x32xf32>
    %132 = vector.multi_reduction <add>, %131, %cst_42 [2] : vector<1x32x32xf32> to vector<1x32xf32>
    %133 = vector.shape_cast %132 : vector<1x32xf32> to vector<1x32x1xf32>
    %134 = tpu.reciprocal %133 {approx = true} : vector<1x32x1xf32> -> vector<1x32x1xf32>
    %135 = vector.broadcast %134 : vector<1x32x1xf32> to vector<1x32x32xf32>
    %136 = arith.mulf %131, %135 : vector<1x32x32xf32>
    %cst_43 = arith.constant dense<0.000000e+00> : vector<1x32x16xf32>
    %137 = tpu.matmul %136, %125, %cst_43 {dimension_numbers = #tpu.dot_dimension_numbers<[2], [1], [1], [2], [0, 0, 0, 1, 1, 2], [0], [0]>} : vector<1x32x32xf32>, vector<1x32x16xf32>, vector<1x32x16xf32> -> vector<1x32x16xf32>
    %138 = vector.extract_strided_slice %3 {offsets = [0, 112], sizes = [32, 16], strides = [1, 1]} : vector<32x128xf32> to vector<32x16xf32>
    %139 = vector.shape_cast %138 : vector<32x16xf32> to vector<1x32x16xf32>
    %140 = vector.extract_strided_slice %7 {offsets = [0, 112], sizes = [32, 16], strides = [1, 1]} : vector<32x128xf32> to vector<32x16xf32>
    %141 = vector.shape_cast %140 : vector<32x16xf32> to vector<1x32x16xf32>
    %142 = vector.extract_strided_slice %11 {offsets = [0, 112], sizes = [32, 16], strides = [1, 1]} : vector<32x128xf32> to vector<32x16xf32>
    %143 = vector.shape_cast %142 : vector<32x16xf32> to vector<1x32x16xf32>
    %cst_44 = arith.constant dense<0.000000e+00> : vector<1x32x32xf32>
    %144 = tpu.matmul %139, %141, %cst_44 {dimension_numbers = #tpu.dot_dimension_numbers<[2], [2], [1], [1], [0, 0, 0, 1, 1, 1], [0], [0]>} : vector<1x32x16xf32>, vector<1x32x16xf32>, vector<1x32x32xf32> -> vector<1x32x32xf32>
    %cst_45 = arith.constant dense<0xFF800000> : vector<1x32xf32>
    %145 = vector.multi_reduction <maximumf>, %144, %cst_45 [2] : vector<1x32x32xf32> to vector<1x32xf32>
    %146 = vector.shape_cast %145 : vector<1x32xf32> to vector<1x32x1xf32>
    %147 = vector.broadcast %146 : vector<1x32x1xf32> to vector<1x32x32xf32>
    %148 = arith.subf %144, %147 : vector<1x32x32xf32>
    %149 = math.exp %148 : vector<1x32x32xf32>
    %cst_46 = arith.constant dense<0.000000e+00> : vector<1x32xf32>
    %150 = vector.multi_reduction <add>, %149, %cst_46 [2] : vector<1x32x32xf32> to vector<1x32xf32>
    %151 = vector.shape_cast %150 : vector<1x32xf32> to vector<1x32x1xf32>
    %152 = tpu.reciprocal %151 {approx = true} : vector<1x32x1xf32> -> vector<1x32x1xf32>
    %153 = vector.broadcast %152 : vector<1x32x1xf32> to vector<1x32x32xf32>
    %154 = arith.mulf %149, %153 : vector<1x32x32xf32>
    %cst_47 = arith.constant dense<0.000000e+00> : vector<1x32x16xf32>
    %155 = tpu.matmul %154, %143, %cst_47 {dimension_numbers = #tpu.dot_dimension_numbers<[2], [1], [1], [2], [0, 0, 0, 1, 1, 2], [0], [0]>} : vector<1x32x32xf32>, vector<1x32x16xf32>, vector<1x32x16xf32> -> vector<1x32x16xf32>
    %156 = tpu.concatenate %29, %47, %65, %83, %101, %119, %137, %155 in 2 : vector<1x32x16xf32>, vector<1x32x16xf32>, vector<1x32x16xf32>, vector<1x32x16xf32>, vector<1x32x16xf32>, vector<1x32x16xf32>, vector<1x32x16xf32>, vector<1x32x16xf32> -> vector<1x32x128xf32>
    %157 = vector.shape_cast %156 : vector<1x32x128xf32> to vector<32x128xf32>
    %c0_48 = arith.constant 0 : index
    %c0_49 = arith.constant 0 : index
    %158 = vector.load %arg8[%c0_48, %c0_49] : memref<128x128xf32, #tpu.memory_space<vmem>>, vector<128x128xf32>
    %cst_50 = arith.constant dense<0.000000e+00> : vector<32x128xf32>
    %159 = tpu.matmul %157, %158, %cst_50 {dimension_numbers = #tpu.dot_dimension_numbers<[1], [0], [0], [1], [0, 0, 1, 1], [], []>} : vector<32x128xf32>, vector<128x128xf32>, vector<32x128xf32> -> vector<32x128xf32>
    %c0_51 = arith.constant 0 : index
    %c0_52 = arith.constant 0 : index
    %160 = vector.load %arg9[%c0_51, %c0_52] : memref<1x128xf32, #tpu.memory_space<vmem>>, vector<1x128xf32>
    %161 = vector.broadcast %160 : vector<1x128xf32> to vector<32x128xf32>
    %162 = arith.addf %159, %161 : vector<32x128xf32>
    %163 = vector.shape_cast %162 : vector<32x128xf32> to vector<1x32x128xf32>
    %c0_53 = arith.constant 0 : index
    %c0_54 = arith.constant 0 : index
    %c0_55 = arith.constant 0 : index
    %164 = vector.load %arg10[%c0_53, %c0_54, %c0_55] : memref<1x32x128xf32, #tpu.memory_space<vmem>>, vector<1x32x128xf32>
    tpu.vector_store %arg10[%c0_53, %c0_54, %c0_55], %163 {strides = array<i32>} : memref<1x32x128xf32, #tpu.memory_space<vmem>>, vector<1x32x128xf32>,
    return
  }
  func.func @transform_0(%arg0: i32, %arg1: i32) -> (i32, i32, i32) {
    %c0_i32 = arith.constant 0 : i32
    %c0_i32_0 = arith.constant 0 : i32
    return %arg0, %arg1, %c0_i32 : i32, i32, i32
  }
  func.func @transform_1(%arg0: i32, %arg1: i32) -> (i32, i32, i32) {
    %c0_i32 = arith.constant 0 : i32
    %c0_i32_0 = arith.constant 0 : i32
    %c0_i32_1 = arith.constant 0 : i32
    return %arg0, %c0_i32, %c0_i32_0 : i32, i32, i32
  }
  func.func @transform_2(%arg0: i32, %arg1: i32) -> (i32, i32, i32) {
    %c0_i32 = arith.constant 0 : i32
    %c0_i32_0 = arith.constant 0 : i32
    %c0_i32_1 = arith.constant 0 : i32
    return %arg0, %c0_i32, %c0_i32_0 : i32, i32, i32
  }
  func.func @transform_3(%arg0: i32, %arg1: i32) -> (i32, i32) {
    %c0_i32 = arith.constant 0 : i32
    %c0_i32_0 = arith.constant 0 : i32
    %c0_i32_1 = arith.constant 0 : i32
    return %c0_i32, %c0_i32_0 : i32, i32
  }
  func.func @transform_4(%arg0: i32, %arg1: i32) -> (i32, i32) {
    %c0_i32 = arith.constant 0 : i32
    %c0_i32_0 = arith.constant 0 : i32
    %c0_i32_1 = arith.constant 0 : i32
    return %c0_i32, %c0_i32_0 : i32, i32
  }
  func.func @transform_5(%arg0: i32, %arg1: i32) -> (i32, i32) {
    %c0_i32 = arith.constant 0 : i32
    %c0_i32_0 = arith.constant 0 : i32
    %c0_i32_1 = arith.constant 0 : i32
    return %c0_i32, %c0_i32_0 : i32, i32
  }
  func.func @transform_6(%arg0: i32, %arg1: i32) -> (i32, i32) {
    %c0_i32 = arith.constant 0 : i32
    %c0_i32_0 = arith.constant 0 : i32
    %c0_i32_1 = arith.constant 0 : i32
    return %c0_i32, %c0_i32_0 : i32, i32
  }
  func.func @transform_7(%arg0: i32, %arg1: i32) -> (i32, i32) {
    %c0_i32 = arith.constant 0 : i32
    %c0_i32_0 = arith.constant 0 : i32
    %c0_i32_1 = arith.constant 0 : i32
    return %c0_i32, %c0_i32_0 : i32, i32
  }
  func.func @transform_8(%arg0: i32, %arg1: i32) -> (i32, i32, i32) {
    %c0_i32 = arith.constant 0 : i32
    %c0_i32_0 = arith.constant 0 : i32
    return %arg0, %arg1, %c0_i32 : i32, i32, i32
  }
}

</mosaic_0001>

<bundles_post_ra>
// kernel: tpu_custom_call.1
= control target key start
LH: loop header
LB: loop body
LE: loop exit
PB: predicated region body
PF: predicated region fallthrough
CT: control target
= control target key end

     0   :  { %s4110_s0 = inlined_call_operand.hbm [shape: f32[4,32,128], index: 0, kind: input, shape index: {}]   ;;  %s4111_s1 = inlined_call_operand.hbm [shape: f32[4,32,128], index: 1, kind: input, shape index: {}]   ;;  %s4112_s2 = inlined_call_operand.hbm [shape: f32[4,32,128], index: 2, kind: input, shape index: {}]   ;;  %s4113_s3 = inlined_call_operand.hbm [shape: f32[128,128], index: 3, kind: input, shape index: {}]   ;;  %s4114_s4 = inlined_call_operand.hbm [shape: f32[128,128], index: 4, kind: input, shape index: {}]   ;;  %s4115_s5 = inlined_call_operand.hbm [shape: f32[128,128], index: 5, kind: input, shape index: {}]   ;;  %s4116_s6 = inlined_call_operand.hbm [shape: f32[128,128], index: 6, kind: input, shape index: {}]   ;;  %s4117_s7 = inlined_call_operand.vmem [shape: f32[1,128], index: 7, kind: input, shape index: {}]   ;;  %s4118_s8 = inlined_call_operand.hbm [shape: f32[4,32,128], index: 8, kind: output, shape index: {}]  }
   0x1   :  { %4130 = sst [smem:[#allocation26_spill]] %s4110_s0 }
   0x2   :  { %4131 = sst [smem:[#allocation27_spill]] %s4111_s1 }
   0x3   :  { %4132 = sst [smem:[#allocation28_spill]] %s4113_s3 }
   0x4   :  { %4133 = sst [smem:[#allocation29_spill]] %s4114_s4 }
   0x5   :  { %4134 = sst [smem:[#allocation30_spill]] %s4115_s5 }
   0x6   :  { %13 = vsyncpa [#allocation3], 0 }
   0x7   :  { %15 = vsyncpa [#allocation3 + $0x1], 0 }
   0x8   :  { %16 = vsyncpa [#allocation6], 0 }
   0x9   :  { %18 = vsyncpa [#allocation6 + $0x1], 0 }
   0xa   :  { %19 = vsyncpa [#allocation9], 0 }
   0xb   :  { %20 = vsyncpa [#allocation12], 0 }
   0xc   :  { %21 = vsyncpa [#allocation4], 0 }
   0xd   :  { %23 = vsyncpa [#allocation4 + $0x1], 0  ;;  %s3149_s27 = smov 0   ;;  %s3151_s28 = smov 0  }
   0xe   :  { %s3153_s29 = smov 0   ;;  %s3155_s30 = smov 0  }
   0xf   :  { %s3157_s9 = smov 0   ;;  %s3159_s10 = smov 0  }
  0x10 LB: > { %4135 = sst [smem:[#allocation20_spill]] %s3067_s27  ;;  %s3180_s11 = sadd.s32 4294967295, %s3087_s10   ;;  %s3087_s10 = sphi %s3159_s10, %s29_s10   ;;  %s3083_s9 = sphi %s3157_s9, %s4160_s9   ;;  %s3079_s30 = sphi %s3155_s30, %s4159_s30   ;;  %s3075_s29 = sphi %s3153_s29, %s4163_s29   ;;  %s3071_s28 = sphi %s3151_s28, %s4162_s28   ;;  %s3067_s27 = sphi %s3149_s27, %s4161_s27  }
  0x11   : > { %4136 = sst [smem:[#allocation21_spill]] %s3083_s9  ;;  %s2275_s12 = sadd.s32 4294967294, %s3087_s10  }
  0x12   : > { %4137 = sst [smem:[#allocation22_spill]] %s3087_s10  ;;  %p63_p0 = scmp.ne.s32.totalorder %s3071_s28, %s3067_s27 }
  0x13   : > { %p64_p1 = scmp.eq.s32.totalorder %s3180_s11, 0  ;;  %p246_p2 = scmp.eq.s32.totalorder %s3180_s11, 3 }
  0x14   : > { %p252_p3 = scmp.eq.s32.totalorder %s2275_s12, 3  ;;  %p2276_p5 = scmp.ge.s32.totalorder %s3087_s10, 1 }
  0x15   : > { %p3189_p4 = por %p64_p1, %p63_p0  ;;  %p259_p7 = scmp.lt.s32.totalorder %s3087_s10, 5 }
  0x16   : > { %p3194_p6 = por %p252_p3, %p63_p0  ;;  %s4141_s3 = sld [smem:[#allocation28_spill]] }
  0x17   : > { %p3202_p8 = pnand %p2276_p5, %p259_p7  ;;  %s3089_s19 = smov [#allocation8]  }
  0x18   : > { %s4139_s14 = scalar_select %p3194_p6, 1, 0 }
  0x19   : > { %p2429_p9 = pneg %p3202_p8  ;;  %s272_s20 = sshll.u32 %s3089_s19, 4  ;;  %s273_s20 = int_to_ptr.vmem [resolvable:$true] %s272_s20 }
  0x1a   : > { %4140 = sst [smem:[#allocation23_spill]] %s4139_s14  ;;  %s4119_s25 = smov 128  }
  0x1b   : > { %p3210_p10 = pnand %p2429_p9, %p64_p1  ;;  %s4144_s5 = sld [smem:[#allocation30_spill]] }
  0x1c   : > { %s270_s17 = sshll.u32 %s4141_s3, 4  ;;  %s4121_s26 = smov 8   ;;  %s271_s17 = int_to_ptr.hbm [resolvable:$true] %s270_s17 }
  0x1d   : > { %2432 = dma.hbm_to_vmem [thread:$0]  (!%p3210_p10), %s271_s17, 2048, %s273_s20, [#allocation9], %s4119_s25, %s4119_s25, %s4121_s26  }
  0x1e   : > { %s3092_s12 = smov [#allocation11]   ;;  %s41_s16 = sadd.s32 1, %s3083_s9 }
  0x1f   : > { %s300_s15 = sshll.u32 %s3092_s12, 4  ;;  %s50_s19 = sadd.s32 1, %s3075_s29  ;;  %s301_s15 = int_to_ptr.vmem [resolvable:$true] %s300_s15 }
  0x20   : > { %p43_p11 = scmp.ge.s32.totalorder %s41_s16, 4  ;;  %p57_p12 = scmp.ne.s32.totalorder %s3075_s29, %s3071_s28 }
  0x21   : > { %s298_s24 = sshll.u32 %s4144_s5, 4  ;;  %p58_p13 = scmp.eq.s32.totalorder %s3087_s10, 0  ;;  %s299_s24 = int_to_ptr.hbm [resolvable:$true] %s298_s24 }
  0x22   : > { %2438 = dma.hbm_to_vmem [thread:$0]  (!%p3210_p10), %s299_s24, 2048, %s301_s15, [#allocation12], %s4119_s25, %s4119_s25, %s4121_s26  }
  0x23   : > { %p2460_p0 = scmp.lt.s32.totalorder %s3087_s10, 4  ;;  %s4165_s16 = smov (%p43_p11, %s41_s16), 0 }
  0x24   : > { %4145 = sst [smem:[#allocation24_spill]] %s4165_s16  ;;  %p59_p3 = por %p58_p13, %p57_p12 }
  0x25   : > { %p3237_p5 = por %p246_p2, %p57_p12  ;;  %s45_s20 = ssub.s32 %s3083_s9, %s4165_s16 }
  0x26   : > { %s4123_s22 = sand.u32 1, %s3075_s29   ;;  %p48_p7 = scmp.eq.s32.totalorder %s45_s20, 0 }
  0x27   : > { %s3246_s23 = sshll.u32 %s4123_s22, 5  ;;  %s3249_s24 = sshll.u32 %s3083_s9, 5 }
  0x28   : > { %p3251_p9 = pnand %p2460_p0, %p59_p3  ;;  %s355_s25 = sand.u32 1, %s3087_s10  }
  0x29   : > { %s3256_s15 = scalar_select %p48_p7, %s3075_s29, %s50_s19  }
  0x2a   : > { %s4149_s1 = sld [smem:[#allocation27_spill]]  ;;  %s359_s5 = scalar_lea.vmem [#allocation5], %s3246_s23 }
  0x2b   : > { %4148 = sst [smem:[#allocation25_spill]] %s3256_s15  ;;  %s367_s22 = sshll.u32 %s359_s5, 4  ;;  %s368_s22 = int_to_ptr.vmem [resolvable:$true] %s367_s22 }
  0x2c   : > { %s4150_s4 = sld [smem:[#allocation29_spill]]  ;;  %s3267_s19 = scalar_lea.sflag [#allocation6], %s355_s25 }
  0x2d   : > { %s4151_s15 = smov 8   ;;  %s4152_s10 = smov 128  }
  0x2e   : > { %s3093_s3 = smov [#allocation10]   ;;  %s3094_s9 = smov [#allocation13]  }
  0x2f   : > { %s286_s5 = sshll.u32 %s3093_s3, 4  ;;  %s314_s14 = sshll.u32 %s3094_s9, 4  ;;  %s287_s5 = int_to_ptr.vmem [resolvable:$true] %s286_s5  ;;  %s315_s14 = int_to_ptr.vmem [resolvable:$true] %s314_s14 }
  0x30   : > { %s364_s20 = scalar_lea.hbm %s4149_s1, %s3249_s24  ;;  %s312_s1 = sshll.u32 %s4116_s6, 4  ;;  %s313_s1 = int_to_ptr.hbm [resolvable:$true] %s312_s1 }
  0x31   : > { %s365_s16 = sshll.u32 %s364_s20, 4  ;;  %s4153_s0 = sld [smem:[#allocation26_spill]]  ;;  %s366_s16 = int_to_ptr.hbm [resolvable:$true] %s365_s16 }
  0x32   : > { %s284_s27 = sshll.u32 %s4150_s4, 4  ;;  %s335_s26 = scalar_lea.vmem [#allocation2], %s3246_s23  ;;  %s285_s27 = int_to_ptr.hbm [resolvable:$true] %s284_s27 }
  0x33   : > { %2448 = dma.hbm_to_vmem [thread:$0]  (!%p3251_p9), %s366_s16, 512, %s368_s22, %s3267_s19, %s4152_s10, %s4152_s10, %s4151_s15  }
  0x34   : > { %2435 = dma.hbm_to_vmem [thread:$0]  (!%p3210_p10), %s285_s27, 2048, %s287_s5, [#allocation9], %s4152_s10, %s4152_s10, %s4151_s15  }
  0x35   : > { %2441 = dma.hbm_to_vmem [thread:$0]  (!%p3210_p10), %s313_s1, 2048, %s315_s14, [#allocation12], %s4152_s10, %s4152_s10, %s4151_s15  }
  0x36   : > { %s345_s20 = sshll.u32 %s335_s26, 4  ;;  %s4154_s27 = sand.u32 1, %s3075_s29   ;;  %s346_s20 = int_to_ptr.vmem [resolvable:$true] %s345_s20 }
  0x37   : > { %s342_s22 = scalar_lea.hbm %s4153_s0, %s3249_s24  ;;  %s332_s5 = scalar_lea.sflag [#allocation3], %s4154_s27 }
  0x38   : > { %s343_s3 = sshll.u32 %s342_s22, 4  ;;  %s386_s21 = scalar_lea.hbm %s4112_s2, %s3249_s24  ;;  %s344_s3 = int_to_ptr.hbm [resolvable:$true] %s343_s3 }
  0x39   : > { %2445 = dma.hbm_to_vmem [thread:$0]  (!%p3251_p9), %s344_s3, 512, %s346_s20, %s332_s5, %s4152_s10, %s4152_s10, %s4151_s15  }
  0x3a   : > { %s387_s16 = sshll.u32 %s386_s21, 4  ;;  %s381_s0 = scalar_lea.vmem [#allocation7], %s3246_s23  ;;  %s388_s16 = int_to_ptr.hbm [resolvable:$true] %s387_s16 }
  0x3b   : > { %s389_s4 = sshll.u32 %s381_s0, 4  ;;  %401 = sbr.rel (%p3202_p8) target bundleno = 1428 (0x594), region = 52  ;;  %s390_s4 = int_to_ptr.vmem [resolvable:$true] %s389_s4 }
  0x3c   : > { %2451 = dma.hbm_to_vmem [thread:$0]  (!%p3251_p9), %s388_s16, 512, %s390_s4, %s3267_s19, %s4152_s10, %s4152_s10, %s4151_s15  }
  0x3d   : > { %s3314_s1 = sand.u32 (!%p3202_p8), 1, %s3071_s28  }
  0x3e   : > { %s3317_s24 = sshll.u32 (!%p3202_p8), %s3314_s1, 5  ;;  %s404_s0 = scalar_lea.sflag (!%p3202_p8), [#allocation3], %s3314_s1 }
  0x3f   : > { %s3321_s23 = scalar_lea.vmem (!%p3202_p8), [#allocation2], %s3317_s24 }
  0x40   : > { %3046 = dma.done.wait (%p3189_p4), %s404_s0, 512  }
  0x41   : > { %3048 = vsyncadd (%p3189_p4), %s404_s0, 4294966784  ;;  %s413_s4 = sand.u32 1, %s3180_s11   ;;  %s3329_s18 = scalar_lea.vmem [#allocation5], %s3317_s24 }
  0x42   : > { %s414_s10 = scalar_lea.sflag [#allocation6], %s413_s4 }
  0x43   : > { %3050 = dma.done.wait (%p3189_p4), %s414_s10, 1024  }
  0x44   : > { %3052 = vsyncadd (%p3189_p4), %s414_s10, 4294966272  ;;  %s3336_s12 = scalar_lea.vmem [#allocation7], %s3317_s24 }
  0x45   : > { %3054 = dma.done.wait (%p64_p1), [#allocation9], 4096  }
  0x46   : > { %3056 = vsyncadd (%p64_p1), [#allocation9], 4294963200 }
  0x47   : > { %3058 = dma.done.wait (%p64_p1), [#allocation12], 4096  }
  0x48   : > { %3060 = vsyncadd (%p64_p1), [#allocation12], 4294963200  ;;  %v512_v0 = vld [vmem:[#allocation8 + $0x78] sm:$0xff]  ;;  %v511_v2 = vld [vmem:[#allocation8 + $0x70] sm:$0xff]  ;;  %s3095_s11 = smov 112   ;;  %s3096_s13 = smov 96  }
  0x49   : > { %v561_v1 = vld [vmem:[#allocation10 + $0x78] sm:$0xff]  ;;  %513 = vmatpush.msra.mxu0 %v512_v0  ;;  %v560_v3 = vld [vmem:[#allocation10 + $0x70] sm:$0xff]  ;;  %v510_v4 = vld [vmem:[#allocation8 + $0x68] sm:$0xff]  ;;  %s3097_s15 = smov 80   ;;  %s3098_s19 = smov 64   ;;  %vm640_vm0 = vcmask 130048  }
  0x4a   : > { %562 = vmatpush.msra.mxu1 %v561_v1  ;;  %v559_v5 = vld [vmem:[#allocation10 + $0x68] sm:$0xff]  ;;  %v509_v6 = vld [vmem:[#allocation8 + $0x60] sm:$0xff]  ;;  %v508_v8 = vld [vmem:[#allocation8 + $0x58] sm:$0xff]  ;;  %s3099_s14 = smov 48   ;;  %s3100_s22 = smov 32   ;;  %vm694_vm1 = vcmask 261120  }
  0x4b   : > { %514 = vmatpush.msra.mxu0 %v511_v2  ;;  %v558_v7 = vld [vmem:[#allocation10 + $0x60] sm:$0xff]  ;;  %v557_v9 = vld [vmem:[#allocation10 + $0x58] sm:$0xff]  ;;  %v507_v10 = vld [vmem:[#allocation8 + $0x50] sm:$0xff]  ;;  %s3101_s3 = smov 16   ;;  %vm2010_vm2 = vcmask 392192   ;;  %vm2015_vm3 = vcmask 523264  }
  0x4c   : > { %563 = vmatpush.msra.mxu1 %v560_v3  ;;  %v556_v11 = vld [vmem:[#allocation10 + $0x50] sm:$0xff]  ;;  %v506_v12 = vld [vmem:[#allocation8 + $0x48] sm:$0xff]  ;;  %v505_v14 = vld [vmem:[#allocation8 + $0x40] sm:$0xff]  ;;  %vm2020_vm4 = vcmask 654336   ;;  %vm2025_vm5 = vcmask 785408   ;;  %vm2030_vm6 = vcmask 916480  }
  0x4d   : > { %515 = vmatpush.msra.mxu0 %v510_v4  ;;  %v555_v13 = vld [vmem:[#allocation10 + $0x48] sm:$0xff]  ;;  %v554_v15 = vld [vmem:[#allocation10 + $0x40] sm:$0xff]  ;;  %v504_v16 = vld [vmem:[#allocation8 + $0x38] sm:$0xff]  ;;  %s490_s27 = scalar_lea.vmem [#allocation14], %s3317_s24  ;;  %s2404_s5 = sshll.u32 %s3079_s30, 5 }
  0x4e   : > { %564 = vmatpush.msra.mxu1 %v559_v5  ;;  %v553_v17 = vld [vmem:[#allocation10 + $0x38] sm:$0xff]  ;;  %v503_v18 = vld [vmem:[#allocation8 + $0x30] sm:$0xff]  ;;  %v502_v20 = vld [vmem:[#allocation8 + $0x28] sm:$0xff]  ;;  %s2102_s21 = scalar_lea.hbm %s4118_s8, %s2404_s5  ;;  %s2103_s16 = sshll.u32 %s490_s27, 4  ;;  %s2104_s16 = int_to_ptr.vmem [resolvable:$true] %s2103_s16 }
  0x4f   : > { %516 = vmatpush.msra.mxu0 %v509_v6  ;;  %v552_v19 = vld [vmem:[#allocation10 + $0x30] sm:$0xff]  ;;  %v551_v21 = vld [vmem:[#allocation10 + $0x28] sm:$0xff]  ;;  %v501_v22 = vld [vmem:[#allocation8 + $0x20] sm:$0xff]  ;;  %s2105_s0 = sshll.u32 %s2102_s21, 4  ;;  %s2089_s24 = scalar_lea.sflag [#allocation4], %s3314_s1  ;;  %s2106_s0 = int_to_ptr.hbm [resolvable:$true] %s2105_s0 }
  0x50   : > { %565 = vmatpush.msra.mxu1 %v558_v7  ;;  %v550_v23 = vld [vmem:[#allocation10 + $0x20] sm:$0xff]  ;;  %v500_v24 = vld [vmem:[#allocation8 + $0x18] sm:$0xff]  ;;  %v499_v26 = vld [vmem:[#allocation8 + $0x10] sm:$0xff] }
  0x51   : > { %517 = vmatpush.msra.mxu0 %v508_v8  ;;  %v549_v25 = vld [vmem:[#allocation10 + $0x18] sm:$0xff]  ;;  %v548_v27 = vld [vmem:[#allocation10 + $0x10] sm:$0xff]  ;;  %v498_v30 = vld [vmem:[#allocation8 + $0x8] sm:$0xff] }
  0x52   : > { %566 = vmatpush.msra.mxu1 %v557_v9  ;;  %v610_v28 = vld [vmem:[#allocation11 + $0x78] sm:$0xff]  ;;  %v609_v29 = vld [vmem:[#allocation11 + $0x70] sm:$0xff]  ;;  %v547_v31 = vld [vmem:[#allocation10 + $0x8] sm:$0xff] }
  0x53   : > { %518 = vmatpush.msra.mxu0 %v507_v10  ;;  %611 = vmatpush.msra.mxu2 %v610_v28  ;;  %v608_v32 = vld [vmem:[#allocation11 + $0x68] sm:$0xff]  ;;  %v497_v33 = vld [vmem:[#allocation8] sm:$0xff]  ;;  %v606_v38 = vld [vmem:[#allocation11 + $0x58] sm:$0xff] }
  0x54   : > { %567 = vmatpush.msra.mxu1 %v556_v11  ;;  %v546_v34 = vld [vmem:[#allocation10] sm:$0xff]  ;;  %v605_v39 = vld [vmem:[#allocation11 + $0x50] sm:$0xff]  ;;  %v604_v40 = vld [vmem:[#allocation11 + $0x48] sm:$0xff] }
  0x55   : > { %519 = vmatpush.msra.mxu0 %v506_v12  ;;  %612 = vmatpush.msra.mxu2 %v609_v29  ;;  %v493_v35 = vld [vmem:[%s3321_s23] sm:$0xff]  ;;  %v543_v41 = vld [vmem:[%s3329_s18 + $0x8] sm:$0xff]  ;;  %v602_v44 = vld [vmem:[#allocation11 + $0x38] sm:$0xff] }
  0x56   : > { %568 = vmatpush.msra.mxu1 %v555_v13  ;;  %v542_v36 = vld [vmem:[%s3329_s18] sm:$0xff]  ;;  %v494_v42 = vld [vmem:[%s3321_s23 + $0x8] sm:$0xff]  ;;  %v601_v45 = vld [vmem:[#allocation11 + $0x30] sm:$0xff] }
  0x57   : > { %520 = vmatpush.msra.mxu0 %v505_v14  ;;  %613 = vmatpush.msra.mxu2 %v608_v32  ;;  %v607_v37 = vld [vmem:[#allocation11 + $0x60] sm:$0xff]  ;;  %v600_v46 = vld [vmem:[#allocation11 + $0x28] sm:$0xff]  ;;  %v544_v47 = vld [vmem:[%s3329_s18 + $0x10] sm:$0xff] }
  0x58   : > { %569 = vmatpush.msra.mxu1 %v554_v15  ;;  %v603_v43 = vld [vmem:[#allocation11 + $0x40] sm:$0xff]  ;;  %v495_v48 = vld [vmem:[%s3321_s23 + $0x10] sm:$0xff]  ;;  %v598_v50 = vld [vmem:[#allocation11 + $0x18] sm:$0xff] }
  0x59   : > { %521 = vmatpush.msra.mxu0 %v504_v16  ;;  %614 = vmatpush.msra.mxu2 %v607_v37  ;;  %v599_v49 = vld [vmem:[#allocation11 + $0x20] sm:$0xff]  ;;  %v597_v51 = vld [vmem:[#allocation11 + $0x10] sm:$0xff]  ;;  %v596_v52 = vld [vmem:[#allocation11 + $0x8] sm:$0xff] }
  0x5a   : > { %570 = vmatpush.msra.mxu1 %v553_v17  ;;  %v545_v53 = vld [vmem:[%s3329_s18 + $0x18] sm:$0xff]  ;;  %v595_v55 = vld [vmem:[#allocation11] sm:$0xff]  ;;  %v592_v57 = vld [vmem:[%s3336_s12 + $0x8] sm:$0xff]  ;;  %s3013_s18 = scalar_lea.hbm %s4118_s8, 128 }
  0x5b   : > { %522 = vmatpush.msra.mxu0 %v503_v18  ;;  %615 = vmatpush.msra.mxu2 %v606_v38  ;;  %v496_v54 = vld [vmem:[%s3321_s23 + $0x18] sm:$0xff]  ;;  %v591_v56 = vld [vmem:[%s3336_s12] sm:$0xff]  ;;  %v593_v58 = vld [vmem:[%s3336_s12 + $0x10] sm:$0xff]  ;;  %s3007_s23 = sshra.s32 %s2106_s0, 4  ;;  %s3008_s23 = int_to_ptr.hbm [resolvable:$true] %s3007_s23 }
  0x5c   : > { %571 = vmatpush.msra.mxu1 %v552_v19  ;;  %v594_v59 = vld [vmem:[%s3336_s12 + $0x18] sm:$0xff]  ;;  %s3009_s4 = scalar_lea.hbm %s3008_s23, 32  ;;  %p3014_p8 = scmp.lt.s32.totalorder %s3008_s23, %s4118_s8 }
  0x5d   : > { %523 = vmatpush.msra.mxu0 %v502_v20  ;;  %616 = vmatpush.msra.mxu2 %v605_v39  ;;  %p3010_p1 = scmp.ne.s32.totalorder %s3008_s23, %s3009_s4  ;;  %p3015_p10 = scmp.lt.s32.totalorder %s3013_s18, %s3009_s4 }
  0x5e   : > { %572 = vmatpush.msra.mxu1 %v551_v21 }
  0x5f   : > { %524 = vmatpush.msra.mxu0 %v501_v22  ;;  %617 = vmatpush.msra.mxu2 %v604_v40  ;;  %p3011_p2 = pnand %p3010_p1, %p3237_p5  ;;  %p3016_p11 = por %p3015_p10, %p3014_p8 }
  0x60   : > { %573 = vmatpush.msra.mxu1 %v550_v23 }
  0x61   : > { %525 = vmatpush.msra.mxu0 %v500_v24  ;;  %618 = vmatpush.msra.mxu2 %v603_v43  ;;  %p3012_p4 = pneg %p3011_p2 }
  0x62   : > { %574 = vmatpush.msra.mxu1 %v549_v25 }
  0x63   : > { %526 = vmatpush.msra.mxu0 %v499_v26  ;;  %619 = vmatpush.msra.mxu2 %v602_v44  ;;  %p3017_p12 = pnand %p3016_p11, %p3012_p4 }
  0x64   : > { %575 = vmatpush.msra.mxu1 %v548_v27 }
  0x65   : > { %527 = vmatpush.msra.mxu0 %v498_v30  ;;  %620 = vmatpush.msra.mxu2 %v601_v45 }
  0x66   : > { %576 = vmatpush.msra.mxu1 %v547_v31 }
  0x67   : > { %528 = vmatpush.msra.mxu0 %v497_v33  ;;  %621 = vmatpush.msra.mxu2 %v600_v46 }
  0x68   : > { %577 = vmatpush.msra.mxu1 %v546_v34  ;;  %529 = vmatmul.f32.vlgmr.msra.gmra.mxu0 %v493_v35 }
  0x69   : > { %578 = vmatmul.f32.vlgmr.msra.gmra.mxu1 %v542_v36  ;;  %622 = vmatpush.msra.mxu2 %v599_v49 }
  0x6b   : > { %623 = vmatpush.msra.mxu2 %v598_v50 }
  0x6d   : > { %624 = vmatpush.msra.mxu2 %v597_v51 }
  0x6f   : > { %625 = vmatpush.msra.mxu2 %v596_v52 }
  0x70   : > { %532 = vmatmul.f32.gmra.mxu0 %v494_v42 }
  0x71   : > { %581 = vmatmul.f32.gmra.mxu1 %v543_v41  ;;  %626 = vmatpush.msra.mxu2 %v595_v55 }
  0x72   : > { %627 = vmatmul.f32.vlgmr.msra.gmra.mxu2 %v591_v56 }
  0x78   : > { %535 = vmatmul.f32.gmra.mxu0 %v495_v48 }
  0x79   : > { %584 = vmatmul.f32.gmra.mxu1 %v544_v47 }
  0x7a   : > { %630 = vmatmul.f32.gmra.mxu2 %v592_v57 }
  0x80   : > { %538 = vmatmul.f32.gmra.mxu0 %v496_v54 }
  0x81   : > { %587 = vmatmul.f32.gmra.mxu1 %v545_v53 }
  0x82   : > { %633 = vmatmul.f32.gmra.mxu2 %v593_v58 }
  0x8a   : > { %636 = vmatmul.f32.gmra.mxu2 %v594_v59 }
  0xe5   : > { %v530_v60 = vpop.f32.mrf.mxu0 }
  0xe6   : > { %v579_v61 = vpop.f32.mrf.mxu1  ;;  %942 = vrot.lane.b32.xlu0 %v530_v60, %s3096_s13  ;;  %780 = vrot.lane.b32.xlu2 %v530_v60, %s3095_s11 }
  0xe7   : > { %788 = vrot.lane.b32.xlu1 %v579_v61, %s3095_s11 }
  0xed   : > { %v533_v1 = vpop.f32.mrf.mxu0 }
  0xee   : > { %v582_v62 = vpop.f32.mrf.mxu1  ;;  %1100 = vrot.lane.b32.xlu0 %v530_v60, %s3097_s15  ;;  %1108 = vrot.lane.b32.xlu2 %v579_v61, %s3097_s15 }
  0xef   : > { %950 = vrot.lane.b32.xlu1 %v579_v61, %s3096_s13 }
  0xf5   : > { %v628_v2 = vpop.f32.mrf.mxu2  ;;  %v536_v4 = vpop.f32.mrf.mxu0 }
  0xf6   : > { %v585_v63 = vpop.f32.mrf.mxu1  ;;  %1424 = vrot.lane.b32.xlu0 %v579_v61, %s3099_s14  ;;  %1266 = vrot.lane.b32.xlu2 %v579_v61, %s3098_s19 }
  0xf7   : > { %1258 = vrot.lane.b32.xlu1 %v530_v60, %s3098_s19 }
  0xfd   : > { %v631_v3 = vpop.f32.mrf.mxu2  ;;  %v539_v7 = vpop.f32.mrf.mxu0 }
  0xfe   : > { %v3367_v0 = vpop.f32.mrf.mxu1  ;;  %1582 = vrot.lane.b32.xlu0 %v579_v61, %s3100_s22  ;;  %1574 = vrot.lane.b32.xlu2 %v530_v60, %s3100_s22  ;;  %v3399_v8 = vpack.i.bf16 %v628_v2, %v631_v3 }
  0xff   : > { %2300 = vmatpush.xpose.msk.msra.mxu3 %vm640_vm0, %v3367_v0  ;;  %1416 = vrot.lane.b32.xlu1 %v530_v60, %s3099_s14 }
 0x103   : > { %2301 = vmatpush.xpose.msk.msra.mxu3 %vm640_vm0, %v585_v63 }
 0x105   : > { %v634_v5 = vpop.f32.mrf.mxu2 }
 0x106   : > { %1732 = vrot.lane.b32.xlu2 %v530_v60, %s3101_s3  ;;  %782 = vrot.lane.b32.xlu0 %v533_v1, %s3095_s11 }
 0x107   : > { %2302 = vmatpush.xpose.msk.msra.mxu3 %vm640_vm0, %v582_v62  ;;  %1740 = vrot.lane.b32.xlu1 %v579_v61, %s3101_s3 }
 0x10b   : > { %2303 = vmatpush.xpose.msk.msra.mxu3 %vm640_vm0, %v579_v61 }
 0x10d   : > { %v637_v6 = vpop.f32.mrf.mxu2 }
 0x10e   : > { %2304 = vmatmul.msk.f32.vlgmr.msra.gmra.mxu3 %vm640_vm0, %v530_v60  ;;  %952 = vrot.lane.b32.xlu2 %v582_v62, %s3096_s13  ;;  %v3470_v27 = vpack.i.bf16 %v634_v5, %v637_v6 }
 0x10f   : > { %790 = vrot.lane.b32.xlu1 %v582_v62, %s3095_s11  ;;  %1110 = vrot.lane.b32.xlu0 %v582_v62, %s3097_s15 }
 0x110   : > { %763 = vmatpush.msrb.mxu3 %v637_v6 }
 0x112   : > { %764 = vmatpush.msrb.mxu3 %v634_v5 }
 0x114   : > { %765 = vmatpush.msrb.mxu3 %v631_v3 }
 0x116   : > { %2305 = vmatmul.msk.f32.gmra.mxu3 %vm640_vm0, %v533_v1  ;;  %1260 = vrot.lane.b32.xlu2 %v533_v1, %s3098_s19 }
 0x117   : > { %944 = vrot.lane.b32.xlu1 %v533_v1, %s3096_s13  ;;  %1102 = vrot.lane.b32.xlu0 %v533_v1, %s3097_s15 }
 0x118   : > { %766 = vmatpush.msrb.mxu3 %v628_v2 }
 0x11e   : > { %2306 = vmatmul.msk.f32.gmra.mxu3 %vm640_vm0, %v536_v4  ;;  %1742 = vrot.lane.b32.xlu2 %v582_v62, %s3101_s3 }
 0x11f   : > { %1426 = vrot.lane.b32.xlu1 %v582_v62, %s3099_s14  ;;  %1268 = vrot.lane.b32.xlu0 %v582_v62, %s3098_s19 }
 0x126   : > { %1428 = vrot.lane.b32.xlu2 %v585_v63, %s3099_s14  ;;  %2307 = vmatmul.msk.f32.gmra.mxu3 %vm640_vm0, %v539_v7 }
 0x127   : > { %1418 = vrot.lane.b32.xlu1 %v533_v1, %s3099_s14  ;;  %1576 = vrot.lane.b32.xlu0 %v533_v1, %s3100_s22 }
 0x12e   : > { %1262 = vrot.lane.b32.xlu2 %v536_v4, %s3098_s19 }
 0x12f   : > { %1584 = vrot.lane.b32.xlu1 %v582_v62, %s3100_s22  ;;  %792 = vrot.lane.b32.xlu0 %v585_v63, %s3095_s11 }
 0x136   : > { %1586 = vrot.lane.b32.xlu2 %v585_v63, %s3100_s22 }
 0x137   : > { %954 = vrot.lane.b32.xlu1 %v585_v63, %s3096_s13  ;;  %784 = vrot.lane.b32.xlu0 %v536_v4, %s3095_s11 }
 0x13e   : > { %1420 = vrot.lane.b32.xlu2 %v536_v4, %s3099_s14 }
 0x13f   : > { %1112 = vrot.lane.b32.xlu1 %v585_v63, %s3097_s15  ;;  %1744 = vrot.lane.b32.xlu0 %v585_v63, %s3101_s3 }
 0x140   : > { %v3407_v9 = vpop.permute.xlu2 %780 }
 0x146   : > { %2530 = vrot.lane.b32.xlu2 %v3399_v8, %s3095_s11 }
 0x147   : > { %946 = vrot.lane.b32.xlu1 %v536_v4, %s3096_s13  ;;  %794 = vrot.lane.b32.xlu0 %v3367_v0, %s3095_s11 }
 0x148   : > { %v3414_v10 = vpop.permute.xlu2 %1108 }
 0x14e   : > { %956 = vrot.lane.b32.xlu2 %v3367_v0, %s3096_s13 }
 0x14f   : > { %1270 = vrot.lane.b32.xlu1 %v585_v63, %s3098_s19  ;;  %1578 = vrot.lane.b32.xlu0 %v536_v4, %s3100_s22 }
 0x150   : > { %v3420_v11 = vpop.permute.xlu2 %1266 }
 0x156   : > { %1114 = vrot.lane.b32.xlu2 %v3367_v0, %s3097_s15 }
 0x157   : > { %1104 = vrot.lane.b32.xlu1 %v536_v4, %s3097_s15  ;;  %1736 = vrot.lane.b32.xlu0 %v536_v4, %s3101_s3 }
 0x158   : > { %v3428_v13 = vpop.permute.xlu0 %942  ;;  %v3430_v14 = vpop.permute.xlu2 %1574 }
 0x159   : > { %v3426_v12 = vpop.permute.xlu1 %788 }
 0x15e   : > { %786 = vrot.lane.b32.xlu2 %v539_v7, %s3095_s11 }
 0x15f   : > { %1734 = vrot.lane.b32.xlu1 %v533_v1, %s3101_s3  ;;  %2540 = vrot.lane.b32.xlu0 %v3399_v8, %s3097_s15 }
 0x160   : > { %v3436_v16 = vpop.permute.xlu0 %1100  ;;  %v3438_v17 = vpop.permute.xlu2 %1732 }
 0x161   : > { %v951_v15 = vpop.permute.xlu1 %950 }
 0x166   : > { %1272 = vrot.lane.b32.xlu2 %v3367_v0, %s3098_s19 }
 0x167   : > { %2535 = vrot.lane.b32.xlu1 %v3399_v8, %s3096_s13  ;;  %1430 = vrot.lane.b32.xlu0 %v3367_v0, %s3099_s14 }
 0x168   : > { %v3448_v19 = vpop.permute.xlu0 %1424  ;;  %v953_v20 = vpop.permute.xlu2 %952 }
 0x169   : > { %v3446_v18 = vpop.permute.xlu1 %1258 }
 0x16e   : > { %948 = vrot.lane.b32.xlu2 %v539_v7, %s3096_s13 }
 0x16f   : > { %1746 = vrot.lane.b32.xlu1 %v3367_v0, %s3101_s3  ;;  %1106 = vrot.lane.b32.xlu0 %v539_v7, %s3097_s15 }
 0x170   : > { %v3456_v22 = vpop.permute.xlu0 %1582  ;;  %v3458_v23 = vpop.permute.xlu2 %1260 }
 0x171   : > { %v3454_v21 = vpop.permute.xlu1 %1416 }
 0x176   : > { %1580 = vrot.lane.b32.xlu2 %v539_v7, %s3100_s22 }
 0x177   : > { %1422 = vrot.lane.b32.xlu1 %v539_v7, %s3099_s14  ;;  %1588 = vrot.lane.b32.xlu0 %v3367_v0, %s3100_s22 }
 0x178   : > { %v3466_v25 = vpop.permute.xlu2 %1742  ;;  %v3468_v26 = vpop.permute.xlu0 %782 }
 0x179   : > { %v3464_v24 = vpop.permute.xlu1 %1740 }
 0x17e   : > { %2555 = vrot.lane.b32.xlu2 %v3470_v27, %s3097_s15 }
 0x17f   : > { %1738 = vrot.lane.b32.xlu1 %v539_v7, %s3101_s3  ;;  %1264 = vrot.lane.b32.xlu0 %v539_v7, %s3098_s19 }
 0x180   : > { %v3476_v29 = vpop.permute.xlu2 %1428 }
 0x181   : > { %v791_v28 = vpop.permute.xlu1 %790  ;;  %v3478_v30 = vpop.permute.xlu0 %1110 }
 0x186   : > { %2565 = vrot.lane.b32.xlu2 %v3399_v8, %s3098_s19 }
 0x187   : > { %2545 = vrot.lane.b32.xlu1 %v3470_v27, %s3095_s11  ;;  %2550 = vrot.lane.b32.xlu0 %v3470_v27, %s3096_s13 }
 0x188   : > { %v3488_v33 = vpop.permute.xlu2 %1262 }
 0x189   : > { %v945_v31 = vpop.permute.xlu1 %944  ;;  %v3486_v32 = vpop.permute.xlu0 %1102 }
 0x18f   : > { %2560 = vrot.lane.b32.xlu1 %v3470_v27, %s3098_s19 }
 0x190   : > { %v3494_v36 = vpop.permute.xlu2 %1586 }
 0x191   : > { %v3492_v34 = vpop.permute.xlu1 %1426  ;;  %v1269_v35 = vpop.permute.xlu0 %1268 }
 0x192   : > { %v3506_v40 = vpop.f32.mrf.mxu3 }
 0x193   : > { %v695_v48 = vsel %vm694_vm1, %v3506_v40, -inf }
 0x197   : > { %2570 = vrot.lane.b32.xlu1 %v3470_v27, %s3099_s14 }
 0x198   : > { %v3502_v39 = vpop.permute.xlu2 %1420 }
 0x199   : > { %v3498_v37 = vpop.permute.xlu1 %1418  ;;  %v3500_v38 = vpop.permute.xlu0 %1576 }
 0x19a   : > { %v3512_v47 = vpop.f32.mrf.mxu3 }
 0x19b   : > { %v698_v60 = vsel %vm694_vm1, %v3512_v47, -inf }
 0x19f   : > { %2575 = vrot.lane.b32.xlu1 %v3399_v8, %s3099_s14 }
 0x1a0   : > { %v3510_v43 = vpop.permute.xlu2 %2530 }
 0x1a1   : > { %v3508_v41 = vpop.permute.xlu1 %1584  ;;  %v793_v42 = vpop.permute.xlu0 %792 }
 0x1a2   : > { %v3519_v52 = vpop.f32.mrf.mxu3 }
 0x1a3   : > { %v701_v53 = vsel %vm694_vm1, %v3519_v52, -inf }
 0x1a8   : > { %v957_v45 = vpop.permute.xlu2 %956 }
 0x1a9   : > { %v955_v44 = vpop.permute.xlu1 %954  ;;  %v785_v46 = vpop.permute.xlu0 %784  ;;  %2324 = vmatpush.xpose.msk.msrb.mxu2 %vm640_vm0, %v957_v45 }
 0x1aa   : > { %v3545_v63 = vpop.f32.mrf.mxu3 }
 0x1ab   : > { %v704_v0 = vsel %vm694_vm1, %v3545_v63, -inf }
 0x1ad   : > { %2325 = vmatpush.xpose.msk.msrb.mxu2 %vm640_vm0, %v955_v44 }
 0x1af   : > { %696 = vmax.xlane.f32.xlu2 %v695_v48 }
 0x1b0   : > { %v1115_v50 = vpop.permute.xlu2 %1114 }
 0x1b1   : > { %v1113_v49 = vpop.permute.xlu1 %1112  ;;  %v1745_v51 = vpop.permute.xlu0 %1744  ;;  %2326 = vmatpush.xpose.msk.msrb.mxu2 %vm640_vm0, %v953_v20 }
 0x1b5   : > { %2327 = vmatpush.xpose.msk.msrb.mxu2 %vm640_vm0, %v951_v15 }
 0x1b7   : > { %702 = vmax.xlane.f32.xlu2 %v701_v53 }
 0x1b8   : > { %2328 = vmatmul.msk.f32.vlgmr.msrb.gmra.mxu2 %vm640_vm0, %v3428_v13  ;;  %v787_v56 = vpop.permute.xlu2 %786 }
 0x1b9   : > { %v947_v54 = vpop.permute.xlu1 %946  ;;  %v795_v55 = vpop.permute.xlu0 %794 }
 0x1ba   : > { %2312 = vmatpush.xpose.msk.msrb.mxu0 %vm640_vm0, %v795_v55 }
 0x1be   : > { %2313 = vmatpush.xpose.msk.msrb.mxu0 %vm640_vm0, %v793_v42 }
 0x1c0   : > { %2329 = vmatmul.msk.f32.gmra.mxu2 %vm640_vm0, %v945_v31  ;;  %v1273_v59 = vpop.permute.xlu2 %1272 }
 0x1c1   : > { %v1271_v57 = vpop.permute.xlu1 %1270  ;;  %v3529_v58 = vpop.permute.xlu0 %1578  ;;  %2348 = vmatpush.xpose.msk.msra.mxu2 %vm640_vm0, %v1273_v59 }
 0x1c2   : > { %2314 = vmatpush.xpose.msk.msrb.mxu0 %vm640_vm0, %v791_v28 }
 0x1c5   : > { %2349 = vmatpush.xpose.msk.msra.mxu2 %vm640_vm0, %v1271_v57 }
 0x1c6   : > { %2315 = vmatpush.xpose.msk.msrb.mxu0 %vm640_vm0, %v3426_v12 }
 0x1c8   : > { %2330 = vmatmul.msk.f32.gmra.mxu2 %vm640_vm0, %v947_v54  ;;  %v949_v1 = vpop.permute.xlu2 %948 }
 0x1c9   : > { %v1105_v61 = vpop.permute.xlu1 %1104  ;;  %699 = vmax.xlane.f32.xlu1 %v698_v60  ;;  %2316 = vmatmul.msk.f32.vlgmr.msrb.gmra.mxu0 %vm640_vm0, %v3407_v9  ;;  %v3542_v62 = vpop.permute.xlu0 %1736 }
 0x1ca   : > { %2336 = vmatpush.xpose.msk.msra.mxu0 %vm640_vm0, %v1115_v50  ;;  %2350 = vmatpush.xpose.msk.msra.mxu2 %vm640_vm0, %v1269_v35 }
 0x1ce   : > { %2337 = vmatpush.xpose.msk.msra.mxu0 %vm640_vm0, %v1113_v49  ;;  %2351 = vmatpush.xpose.msk.msra.mxu2 %vm640_vm0, %v3420_v11 }
 0x1d0   : > { %2331 = vmatmul.msk.f32.gmra.mxu2 %vm640_vm0, %v949_v1  ;;  %v1581_v13 = vpop.permute.xlu2 %1580 }
 0x1d1   : > { %v3554_v2 = vpop.permute.xlu1 %1734  ;;  %705 = vmax.xlane.f32.xlu1 %v704_v0  ;;  %2317 = vmatmul.msk.f32.gmra.mxu0 %vm640_vm0, %v3468_v26  ;;  %v2541_v3 = vpop.permute.xlu0 %2540 }
 0x1d2   : > { %2338 = vmatpush.xpose.msk.msra.mxu0 %vm640_vm0, %v3478_v30  ;;  %v2542_v30 = vunpack.i.l.bf16 %v2541_v3  ;;  %v2543_v31 = vunpack.i.h.bf16 %v2541_v3 }
 0x1d6   : > { %2339 = vmatpush.xpose.msk.msra.mxu0 %vm640_vm0, %v3414_v10 }
 0x1d8   : > { %2352 = vmatmul.msk.f32.vlgmr.msra.gmra.mxu2 %vm640_vm0, %v3446_v18  ;;  %v2556_v28 = vpop.permute.xlu2 %2555 }
 0x1d9   : > { %v2536_v4 = vpop.permute.xlu1 %2535  ;;  %2318 = vmatmul.msk.f32.gmra.mxu0 %vm640_vm0, %v785_v46  ;;  %v1431_v5 = vpop.permute.xlu0 %1430 }
 0x1da   : > { %2360 = vmatpush.xpose.msk.msrb.mxu0 %vm640_vm0, %v1431_v5  ;;  %v2538_v26 = vunpack.i.h.bf16 %v2536_v4 }
 0x1de   : > { %2361 = vmatpush.xpose.msk.msrb.mxu0 %vm640_vm0, %v3476_v29  ;;  %v2557_v29 = vunpack.i.l.bf16 %v2556_v28 }
 0x1e0   : > { %2353 = vmatmul.msk.f32.gmra.mxu2 %vm640_vm0, %v3458_v23 }
 0x1e1   : > { %v1747_v6 = vpop.permute.xlu1 %1746  ;;  %v1107_v7 = vpop.permute.xlu0 %1106  ;;  %2319 = vmatmul.msk.f32.gmra.mxu0 %vm640_vm0, %v787_v56 }
 0x1e2   : > { %2362 = vmatpush.xpose.msk.msrb.mxu0 %vm640_vm0, %v3492_v34  ;;  %v3624_v34 = vpop.permute.xlu2 %2565 }
 0x1e6   : > { %2363 = vmatpush.xpose.msk.msrb.mxu0 %vm640_vm0, %v3448_v19 }
 0x1e8   : > { %2354 = vmatmul.msk.f32.gmra.mxu2 %vm640_vm0, %v3488_v33 }
 0x1e9   : > { %v1423_v9 = vpop.permute.xlu1 %1422  ;;  %v1589_v10 = vpop.permute.xlu0 %1588  ;;  %2340 = vmatmul.msk.f32.vlgmr.msra.gmra.mxu0 %vm640_vm0, %v3436_v16 }
 0x1ea   : > { %2384 = vmatpush.xpose.msk.msra.mxu0 %vm640_vm0, %v1747_v6  ;;  %2372 = vmatpush.xpose.msk.msrb.mxu2 %vm640_vm0, %v1589_v10 }
 0x1ee   : > { %2385 = vmatpush.xpose.msk.msra.mxu0 %vm640_vm0, %v1745_v51  ;;  %2373 = vmatpush.xpose.msk.msrb.mxu2 %vm640_vm0, %v3494_v36 }
 0x1f1   : > { %v1739_v11 = vpop.permute.xlu1 %1738  ;;  %v1265_v12 = vpop.permute.xlu0 %1264  ;;  %2341 = vmatmul.msk.f32.gmra.mxu0 %vm640_vm0, %v3486_v32 }
 0x1f2   : > { %2386 = vmatpush.xpose.msk.msra.mxu0 %vm640_vm0, %v3466_v25  ;;  %2355 = vmatmul.msk.f32.gmra.mxu2 %vm640_vm0, %v1265_v12  ;;  %v2532_v25 = vunpack.i.l.bf16 %v3510_v43 }
 0x1f3   : > { %2374 = vmatpush.xpose.msk.msrb.mxu2 %vm640_vm0, %v3508_v41 }
 0x1f6   : > { %2387 = vmatpush.xpose.msk.msra.mxu0 %vm640_vm0, %v3464_v24  ;;  %v2537_v24 = vunpack.i.l.bf16 %v2536_v4 }
 0x1f7   : > { %2375 = vmatpush.xpose.msk.msrb.mxu2 %vm640_vm0, %v3456_v22  ;;  %v2533_v22 = vunpack.i.h.bf16 %v3510_v43 }
 0x1f9   : > { %v2546_v15 = vpop.permute.xlu1 %2545  ;;  %v2551_v16 = vpop.permute.xlu0 %2550  ;;  %2342 = vmatmul.msk.f32.gmra.mxu0 %vm640_vm0, %v1105_v61 }
 0x1fa   : > { %v2547_v18 = vunpack.i.l.bf16 %v2546_v15  ;;  %v2548_v19 = vunpack.i.h.bf16 %v2546_v15  ;;  %v2553_v20 = vunpack.i.h.bf16 %v2551_v16  ;;  %v2552_v23 = vunpack.i.l.bf16 %v2551_v16  ;;  %2376 = vmatmul.msk.f32.vlgmr.msrb.gmra.mxu2 %vm640_vm0, %v3430_v14 }
 0x1fb   : > { %v2558_v14 = vunpack.i.h.bf16 %v2556_v28 }
 0x1fc   : > { %925 = vmatpush.msrb.mxu1 %v2547_v18  ;;  %1083 = vmatpush.msra.mxu3 %v2552_v23 }
 0x1fe   : > { %926 = vmatpush.msrb.mxu1 %v2548_v19  ;;  %1084 = vmatpush.msra.mxu3 %v2553_v20 }
 0x200   : > { %927 = vmatpush.msrb.mxu1 %v2532_v25  ;;  %1085 = vmatpush.msra.mxu3 %v2537_v24 }
 0x201   : > { %2343 = vmatmul.msk.f32.gmra.mxu0 %vm640_vm0, %v1107_v7  ;;  %v3614_v32 = vpop.permute.xlu1 %2560 }
 0x202   : > { %928 = vmatpush.msrb.mxu1 %v2533_v22  ;;  %1086 = vmatpush.msra.mxu3 %v2538_v26 }
 0x203   : > { %2377 = vmatmul.msk.f32.gmra.mxu2 %vm640_vm0, %v3500_v38 }
 0x204   : > { %1241 = vmatpush.msra.mxu1 %v2557_v29 }
 0x206   : > { %1242 = vmatpush.msra.mxu1 %v2558_v14 }
 0x208   : > { %1243 = vmatpush.msra.mxu1 %v2542_v30 }
 0x209   : > { %2364 = vmatmul.msk.f32.vlgmr.msrb.gmra.mxu0 %vm640_vm0, %v3454_v21  ;;  %v3618_v21 = vpop.permute.xlu1 %2570 }
 0x20a   : > { %1244 = vmatpush.msra.mxu1 %v2543_v31 }
 0x20b   : > { %2378 = vmatmul.msk.f32.gmra.mxu2 %vm640_vm0, %v3529_v58 }
 0x211   : > { %2365 = vmatmul.msk.f32.gmra.mxu0 %vm640_vm0, %v3498_v37  ;;  %v3627_v35 = vpop.permute.xlu1 %2575 }
 0x213   : > { %2379 = vmatmul.msk.f32.gmra.mxu2 %vm640_vm0, %v1581_v13 }
 0x219   : > { %2366 = vmatmul.msk.f32.gmra.mxu0 %vm640_vm0, %v3502_v39 }
 0x221   : > { %2367 = vmatmul.msk.f32.gmra.mxu0 %vm640_vm0, %v1423_v9 }
 0x222   : > { %v697_v38 = vpop.xlane.xlu2 %696 }
 0x223   : > { %v707_v42 = vsub.f32 %v3506_v40, %v697_v38 }
 0x225   : > { %v711_v49 = vmul.f32 1.442695, %v707_v42 }
 0x227   : > { %2655 = vpow2.f32 %v711_v49 }
 0x229   : > { %2388 = vmatmul.msk.f32.vlgmr.msra.gmra.mxu0 %vm640_vm0, %v3438_v17 }
 0x22a   : > { %v703_v51 = vpop.xlane.xlu2 %702 }
 0x22b   : > { %v709_v53 = vsub.f32 %v3519_v52, %v703_v51 }
 0x22d   : > { %v715_v57 = vmul.f32 1.442695, %v709_v53  ;;  %v3658_v58 = vpop.eup %2655 }
 0x22e   : > { %v719_v61 = vsel %vm694_vm1, %v3658_v58, 0.0 }
 0x231   : > { %2389 = vmatmul.msk.f32.gmra.mxu0 %vm640_vm0, %v3554_v2 }
 0x239   : > { %2390 = vmatmul.msk.f32.gmra.mxu0 %vm640_vm0, %v3542_v62 }
 0x23b   : > { %v3622_v33 = vpop.f32.mrf.mxu2 }
 0x23c   : > { %v700_v39 = vpop.xlane.xlu1 %699  ;;  %v1003_v46 = vsel %vm694_vm1, %v3622_v33, -inf }
 0x23d   : > { %v708_v44 = vsub.f32 %v3512_v47, %v700_v39 }
 0x23f   : > { %v713_v50 = vmul.f32 1.442695, %v708_v44 }
 0x241   : > { %2391 = vmatmul.msk.f32.gmra.mxu0 %vm640_vm0, %v1739_v11  ;;  %2657 = vpow2.f32 %v713_v50 }
 0x242   : > { %2659 = vpow2.f32 %v715_v57 }
 0x243   : > { %v3629_v36 = vpop.f32.mrf.mxu2 }
 0x244   : > { %v1006_v55 = vsel %vm694_vm1, %v3629_v36, -inf  ;;  %v706_v6 = vpop.xlane.xlu1 %705 }
 0x245   : > { %v710_v7 = vsub.f32 %v3545_v63, %v706_v6 }
 0x246   : > { %v3631_v17 = vpop.f32.mrf.mxu0 }
 0x247   : > { %v841_v37 = vsel %vm694_vm1, %v3631_v17, -inf  ;;  %v3660_v59 = vpop.eup %2657  ;;  %v717_v11 = vmul.f32 1.442695, %v710_v7 }
 0x248   : > { %842 = vmax.xlane.f32.xlu0 %v841_v37  ;;  %v722_v62 = vsel %vm694_vm1, %v3660_v59, 0.0  ;;  %v3670_v0 = vpop.eup %2659 }
 0x249   : > { %v725_v2 = vsel %vm694_vm1, %v3670_v0, 0.0  ;;  %2661 = vpow2.f32 %v717_v11 }
 0x24b   : > { %v3635_v41 = vpop.f32.mrf.mxu2 }
 0x24c   : > { %v1009_v43 = vsel %vm694_vm1, %v3635_v41, -inf }
 0x24d   : > { %1010 = vmax.xlane.f32.xlu1 %v1009_v43 }
 0x24e   : > { %v3641_v45 = vpop.f32.mrf.mxu0 }
 0x24f   : > { %v844_v48 = vsel %vm694_vm1, %v3641_v45, -inf  ;;  %v3693_v16 = vpop.eup %2661 }
 0x250   : > { %1004 = vmax.xlane.f32.xlu0 %v1003_v46  ;;  %845 = vmax.xlane.f32.xlu2 %v844_v48  ;;  %v728_v20 = vsel %vm694_vm1, %v3693_v16, 0.0 }
 0x253   : > { %v3647_v40 = vpop.f32.mrf.mxu2 }
 0x254   : > { %v1012_v47 = vsel %vm694_vm1, %v3647_v40, -inf }
 0x255   : > { %1013 = vmax.xlane.f32.xlu1 %v1012_v47 }
 0x256   : > { %v3652_v54 = vpop.f32.mrf.mxu0 }
 0x257   : > { %v847_v56 = vsel %vm694_vm1, %v3652_v54, -inf }
 0x258   : > { %1007 = vmax.xlane.f32.xlu2 %v1006_v55  ;;  %848 = vmax.xlane.f32.xlu0 %v847_v56 }
 0x25b   : > { %v3664_v52 = vpop.f32.mrf.mxu2 }
 0x25c   : > { %v1319_v10 = vsel %vm694_vm1, %v3664_v52, -inf }
 0x25e   : > { %v3662_v60 = vpop.f32.mrf.mxu0 }
 0x25f   : > { %v850_v3 = vsel %vm694_vm1, %v3662_v60, -inf }
 0x260   : > { %720 = vadd.xlane.f32.xlu2 %v719_v61  ;;  %723 = vadd.xlane.f32.xlu0 %v722_v62 }
 0x263   : > { %v3680_v5 = vpop.f32.mrf.mxu2 }
 0x264   : > { %v1322_v26 = vsel %vm694_vm1, %v3680_v5, -inf }
 0x266   : > { %v3672_v1 = vpop.f32.mrf.mxu0 }
 0x267   : > { %v1161_v4 = vsel %vm694_vm1, %v3672_v1, -inf }
 0x268   : > { %726 = vadd.xlane.f32.xlu0 %v725_v2  ;;  %851 = vmax.xlane.f32.xlu2 %v850_v3 }
 0x269   : > { %1162 = vmax.xlane.f32.xlu1 %v1161_v4 }
 0x26b   : > { %v3687_v12 = vpop.f32.mrf.mxu2 }
 0x26c   : > { %v1325_v39 = vsel %vm694_vm1, %v3687_v12, -inf }
 0x26e   : > { %v3683_v9 = vpop.f32.mrf.mxu0 }
 0x26f   : > { %v1164_v15 = vsel %vm694_vm1, %v3683_v9, -inf }
 0x270   : > { %1320 = vmax.xlane.f32.xlu0 %v1319_v10 }
 0x275   : > { %v3695_v18 = vpop.f32.mrf.mxu2 }
 0x276   : > { %v3689_v13 = vpop.f32.mrf.mxu0  ;;  %v1328_v24 = vsel %vm694_vm1, %v3695_v18, -inf }
 0x277   : > { %v1167_v14 = vsel %vm694_vm1, %v3689_v13, -inf }
 0x278   : > { %1165 = vmax.xlane.f32.xlu0 %v1164_v15 }
 0x27d   : > { %v3705_v25 = vpop.f32.mrf.mxu2 }
 0x27e   : > { %v3697_v63 = vpop.f32.mrf.mxu0  ;;  %v1635_v29 = vsel %vm694_vm1, %v3705_v25, -inf }
 0x27f   : > { %v1170_v19 = vsel %vm694_vm1, %v3697_v63, -inf }
 0x280   : > { %1171 = vmax.xlane.f32.xlu2 %v1170_v19  ;;  %729 = vadd.xlane.f32.xlu0 %v728_v20 }
 0x286   : > { %v3703_v23 = vpop.f32.mrf.mxu0  ;;  %v3719_v30 = vpop.f32.mrf.mxu2 }
 0x287   : > { %v1477_v22 = vsel %vm694_vm1, %v3703_v23, -inf  ;;  %v1638_v37 = vsel %vm694_vm1, %v3719_v30, -inf }
 0x288   : > { %1329 = vmax.xlane.f32.xlu2 %v1328_v24  ;;  %1478 = vmax.xlane.f32.xlu1 %v1477_v22 }
 0x289   : > { %1323 = vmax.xlane.f32.xlu0 %v1322_v26 }
 0x28e   : > { %v3713_v28 = vpop.f32.mrf.mxu0  ;;  %v3729_v42 = vpop.f32.mrf.mxu2 }
 0x28f   : > { %v1641_v44 = vsel %vm694_vm1, %v3729_v42, -inf  ;;  %v1480_v48 = vsel %vm694_vm1, %v3713_v28, -inf }
 0x290   : > { %1636 = vmax.xlane.f32.xlu2 %v1635_v29 }
 0x291   : > { %1168 = vmax.xlane.f32.xlu0 %v1167_v14 }
 0x296   : > { %v3721_v31 = vpop.f32.mrf.mxu0  ;;  %v3739_v49 = vpop.f32.mrf.mxu2 }
 0x297   : > { %v1483_v38 = vsel %vm694_vm1, %v3721_v31, -inf  ;;  %v1644_v47 = vsel %vm694_vm1, %v3739_v49, -inf }
 0x298   : > { %1639 = vmax.xlane.f32.xlu2 %v1638_v37  ;;  %1484 = vmax.xlane.f32.xlu1 %v1483_v38 }
 0x299   : > { %1326 = vmax.xlane.f32.xlu0 %v1325_v39 }
 0x29e   : > { %v3731_v43 = vpop.f32.mrf.mxu0 }
 0x29f   : > { %v1486_v46 = vsel %vm694_vm1, %v3731_v43, -inf }
 0x2a0   : > { %1642 = vmax.xlane.f32.xlu2 %v1641_v44  ;;  %1487 = vmax.xlane.f32.xlu1 %v1486_v46 }
 0x2a1   : > { %1481 = vmax.xlane.f32.xlu0 %v1480_v48 }
 0x2a6   : > { %v3741_v50 = vpop.f32.mrf.mxu0 }
 0x2a7   : > { %v1793_v51 = vsel %vm694_vm1, %v3741_v50, -inf }
 0x2a8   : > { %1794 = vmax.xlane.f32.xlu1 %v1793_v51 }
 0x2a9   : > { %1645 = vmax.xlane.f32.xlu0 %v1644_v47 }
 0x2ae   : > { %v3747_v53 = vpop.f32.mrf.mxu0 }
 0x2af   : > { %v1796_v55 = vsel %vm694_vm1, %v3747_v53, -inf }
 0x2b0   : > { %1797 = vmax.xlane.f32.xlu1 %v1796_v55 }
 0x2b6   : > { %v3751_v56 = vpop.f32.mrf.mxu0 }
 0x2b7   : > { %v1799_v57 = vsel %vm694_vm1, %v3751_v56, -inf }
 0x2b8   : > { %1800 = vmax.xlane.f32.xlu2 %v1799_v57 }
 0x2bb   : > { %v843_v61 = vpop.xlane.xlu0 %842 }
 0x2bc   : > { %v853_v62 = vsub.f32 %v3631_v17, %v843_v61 }
 0x2be   : > { %v857_v2 = vmul.f32 1.442695, %v853_v62  ;;  %v3756_v3 = vpop.f32.mrf.mxu0 }
 0x2bf   : > { %v1802_v4 = vsel %vm694_vm1, %v3756_v3, -inf }
 0x2c0   : > { %2663 = vpow2.f32 %v857_v2  ;;  %1803 = vmax.xlane.f32.xlu0 %v1802_v4  ;;  %v1011_v6 = vpop.xlane.xlu1 %1010 }
 0x2c3   : > { %v1005_v7 = vpop.xlane.xlu0 %1004  ;;  %v846_v10 = vpop.xlane.xlu2 %845 }
 0x2c4   : > { %v1015_v11 = vsub.f32 %v3622_v33, %v1005_v7  ;;  %v854_v15 = vsub.f32 %v3641_v45, %v846_v10  ;;  %v1017_v45 = vsub.f32 %v3635_v41, %v1011_v6  ;;  %v2562_v10 = vunpack.i.l.bf16 %v3614_v32 }
 0x2c6   : > { %v3762_v19 = vpop.eup %2663  ;;  %v1019_v20 = vmul.f32 1.442695, %v1015_v11  ;;  %v859_v24 = vmul.f32 1.442695, %v854_v15 }
 0x2c7   : > { %v865_v17 = vsel %vm694_vm1, %v3762_v19, 0.0 }
 0x2c8   : > { %2665 = vpow2.f32 %v1019_v20  ;;  %866 = vadd.xlane.f32.xlu2 %v865_v17  ;;  %v1014_v29 = vpop.xlane.xlu1 %1013  ;;  %v2563_v17 = vunpack.i.h.bf16 %v3614_v32 }
 0x2c9   : > { %2667 = vpow2.f32 %v859_v24  ;;  %v1018_v46 = vsub.f32 %v3647_v40, %v1014_v29 }
 0x2cb   : > { %v1008_v22 = vpop.xlane.xlu2 %1007  ;;  %v849_v26 = vpop.xlane.xlu0 %848  ;;  %v1025_v51 = vmul.f32 1.442695, %v1018_v46 }
 0x2cc   : > { %v1016_v14 = vsub.f32 %v3629_v36, %v1008_v22  ;;  %v855_v37 = vsub.f32 %v3652_v54, %v849_v26  ;;  %v1023_v54 = vmul.f32 1.442695, %v1017_v45 }
 0x2ce   : > { %v3768_v33 = vpop.eup %2665  ;;  %v1021_v38 = vmul.f32 1.442695, %v1016_v14  ;;  %v861_v39 = vmul.f32 1.442695, %v855_v37 }
 0x2cf   : > { %v3771_v44 = vpop.eup %2667  ;;  %v1027_v48 = vsel %vm694_vm1, %v3768_v33, 0.0 }
 0x2d0   : > { %2669 = vpow2.f32 %v1021_v38  ;;  %1028 = vadd.xlane.f32.xlu1 %v1027_v48  ;;  %v868_v36 = vsel %vm694_vm1, %v3771_v44, 0.0 }
 0x2d1   : > { %2671 = vpow2.f32 %v861_v39  ;;  %869 = vadd.xlane.f32.xlu0 %v868_v36 }
 0x2d3   : > { %v721_v47 = vpop.xlane.xlu2 %720  ;;  %v724_v41 = vpop.xlane.xlu0 %723 }
 0x2d4   : > { %2673 = vrcp.f32 %v721_v47 }
 0x2d5   : > { %2675 = vpow2.f32 %v1023_v54 }
 0x2d6   : > { %v3778_v55 = vpop.eup %2669  ;;  %2677 = vpow2.f32 %v1025_v51 }
 0x2d7   : > { %v3780_v57 = vpop.eup %2671  ;;  %v1030_v40 = vsel %vm694_vm1, %v3778_v55, 0.0  ;;  %2679 = vrcp.f32 %v724_v41 }
 0x2d8   : > { %v871_v61 = vsel %vm694_vm1, %v3780_v57, 0.0 }
 0x2d9   : > { %872 = vadd.xlane.f32.xlu2 %v871_v61  ;;  %1031 = vadd.xlane.f32.xlu0 %v1030_v40 }
 0x2da   : > { %v2674_v62 = vpop.eup %2673 }
 0x2db   : > { %v727_v2 = vpop.xlane.xlu0 %726  ;;  %v852_v4 = vpop.xlane.xlu2 %851  ;;  %v735_v6 = vmul.f32 %v2674_v62, %v3658_v58  ;;  %v2567_v58 = vunpack.i.l.bf16 %v3624_v34 }
 0x2dc   : > { %v3787_v7 = vpop.eup %2675  ;;  %v856_v11 = vsub.f32 %v3662_v60, %v852_v4  ;;  %v1163_v15 = vpop.xlane.xlu1 %1162 }
 0x2dd   : > { %v3791_v20 = vpop.eup %2677  ;;  %v1173_v24 = vsub.f32 %v3672_v1, %v1163_v15  ;;  %2308 = vmatmul.msk.f32.vlgmr.msrb.gmra.mxu3 %vm694_vm1, %v735_v6  ;;  %v1033_v60 = vsel %vm694_vm1, %v3787_v7, 0.0  ;;  %v2568_v1 = vunpack.i.h.bf16 %v3624_v34 }
 0x2de   : > { %v863_v22 = vmul.f32 1.442695, %v856_v11  ;;  %1399 = vmatpush.msrb.mxu3 %v2562_v10  ;;  %v2680_v29 = vpop.eup %2679  ;;  %v1036_v14 = vsel %vm694_vm1, %v3791_v20, 0.0 }
 0x2df   : > { %v1177_v26 = vmul.f32 1.442695, %v1173_v24  ;;  %v736_v37 = vmul.f32 %v2680_v29, %v3660_v59 }
 0x2e0   : > { %2681 = vpow2.f32 %v863_v22  ;;  %1400 = vmatpush.msrb.mxu3 %v2563_v17 }
 0x2e1   : > { %2683 = vpow2.f32 %v1177_v26  ;;  %1034 = vadd.xlane.f32.xlu0 %v1033_v60  ;;  %1037 = vadd.xlane.f32.xlu2 %v1036_v14 }
 0x2e2   : > { %2685 = vrcp.f32 %v727_v2  ;;  %1401 = vmatpush.msrb.mxu3 %v2567_v58 }
 0x2e3   : > { %v1321_v32 = vpop.xlane.xlu0 %1320 }
 0x2e4   : > { %v1331_v45 = vsub.f32 %v3664_v52, %v1321_v32  ;;  %1402 = vmatpush.msrb.mxu3 %v2568_v1 }
 0x2e5   : > { %2309 = vmatmul.msk.f32.gmra.mxu3 %vm694_vm1, %v736_v37 }
 0x2e6   : > { %v3805_v38 = vpop.eup %2681  ;;  %v1335_v39 = vmul.f32 1.442695, %v1331_v45 }
 0x2e7   : > { %v3807_v46 = vpop.eup %2683  ;;  %v874_v48 = vsel %vm694_vm1, %v3805_v38, 0.0 }
 0x2e8   : > { %v2686_v36 = vpop.eup %2685  ;;  %2687 = vpow2.f32 %v1335_v39  ;;  %v1185_v34 = vsel %vm694_vm1, %v3807_v46, 0.0 }
 0x2e9   : > { %875 = vadd.xlane.f32.xlu0 %v874_v48  ;;  %1186 = vadd.xlane.f32.xlu2 %v1185_v34  ;;  %v737_v52 = vmul.f32 %v2686_v36, %v3670_v0 }
 0x2eb   : > { %v1166_v59 = vpop.xlane.xlu0 %1165 }
 0x2ec   : > { %v1174_v54 = vsub.f32 %v3683_v9, %v1166_v59 }
 0x2ed   : > { %2310 = vmatmul.msk.f32.gmra.mxu3 %vm694_vm1, %v737_v52 }
 0x2ee   : > { %v3816_v51 = vpop.eup %2687  ;;  %v1179_v47 = vmul.f32 1.442695, %v1174_v54 }
 0x2ef   : > { %v1343_v41 = vsel %vm694_vm1, %v3816_v51, 0.0 }
 0x2f0   : > { %2689 = vpow2.f32 %v1179_v47 }
 0x2f1   : > { %1344 = vadd.xlane.f32.xlu2 %v1343_v41 }
 0x2f3   : > { %v730_v40 = vpop.xlane.xlu0 %729  ;;  %v1172_v10 = vpop.xlane.xlu2 %1171 }
 0x2f4   : > { %2691 = vrcp.f32 %v730_v40  ;;  %v1176_v22 = vsub.f32 %v3697_v63, %v1172_v10 }
 0x2f6   : > { %v3820_v61 = vpop.eup %2689 }
 0x2f7   : > { %v1188_v62 = vsel %vm694_vm1, %v3820_v61, 0.0 }
 0x2f8   : > { %1189 = vadd.xlane.f32.xlu1 %v1188_v62 }
 0x2fa   : > { %v2692_v0 = vpop.eup %2691 }
 0x2fb   : > { %v738_v9 = vmul.f32 %v2692_v0, %v3693_v16  ;;  %v1479_v11 = vpop.xlane.xlu1 %1478  ;;  %v1330_v29 = vpop.xlane.xlu2 %1329 }
 0x2fc   : > { %v1324_v2 = vpop.xlane.xlu0 %1323 }
 0x2fd   : > { %v1332_v4 = vsub.f32 %v3680_v5, %v1324_v2  ;;  %2311 = vmatmul.msk.f32.gmra.mxu3 %vm694_vm1, %v738_v9  ;;  %v1183_v5 = vmul.f32 1.442695, %v1176_v22 }
 0x2ff   : > { %v1337_v6 = vmul.f32 1.442695, %v1332_v4 }
 0x301   : > { %2693 = vpow2.f32 %v1337_v6 }
 0x303   : > { %v3849_v34 = vpop.xlane.xlu2 %1636 }
 0x304   : > { %v1169_v15 = vpop.xlane.xlu0 %1168 }
 0x305   : > { %v1175_v24 = vsub.f32 %v3689_v13, %v1169_v15  ;;  %v1334_v13 = vsub.f32 %v3695_v18, %v1330_v29  ;;  %v1489_v18 = vsub.f32 %v3703_v23, %v1479_v11 }
 0x307   : > { %v3828_v17 = vpop.eup %2693  ;;  %v1181_v26 = vmul.f32 1.442695, %v1175_v24  ;;  %v1341_v45 = vmul.f32 1.442695, %v1334_v13  ;;  %v1493_v52 = vmul.f32 1.442695, %v1489_v18  ;;  %v2578_v18 = vunpack.i.h.bf16 %v3627_v35 }
 0x308   : > { %v1346_v16 = vsel %vm694_vm1, %v3828_v17, 0.0 }
 0x309   : > { %2695 = vpow2.f32 %v1181_v26  ;;  %1347 = vadd.xlane.f32.xlu0 %v1346_v16  ;;  %2585 = vrot.lane.b32.xlu2 %v3399_v8, %s3100_s22 }
 0x30a   : > { %2697 = vpow2.f32 %v1183_v5 }
 0x30b   : > { %v1485_v58 = vpop.xlane.xlu1 %1484  ;;  %v3865_v4 = vpop.xlane.xlu2 %1639 }
 0x30c   : > { %v1327_v60 = vpop.xlane.xlu0 %1326  ;;  %v1491_v32 = vsub.f32 %v3721_v31, %v1485_v58 }
 0x30d   : > { %v1333_v14 = vsub.f32 %v3687_v12, %v1327_v60 }
 0x30e   : > { %v1497_v39 = vmul.f32 1.442695, %v1491_v32 }
 0x30f   : > { %v3837_v1 = vpop.eup %2695  ;;  %v1339_v63 = vmul.f32 1.442695, %v1333_v14 }
 0x310   : > { %v1191_v37 = vsel %vm694_vm1, %v3837_v1, 0.0  ;;  %v3844_v36 = vpop.eup %2697 }
 0x311   : > { %2699 = vpow2.f32 %v1339_v63  ;;  %1192 = vadd.xlane.f32.xlu1 %v1191_v37  ;;  %v1194_v31 = vsel %vm694_vm1, %v3844_v36, 0.0  ;;  %v2572_v63 = vunpack.i.l.bf16 %v3618_v21  ;;  %v2573_v37 = vunpack.i.h.bf16 %v3618_v21 }
 0x312   : > { %2701 = vpow2.f32 %v1341_v45  ;;  %v2577_v45 = vunpack.i.l.bf16 %v3627_v35  ;;  %v1647_v35 = vsub.f32 %v3705_v25, %v3849_v34 }
 0x313   : > { %v3842_v48 = vpop.xlane.xlu1 %1487  ;;  %2703 = vpow2.f32 %v1497_v39  ;;  %v1643_v15 = vpop.xlane.xlu2 %1642 }
 0x314   : > { %v1482_v23 = vpop.xlane.xlu0 %1481  ;;  %2705 = vpow2.f32 %v1493_v52  ;;  %v1492_v25 = vsub.f32 %v3731_v43, %v3842_v48 }
 0x315   : > { %v1490_v0 = vsub.f32 %v3713_v28, %v1482_v23 }
 0x317   : > { %v3846_v12 = vpop.eup %2699  ;;  %v1495_v6 = vmul.f32 1.442695, %v1490_v0 }
 0x318   : > { %v1349_v59 = vsel %vm694_vm1, %v3846_v12, 0.0  ;;  %v3855_v47 = vpop.eup %2701 }
 0x319   : > { %1195 = vadd.xlane.f32.xlu1 %v1194_v31  ;;  %1350 = vadd.xlane.f32.xlu0 %v1349_v59  ;;  %v3858_v40 = vpop.eup %2703  ;;  %v1352_v9 = vsel %vm694_vm1, %v3855_v47, 0.0 }
 0x31a   : > { %v1507_v2 = vsel %vm694_vm1, %v3858_v40, 0.0 }
 0x31b   : > { %v1795_v54 = vpop.xlane.xlu1 %1794 }
 0x31c   : > { %v1805_v41 = vsub.f32 %v3741_v50, %v1795_v54  ;;  %v3867_v50 = vpop.eup %2705  ;;  %v3881_v16 = vpop.xlane.xlu0 %1645 }
 0x31d   : > { %v1501_v28 = vsel %vm694_vm1, %v3867_v50, 0.0 }
 0x31e   : > { %v1809_v62 = vmul.f32 1.442695, %v1805_v41 }
 0x320   : > { %2707 = vpow2.f32 %v1809_v62  ;;  %v1649_v62 = vsub.f32 %v3729_v42, %v1643_v15 }
 0x321   : > { %1353 = vadd.xlane.f32.xlu0 %v1352_v9  ;;  %1508 = vadd.xlane.f32.xlu1 %v1507_v2  ;;  %2709 = vpow2.f32 %v1495_v6 }
 0x322   : > { %v1655_v2 = vmul.f32 1.442695, %v1649_v62 }
 0x323   : > { %v3883_v5 = vpop.xlane.xlu1 %1797 }
 0x324   : > { %v1806_v42 = vsub.f32 %v3747_v53, %v3883_v5 }
 0x326   : > { %v3869_v10 = vpop.eup %2707  ;;  %v1811_v15 = vmul.f32 1.442695, %v1806_v42 }
 0x327   : > { %v1817_v11 = vsel %vm694_vm1, %v3869_v10, 0.0  ;;  %v3875_v24 = vpop.eup %2709 }
 0x328   : > { %v1504_v22 = vsel %vm694_vm1, %v3875_v24, 0.0 }
 0x329   : > { %1502 = vadd.xlane.f32.xlu0 %v1501_v28  ;;  %1818 = vadd.xlane.f32.xlu1 %v1817_v11 }
 0x32b   : > { %v3879_v26 = vpop.xlane.xlu2 %1800 }
 0x332   : > { %1505 = vadd.xlane.f32.xlu2 %v1504_v22 }
 0x333   : > { %v3885_v58 = vpop.xlane.xlu0 %1803 }
 0x33b   : > { %v867_v29 = vpop.xlane.xlu2 %866 }
 0x33c   : > { %2711 = vrcp.f32 %v867_v29 }
 0x33d   : > { %2580 = vrot.lane.b32.xlu0 %v3470_v27, %s3100_s22 }
 0x342   : > { %v2712_v60 = vpop.eup %2711  ;;  %2590 = vrot.lane.b32.xlu1 %v3470_v27, %s3101_s3 }
 0x343   : > { %v1029_v14 = vpop.xlane.xlu1 %1028  ;;  %v881_v13 = vmul.f32 %v2712_v60, %v3762_v19 }
 0x344   : > { %v870_v32 = vpop.xlane.xlu0 %869  ;;  %2713 = vrcp.f32 %v1029_v14 }
 0x345   : > { %2715 = vrcp.f32 %v870_v32  ;;  %2320 = vmatmul.msk.f32.vlgmr.msrb.gmra.mxu1 %vm694_vm1, %v881_v13 }
 0x346   : > { %1557 = vmatpush.msrb.mxu1 %v2572_v63  ;;  %v1650_v63 = vsub.f32 %v3739_v49, %v3881_v16  ;;  %v1807_v16 = vsub.f32 %v3751_v56, %v3879_v26 }
 0x348   : > { %1558 = vmatpush.msrb.mxu1 %v2573_v37 }
 0x34a   : > { %v2714_v39 = vpop.eup %2713  ;;  %1559 = vmatpush.msrb.mxu1 %v2577_v45  ;;  %2595 = vrot.lane.b32.xlu2 %v3399_v8, %s3101_s3  ;;  %v1657_v45 = vmul.f32 1.442695, %v1650_v63 }
 0x34b   : > { %v2716_v27 = vpop.eup %2715  ;;  %v1043_v19 = vmul.f32 %v2714_v39, %v3768_v33 }
 0x34c   : > { %1560 = vmatpush.msrb.mxu1 %v2578_v18  ;;  %v873_v31 = vpop.xlane.xlu2 %872  ;;  %v1032_v59 = vpop.xlane.xlu0 %1031  ;;  %v882_v52 = vmul.f32 %v2716_v27, %v3771_v44  ;;  %v1651_v44 = vmul.f32 1.442695, %v1647_v35  ;;  %v1813_v27 = vmul.f32 1.442695, %v1807_v16 }
 0x34d   : > { %2717 = vrcp.f32 %v873_v31  ;;  %2332 = vmatmul.msk.f32.vlgmr.msra.gmra.mxu3 %vm694_vm1, %v1043_v19  ;;  %v1808_v31 = vsub.f32 %v3756_v3, %v3885_v58 }
 0x34e   : > { %2719 = vrcp.f32 %v1032_v59  ;;  %2321 = vmatmul.msk.f32.gmra.mxu1 %vm694_vm1, %v882_v52 }
 0x34f   : > { %v1815_v56 = vmul.f32 1.442695, %v1808_v31 }
 0x353   : > { %v2718_v21 = vpop.eup %2717 }
 0x354   : > { %v2720_v54 = vpop.eup %2719  ;;  %v1035_v8 = vpop.xlane.xlu0 %1034  ;;  %v883_v33 = vmul.f32 %v2718_v21, %v3780_v57 }
 0x355   : > { %v1038_v41 = vpop.xlane.xlu2 %1037  ;;  %2721 = vrcp.f32 %v1035_v8  ;;  %v1044_v23 = vmul.f32 %v2720_v54, %v3778_v55  ;;  %v1499_v55 = vmul.f32 1.442695, %v1492_v25 }
 0x356   : > { %2322 = vmatmul.msk.f32.gmra.mxu1 %vm694_vm1, %v883_v33  ;;  %2723 = vpow2.f32 %v1651_v44 }
 0x357   : > { %2333 = vmatmul.msk.f32.gmra.mxu3 %vm694_vm1, %v1044_v23  ;;  %2725 = vrcp.f32 %v1038_v41 }
 0x35b   : > { %v2722_v0 = vpop.eup %2721 }
 0x35c   : > { %v876_v34 = vpop.xlane.xlu0 %875  ;;  %v1045_v57 = vmul.f32 %v2722_v0, %v3787_v7  ;;  %v3914_v6 = vpop.eup %2723  ;;  %v1648_v7 = vsub.f32 %v3719_v30, %v3865_v4 }
 0x35d   : > { %v1187_v9 = vpop.xlane.xlu2 %1186  ;;  %2727 = vrcp.f32 %v876_v34  ;;  %v2726_v11 = vpop.eup %2725  ;;  %v1659_v53 = vsel %vm694_vm1, %v3914_v6, 0.0 }
 0x35e   : > { %2729 = vpow2.f32 %v1655_v2  ;;  %v1046_v22 = vmul.f32 %v2726_v11, %v3791_v20  ;;  %v1653_v60 = vmul.f32 1.442695, %v1648_v7 }
 0x35f   : > { %2334 = vmatmul.msk.f32.gmra.mxu3 %vm694_vm1, %v1045_v57  ;;  %2731 = vrcp.f32 %v1187_v9 }
 0x360   : > { %2733 = vpow2.f32 %v1499_v55  ;;  %v3978_v11 = vpop.f32.mrf.mxu3 }
 0x363   : > { %v2728_v28 = vpop.eup %2727 }
 0x364   : > { %v884_v48 = vmul.f32 %v2728_v28, %v3805_v38  ;;  %v3926_v5 = vpop.eup %2729 }
 0x365   : > { %v1345_v43 = vpop.xlane.xlu2 %1344  ;;  %v2732_v29 = vpop.eup %2731  ;;  %v1665_v4 = vsel %vm694_vm1, %v3926_v5, 0.0 }
 0x366   : > { %2735 = vrcp.f32 %v1345_v43  ;;  %2323 = vmatmul.msk.f32.gmra.mxu1 %vm694_vm1, %v884_v48  ;;  %v3928_v38 = vpop.eup %2733  ;;  %v1201_v14 = vmul.f32 %v2732_v29, %v3807_v46 }
 0x367   : > { %2335 = vmatmul.msk.f32.gmra.mxu3 %vm694_vm1, %v1046_v22  ;;  %1660 = vadd.xlane.f32.xlu0 %v1659_v53  ;;  %2737 = vpow2.f32 %v1811_v15  ;;  %v1510_v32 = vsel %vm694_vm1, %v3928_v38, 0.0 }
 0x36b   : > { %v1190_v20 = vpop.xlane.xlu1 %1189 }
 0x36c   : > { %v2736_v30 = vpop.eup %2735  ;;  %1666 = vadd.xlane.f32.xlu1 %v1665_v4  ;;  %2739 = vrcp.f32 %v1190_v20 }
 0x36d   : > { %v1359_v13 = vmul.f32 %v2736_v30, %v3816_v51  ;;  %2741 = vpow2.f32 %v1653_v60  ;;  %v3939_v37 = vpop.eup %2737  ;;  %v2586_v57 = vpop.permute.xlu2 %2585 }
 0x36e   : > { %2344 = vmatmul.msk.f32.vlgmr.msra.gmra.mxu1 %vm694_vm1, %v1201_v14  ;;  %v1820_v51 = vsel %vm694_vm1, %v3939_v37, 0.0  ;;  %2743 = vpow2.f32 %v1657_v45  ;;  %v2587_v22 = vunpack.i.l.bf16 %v2586_v57  ;;  %v3983_v60 = vpop.f32.mrf.mxu3  ;;  %v2588_v30 = vunpack.i.h.bf16 %v2586_v57 }
 0x36f   : > { %2356 = vmatmul.msk.f32.vlgmr.msrb.gmra.mxu3 %vm694_vm1, %v1359_v13  ;;  %1511 = vadd.xlane.f32.xlu0 %v1510_v32  ;;  %2745 = vpow2.f32 %v1813_v27 }
 0x372   : > { %v2740_v46 = vpop.eup %2739 }
 0x373   : > { %v3944_v39 = vpop.eup %2741  ;;  %1821 = vadd.xlane.f32.xlu2 %v1820_v51  ;;  %v1202_v49 = vmul.f32 %v2740_v46, %v3820_v61 }
 0x374   : > { %v1662_v18 = vsel %vm694_vm1, %v3944_v39, 0.0  ;;  %v3952_v19 = vpop.eup %2743 }
 0x375   : > { %v1668_v61 = vsel %vm694_vm1, %v3952_v19, 0.0  ;;  %v3958_v26 = vpop.eup %2745 }
 0x376   : > { %2345 = vmatmul.msk.f32.gmra.mxu1 %vm694_vm1, %v1202_v49  ;;  %v1823_v3 = vsel %vm694_vm1, %v3958_v26, 0.0  ;;  %v3986_v13 = vpop.f32.mrf.mxu3 }
 0x377   : > { %1663 = vadd.xlane.f32.xlu0 %v1662_v18 }
 0x37c   : > { %v1348_v59 = vpop.xlane.xlu0 %1347 }
 0x37d   : > { %2747 = vrcp.f32 %v1348_v59 }
 0x37e   : > { %2749 = vpow2.f32 %v1815_v56 }
 0x37f   : > { %1669 = vadd.xlane.f32.xlu0 %v1668_v61 }
 0x380   : > { %v3988_v32 = vpop.f32.mrf.mxu3 }
 0x383   : > { %v2748_v52 = vpop.eup %2747 }
 0x384   : > { %v1193_v21 = vpop.xlane.xlu1 %1192  ;;  %v1360_v35 = vmul.f32 %v2748_v52, %v3828_v17  ;;  %v3964_v58 = vpop.eup %2749 }
 0x385   : > { %2751 = vrcp.f32 %v1193_v21  ;;  %v1826_v17 = vsel %vm694_vm1, %v3964_v58, 0.0 }
 0x386   : > { %2357 = vmatmul.msk.f32.gmra.mxu3 %vm694_vm1, %v1360_v35 }
 0x387   : > { %1824 = vadd.xlane.f32.xlu0 %v1823_v3 }
 0x38b   : > { %v2752_v54 = vpop.eup %2751 }
 0x38c   : > { %v1351_v8 = vpop.xlane.xlu0 %1350  ;;  %v1196_v41 = vpop.xlane.xlu1 %1195  ;;  %v1203_v33 = vmul.f32 %v2752_v54, %v3837_v1 }
 0x38d   : > { %2753 = vrcp.f32 %v1351_v8 }
 0x38e   : > { %2755 = vrcp.f32 %v1196_v41  ;;  %2346 = vmatmul.msk.f32.gmra.mxu1 %vm694_vm1, %v1203_v33 }
 0x38f   : > { %1827 = vadd.xlane.f32.xlu0 %v1826_v17 }
 0x393   : > { %v2754_v23 = vpop.eup %2753 }
 0x394   : > { %v2756_v44 = vpop.eup %2755  ;;  %v1354_v62 = vpop.xlane.xlu0 %1353  ;;  %v1361_v0 = vmul.f32 %v2754_v23, %v3846_v12 }
 0x395   : > { %2757 = vrcp.f32 %v1354_v62  ;;  %v1204_v25 = vmul.f32 %v2756_v44, %v3844_v36  ;;  %v1509_v2 = vpop.xlane.xlu1 %1508 }
 0x396   : > { %2358 = vmatmul.msk.f32.gmra.mxu3 %vm694_vm1, %v1361_v0 }
 0x397   : > { %2347 = vmatmul.msk.f32.gmra.mxu1 %vm694_vm1, %v1204_v25 }
 0x39b   : > { %v2758_v1 = vpop.eup %2757 }
 0x39c   : > { %v1503_v34 = vpop.xlane.xlu0 %1502  ;;  %v1362_v9 = vmul.f32 %v2758_v1, %v3855_v47 }
 0x39d   : > { %2759 = vrcp.f32 %v1503_v34  ;;  %v1819_v28 = vpop.xlane.xlu1 %1818 }
 0x39e   : > { %2359 = vmatmul.msk.f32.gmra.mxu3 %vm694_vm1, %v1362_v9 }
 0x3a3   : > { %v2760_v55 = vpop.eup %2759 }
 0x3a4   : > { %v1517_v42 = vmul.f32 %v2760_v55, %v3867_v50 }
 0x3a5   : > { %v1506_v12 = vpop.xlane.xlu2 %1505 }
 0x3a6   : > { %2761 = vrcp.f32 %v1506_v12  ;;  %2368 = vmatmul.msk.f32.vlgmr.msrb.gmra.mxu1 %vm694_vm1, %v1517_v42 }
 0x3a7   : > { %2763 = vrcp.f32 %v1509_v2 }
 0x3ac   : > { %v2762_v36 = vpop.eup %2761 }
 0x3ad   : > { %v1518_v43 = vmul.f32 %v2762_v36, %v3875_v24  ;;  %v2764_v7 = vpop.eup %2763  ;;  %v2596_v4 = vpop.permute.xlu2 %2595 }
 0x3ae   : > { %v1519_v29 = vmul.f32 %v2764_v7, %v3858_v40  ;;  %v2597_v20 = vunpack.i.l.bf16 %v2596_v4  ;;  %v2598_v14 = vunpack.i.h.bf16 %v2596_v4 }
 0x3af   : > { %v2581_v47 = vpop.permute.xlu0 %2580  ;;  %2369 = vmatmul.msk.f32.gmra.mxu1 %vm694_vm1, %v1518_v43 }
 0x3b0   : > { %v2582_v48 = vunpack.i.l.bf16 %v2581_v47  ;;  %v2583_v15 = vunpack.i.h.bf16 %v2581_v47 }
 0x3b2   : > { %1715 = vmatpush.msra.mxu3 %v2582_v48 }
 0x3b4   : > { %1716 = vmatpush.msra.mxu3 %v2583_v15  ;;  %v2591_v50 = vpop.permute.xlu1 %2590 }
 0x3b5   : > { %v2592_v53 = vunpack.i.l.bf16 %v2591_v50  ;;  %v2593_v24 = vunpack.i.h.bf16 %v2591_v50 }
 0x3b6   : > { %1717 = vmatpush.msra.mxu3 %v2587_v22 }
 0x3b7   : > { %2370 = vmatmul.msk.f32.gmra.mxu1 %vm694_vm1, %v1519_v29 }
 0x3b8   : > { %1873 = vmatpush.msra.mxu1 %v2592_v53  ;;  %1718 = vmatpush.msra.mxu3 %v2588_v30 }
 0x3ba   : > { %1874 = vmatpush.msra.mxu1 %v2593_v24 }
 0x3bc   : > { %1875 = vmatpush.msra.mxu1 %v2597_v20 }
 0x3be   : > { %1876 = vmatpush.msra.mxu1 %v2598_v14 }
 0x3c2   : > { %v930_v63 = vpop.f32.mrf.mxu1 }
 0x3cb   : > { %v933_v40 = vpop.f32.mrf.mxu1 }
 0x3cc   : > { %v2599_v45 = vpack.i.bf16 %v933_v40, %v930_v63 }
 0x3ce   : > { %2600 = vrot.lane.b32.xlu2 %v2599_v45, %s3101_s3 }
 0x3d0   : > { %v1088_v46 = vpop.f32.mrf.mxu3 }
 0x3d3   : > { %v3991_v16 = vpop.f32.mrf.mxu1 }
 0x3da   : > { %v1091_v51 = vpop.f32.mrf.mxu3  ;;  %v1661_v49 = vpop.xlane.xlu0 %1660 }
 0x3db   : > { %v2604_v18 = vpack.i.bf16 %v1091_v51, %v1088_v46  ;;  %2765 = vrcp.f32 %v1661_v49  ;;  %v2050_v51 = vld [vmem:[#allocation13 + $0x78] sm:$0xff] }
 0x3dc   : > { %2055 = vmatpush.msra.mxu2 %v2050_v51 }
 0x3dd   : > { %2605 = vrot.lane.b32.xlu0 %v2604_v18, %s3100_s22  ;;  %v2048_v18 = vld [vmem:[#allocation13 + $0x68] sm:$0xff] }
 0x3df   : > { %v1667_v41 = vpop.xlane.xlu1 %1666 }
 0x3e1   : > { %v2766_v27 = vpop.eup %2765 }
 0x3e2   : > { %v1675_v31 = vmul.f32 %v2766_v27, %v3914_v6  ;;  %v3995_v59 = vpop.f32.mrf.mxu3  ;;  %v1512_v61 = vpop.xlane.xlu0 %1511  ;;  %v2047_v27 = vld [vmem:[#allocation13 + $0x60] sm:$0xff] }
 0x3e3   : > { %2767 = vrcp.f32 %v1512_v61  ;;  %v939_v56 = vpop.f32.mrf.mxu1  ;;  %v2044_v61 = vld [vmem:[#allocation13 + $0x48] sm:$0xff] }
 0x3e4   : > { %v2624_v52 = vpack.i.bf16 %v939_v56, %v3991_v16  ;;  %2380 = vmatmul.msk.f32.vlgmr.msra.gmra.mxu3 %vm694_vm1, %v1675_v31  ;;  %2769 = vrcp.f32 %v1819_v28  ;;  %v2049_v16 = vld [vmem:[#allocation13 + $0x70] sm:$0xff]  ;;  %v2046_v31 = vld [vmem:[#allocation13 + $0x58] sm:$0xff]  ;;  %v2043_v56 = vld [vmem:[#allocation13 + $0x40] sm:$0xff] }
 0x3e5   : > { %2056 = vmatpush.msra.mxu2 %v2049_v16 }
 0x3e6   : > { %v1822_v33 = vpop.xlane.xlu2 %1821 }
 0x3e7   : > { %2057 = vmatpush.msra.mxu2 %v2048_v18 }
 0x3e9   : > { %v2768_v21 = vpop.eup %2767  ;;  %2058 = vmatpush.msra.mxu2 %v2047_v27 }
 0x3ea   : > { %v3999_v35 = vpop.f32.mrf.mxu3  ;;  %v1664_v3 = vpop.xlane.xlu0 %1663  ;;  %v1520_v54 = vmul.f32 %v2768_v21, %v3928_v38  ;;  %v2041_v21 = vld [vmem:[#allocation13 + $0x30] sm:$0xff] }
 0x3eb   : > { %v2634_v8 = vpack.i.bf16 %v3999_v35, %v3995_v59  ;;  %2771 = vrcp.f32 %v1664_v3  ;;  %v1246_v6 = vpop.f32.mrf.mxu1  ;;  %v2770_v17 = vpop.eup %2769  ;;  %2059 = vmatpush.msra.mxu2 %v2046_v31  ;;  %v2045_v59 = vld [vmem:[#allocation13 + $0x50] sm:$0xff]  ;;  %v2040_v35 = vld [vmem:[#allocation13 + $0x28] sm:$0xff]  ;;  %v2039_v3 = vld [vmem:[#allocation13 + $0x20] sm:$0xff] }
 0x3ec   : > { %2371 = vmatmul.msk.f32.gmra.mxu1 %vm694_vm1, %v1520_v54  ;;  %2773 = vrcp.f32 %v1667_v41  ;;  %v1833_v44 = vmul.f32 %v2770_v17, %v3869_v10  ;;  %v2038_v54 = vld [vmem:[#allocation13 + $0x18] sm:$0xff]  ;;  %v2035_v41 = vld [vmem:[#allocation13] sm:$0xff] }
 0x3ed   : > { %2775 = vrcp.f32 %v1822_v33  ;;  %2060 = vmatpush.msra.mxu2 %v2045_v59 }
 0x3ef   : > { %2061 = vmatpush.msra.mxu2 %v2044_v61 }
 0x3f1   : > { %v2772_v23 = vpop.eup %2771  ;;  %2062 = vmatpush.msra.mxu2 %v2043_v56 }
 0x3f2   : > { %v1670_v62 = vpop.xlane.xlu0 %1669  ;;  %v1676_v0 = vmul.f32 %v2772_v23, %v3944_v39  ;;  %v2774_v1 = vpop.eup %2773 }
 0x3f3   : > { %v1249_v25 = vpop.f32.mrf.mxu1  ;;  %v2776_v34 = vpop.eup %2775  ;;  %2777 = vrcp.f32 %v1670_v62  ;;  %v1677_v57 = vmul.f32 %v2774_v1, %v3926_v5 }
 0x3f4   : > { %v2609_v38 = vpack.i.bf16 %v1249_v25, %v1246_v6  ;;  %2381 = vmatmul.msk.f32.gmra.mxu3 %vm694_vm1, %v1676_v0  ;;  %2392 = vmatmul.msk.f32.vlgmr.msra.gmra.mxu1 %vm694_vm1, %v1833_v44  ;;  %v1834_v2 = vmul.f32 %v2776_v34, %v3939_v37  ;;  %v1404_v55 = vpop.f32.mrf.mxu3  ;;  %v2036_v6 = vld [vmem:[#allocation13 + $0x8] sm:$0xff] }
 0x3f6   : > { %2610 = vrot.lane.b32.xlu1 %v2609_v38, %s3099_s14 }
 0x3f9   : > { %v2778_v10 = vpop.eup %2777 }
 0x3fa   : > { %v1825_v9 = vpop.xlane.xlu0 %1824  ;;  %v1678_v12 = vmul.f32 %v2778_v10, %v3952_v19 }
 0x3fb   : > { %2779 = vrcp.f32 %v1825_v9 }
 0x3fc   : > { %2382 = vmatmul.msk.f32.gmra.mxu3 %vm694_vm1, %v1677_v57  ;;  %2393 = vmatmul.msk.f32.gmra.mxu1 %vm694_vm1, %v1834_v2 }
 0x401   : > { %v2780_v39 = vpop.eup %2779 }
 0x402   : > { %v1828_v42 = vpop.xlane.xlu0 %1827  ;;  %v1835_v36 = vmul.f32 %v2780_v39, %v3958_v26 }
 0x403   : > { %2781 = vrcp.f32 %v1828_v42 }
 0x404   : > { %2383 = vmatmul.msk.f32.gmra.mxu3 %vm694_vm1, %v1678_v12  ;;  %2394 = vmatmul.msk.f32.gmra.mxu1 %vm694_vm1, %v1835_v36 }
 0x409   : > { %v2782_v5 = vpop.eup %2781  ;;  %v1407_v37 = vpop.f32.mrf.mxu3 }
 0x40a   : > { %v2614_v28 = vpack.i.bf16 %v1407_v37, %v1404_v55  ;;  %v1836_v43 = vmul.f32 %v2782_v5, %v3964_v58 }
 0x40b   : > { %v1252_v47 = vpop.f32.mrf.mxu1 }
 0x40c   : > { %2615 = vrot.lane.b32.xlu2 %v2614_v28, %s3098_s19  ;;  %2395 = vmatmul.msk.f32.gmra.mxu1 %vm694_vm1, %v1836_v43 }
 0x414   : > { %v1255_v48 = vpop.f32.mrf.mxu1 }
 0x415   : > { %v2644_v7 = vpack.i.bf16 %v1255_v48, %v1252_v47 }
 0x419   : > { %v1410_v22 = vpop.f32.mrf.mxu3 }
 0x421   : > { %v1413_v50 = vpop.f32.mrf.mxu3 }
 0x422   : > { %v2649_v53 = vpack.i.bf16 %v1413_v50, %v1410_v22 }
 0x423   : > { %v1562_v19 = vpop.f32.mrf.mxu1 }
 0x428   : > { %v2601_v33 = vpop.permute.xlu2 %2600 }
 0x429   : > { %v2602_v0 = vunpack.i.l.bf16 %v2601_v33  ;;  %v2603_v42 = vunpack.i.h.bf16 %v2601_v33 }
 0x42b   : > { %v2002_v34 = vsel %vm640_vm0, %v3978_v11, %v2602_v0  ;;  %v2003_v47 = vsel %vm640_vm0, %v3983_v60, %v2603_v42 }
 0x42c   : > { %v1565_v15 = vpop.f32.mrf.mxu1 }
 0x42d   : > { %v2619_v26 = vpack.i.bf16 %v1565_v15, %v1562_v19 }
 0x42f   : > { %2620 = vrot.lane.b32.xlu0 %v2619_v26, %s3097_s15 }
 0x434   : > { %v1568_v58 = vpop.f32.mrf.mxu1 }
 0x437   : > { %2625 = vrot.lane.b32.xlu0 %v2624_v52, %s3101_s3  ;;  %v2042_v52 = vld [vmem:[#allocation13 + $0x38] sm:$0xff] }
 0x438   : > { %2063 = vmatpush.msra.mxu2 %v2042_v52 }
 0x43a   : > { %2064 = vmatpush.msra.mxu2 %v2041_v21 }
 0x43c   : > { %2065 = vmatpush.msra.mxu2 %v2040_v35 }
 0x43e   : > { %2066 = vmatpush.msra.mxu2 %v2039_v3 }
 0x43f   : > { %2650 = vrot.lane.b32.xlu0 %v2649_v53, %s3098_s19 }
 0x440   : > { %2067 = vmatpush.msra.mxu2 %v2038_v54 }
 0x44f   : > { %v2606_v17 = vpop.permute.xlu0 %2605 }
 0x450   : > { %v2607_v25 = vunpack.i.l.bf16 %v2606_v17  ;;  %v2608_v12 = vunpack.i.h.bf16 %v2606_v17 }
 0x452   : > { %v2006_v9 = vsel %vm694_vm1, %v2002_v34, %v2607_v25  ;;  %v2007_v19 = vsel %vm694_vm1, %v2003_v47, %v2608_v12 }
 0x466   : > { %v2616_v23 = vpop.permute.xlu2 %2615 }
 0x467   : > { %v1720_v30 = vpop.f32.mrf.mxu3  ;;  %v2617_v39 = vunpack.i.l.bf16 %v2616_v23  ;;  %v2618_v50 = vunpack.i.h.bf16 %v2616_v23 }
 0x468   : > { %v2611_v62 = vpop.permute.xlu1 %2610 }
 0x469   : > { %v1571_v29 = vpop.f32.mrf.mxu1  ;;  %v2612_v38 = vunpack.i.l.bf16 %v2611_v62  ;;  %v2613_v37 = vunpack.i.h.bf16 %v2611_v62 }
 0x46b   : > { %v2011_v57 = vsel %vm2010_vm2, %v2006_v9, %v2612_v38  ;;  %v2012_v15 = vsel %vm2010_vm2, %v2007_v19, %v2613_v37 }
 0x46c   : > { %v2016_v36 = vsel %vm2015_vm3, %v2011_v57, %v2617_v39 }
 0x471   : > { %v1878_v4 = vpop.f32.mrf.mxu1 }
 0x477   : > { %v1723_v24 = vpop.f32.mrf.mxu3 }
 0x478   : > { %v2629_v20 = vpack.i.bf16 %v1723_v24, %v1720_v30  ;;  %v2017_v24 = vsel %vm2015_vm3, %v2012_v15, %v2618_v50 }
 0x479   : > { %v1881_v14 = vpop.f32.mrf.mxu1 }
 0x47a   : > { %v2639_v63 = vpack.i.bf16 %v1881_v14, %v1878_v4  ;;  %2630 = vrot.lane.b32.xlu2 %v2629_v20, %s3096_s13 }
 0x47c   : > { %2640 = vrot.lane.b32.xlu1 %v2639_v63, %s3095_s11 }
 0x47f   : > { %v1726_v45 = vpop.f32.mrf.mxu3 }
 0x481   : > { %v1884_v40 = vpop.f32.mrf.mxu1 }
 0x482   : > { %2635 = vrot.lane.b32.xlu2 %v2634_v8, %s3100_s22  ;;  %1994 = vrot.lane.b32.xlu0 %v1884_v40, %s3095_s11  ;;  %v2037_v8 = vld [vmem:[#allocation13 + $0x10] sm:$0xff] }
 0x483   : > { %2068 = vmatpush.msra.mxu2 %v2037_v8 }
 0x484   : > { %2645 = vrot.lane.b32.xlu1 %v2644_v7, %s3099_s14 }
 0x485   : > { %2069 = vmatpush.msra.mxu2 %v2036_v6 }
 0x487   : > { %v1729_v49 = vpop.f32.mrf.mxu3  ;;  %2070 = vmatpush.msra.mxu2 %v2035_v41 }
 0x489   : > { %v1887_v46 = vpop.f32.mrf.mxu1 }
 0x48a   : > { %1962 = vrot.lane.b32.xlu2 %v1568_v58, %s3097_s15  ;;  %1996 = vrot.lane.b32.xlu0 %v1887_v46, %s3095_s11 }
 0x48c   : > { %1978 = vrot.lane.b32.xlu1 %v1726_v45, %s3096_s13 }
 0x492   : > { %1964 = vrot.lane.b32.xlu2 %v1571_v29, %s3097_s15 }
 0x494   : > { %1980 = vrot.lane.b32.xlu1 %v1729_v49, %s3096_s13 }
 0x4a1   : > { %v2621_v44 = vpop.permute.xlu0 %2620 }
 0x4a2   : > { %v2622_v2 = vunpack.i.l.bf16 %v2621_v44  ;;  %v2623_v26 = vunpack.i.h.bf16 %v2621_v44  ;;  %v2654_v44 = vld [vmem:[%s4117_s7] ss:$0 sm:$0xff] }
 0x4a4   : > { %v2021_v11 = vsel %vm2020_vm4, %v2016_v36, %v2622_v2  ;;  %v2022_v14 = vsel %vm2020_vm4, %v2017_v24, %v2623_v26 }
 0x4a9   : > { %v2626_v10 = vpop.permute.xlu0 %2625 }
 0x4aa   : > { %v2627_v22 = vunpack.i.l.bf16 %v2626_v10  ;;  %v2628_v49 = vunpack.i.h.bf16 %v2626_v10 }
 0x4ac   : > { %v2004_v60 = vsel %vm640_vm0, %v3986_v13, %v2627_v22  ;;  %v2005_v59 = vsel %vm640_vm0, %v3988_v32, %v2628_v49 }
 0x4b1   : > { %v2651_v29 = vpop.permute.xlu0 %2650 }
 0x4b2   : > { %v2652_v45 = vunpack.i.l.bf16 %v2651_v29  ;;  %v2653_v54 = vunpack.i.h.bf16 %v2651_v29 }
 0x4d4   : > { %v2631_v1 = vpop.permute.xlu2 %2630 }
 0x4d5   : > { %v2632_v55 = vunpack.i.l.bf16 %v2631_v1  ;;  %v2633_v53 = vunpack.i.h.bf16 %v2631_v1 }
 0x4d7   : > { %v2026_v43 = vsel %vm2025_vm5, %v2021_v11, %v2632_v55  ;;  %v2027_v40 = vsel %vm2025_vm5, %v2022_v14, %v2633_v53 }
 0x4dc   : > { %v2636_v48 = vpop.permute.xlu2 %2635 }
 0x4dd   : > { %v2637_v58 = vunpack.i.l.bf16 %v2636_v48  ;;  %v2638_v16 = vunpack.i.h.bf16 %v2636_v48 }
 0x4df   : > { %v2008_v63 = vsel %vm694_vm1, %v2004_v60, %v2637_v58  ;;  %v2009_v52 = vsel %vm694_vm1, %v2005_v59, %v2638_v16 }
 0x4e4   : > { %v1963_v18 = vpop.permute.xlu2 %1962 }
 0x4ec   : > { %v1965_v6 = vpop.permute.xlu2 %1964 }
 0x4ee   : > { %v2641_v5 = vpop.permute.xlu1 %2640 }
 0x4ef   : > { %v2642_v28 = vunpack.i.l.bf16 %v2641_v5  ;;  %v2643_v30 = vunpack.i.h.bf16 %v2641_v5 }
 0x4f1   : > { %v2031_v7 = vsel %vm2030_vm6, %v2026_v43, %v2642_v28  ;;  %v2032_v51 = vsel %vm2030_vm6, %v2027_v40, %v2643_v30 }
 0x4f2   : > { %2071 = vmatmul.f32.vlgmr.msra.gmra.mxu2 %v2031_v7 }
 0x4f4   : > { %v1995_v13 = vpop.permute.xlu0 %1994 }
 0x4f6   : > { %v2646_v4 = vpop.permute.xlu1 %2645 }
 0x4f7   : > { %v2647_v20 = vunpack.i.l.bf16 %v2646_v4  ;;  %v2648_v31 = vunpack.i.h.bf16 %v2646_v4 }
 0x4f9   : > { %v2013_v46 = vsel %vm2010_vm2, %v2008_v63, %v2647_v20  ;;  %v2014_v35 = vsel %vm2010_vm2, %v2009_v52, %v2648_v31 }
 0x4fa   : > { %2074 = vmatmul.f32.gmra.mxu2 %v2032_v51  ;;  %v2018_v27 = vsel %vm2015_vm3, %v2013_v46, %v2652_v45  ;;  %v2019_v8 = vsel %vm2015_vm3, %v2014_v35, %v2653_v54 }
 0x4fb   : > { %v2023_v56 = vsel %vm2020_vm4, %v2018_v27, %v1963_v18  ;;  %v2024_v32 = vsel %vm2020_vm4, %v2019_v8, %v1965_v6 }
 0x4fc   : > { %v1997_v33 = vpop.permute.xlu0 %1996 }
 0x4fe   : > { %v1979_v61 = vpop.permute.xlu1 %1978 }
 0x4ff   : > { %v2028_v21 = vsel %vm2025_vm5, %v2023_v56, %v1979_v61 }
 0x500   : > { %v2033_v3 = vsel %vm2030_vm6, %v2028_v21, %v1995_v13 }
 0x502   : > { %2077 = vmatmul.f32.gmra.mxu2 %v2033_v3 }
 0x506   : > { %v1981_v41 = vpop.permute.xlu1 %1980 }
 0x507   : > { %v2029_v17 = vsel %vm2025_vm5, %v2024_v32, %v1981_v41 }
 0x508   : > { %v2034_v23 = vsel %vm2030_vm6, %v2029_v17, %v1997_v33 }
 0x50a   : > { %2080 = vmatmul.f32.gmra.mxu2 %v2034_v23 }
 0x575   : > { %v2072_v62 = vpop.f32.mrf.mxu2 }
 0x576   : > { %v2073_v0 = vadd.f32 %v2654_v44, %v2072_v62 }
 0x578   : > { %2084 = vst [vmem:[%s490_s27] sm:$0xff] %v2073_v0 }
 0x57d   : > { %v2075_v25 = vpop.f32.mrf.mxu2 }
 0x57e   : > { %v2076_v38 = vadd.f32 %v2654_v44, %v2075_v25 }
 0x580   : > { %2085 = vst [vmem:[%s490_s27 + $0x8] sm:$0xff] %v2076_v38 }
 0x585   : > { %v2078_v1 = vpop.f32.mrf.mxu2 }
 0x586   : > { %v2079_v34 = vadd.f32 %v2654_v44, %v2078_v1 }
 0x588   : > { %2086 = vst [vmem:[%s490_s27 + $0x10] sm:$0xff] %v2079_v34 }
 0x58d   : > { %v2081_v9 = vpop.f32.mrf.mxu2 }
 0x58e   : > { %v2082_v57 = vadd.f32 %v2654_v44, %v2081_v9 }
 0x590   : > { %2087 = vst [vmem:[%s490_s27 + $0x18] sm:$0xff] %v2082_v57 }
 0x591   : > { %3020 = shalt.err (!%p3017_p12)
}
 0x592   : > { %s3102_s1 = smov 128   ;;  %s3103_s13 = smov 8  }
 0x593   : > { %2427 = dma.vmem_to_hbm [thread:$0]  (%p3237_p5), %s2104_s16, 512, %s2106_s0, %s2089_s24, %s3102_s1, %s3102_s1, %s3103_s13  }
 0x594 PF: > { %s4155_s15 = sld [smem:[#allocation22_spill]] }
 0x595   : > { %s4156_s19 = sld [smem:[#allocation20_spill]] }
 0x59a   : > { %p2465_p13 = scmp.ge.s32.totalorder %s4155_s15, 2 }
 0x59b   : > { %s2120_s22 = sand.u32 1, %s4156_s19  }
 0x59c   : > { %p2453_p0 = pnand %p2465_p13, %p3194_p6  ;;  %s2121_s3 = scalar_lea.sflag [#allocation4], %s2120_s22 }
 0x59e   : > { %p2454_p3 = pneg %p2453_p0 }
 0x5a0   : > { %3062 = dma.done.wait (%p2454_p3), %s2121_s3, 512  }
 0x5a1   : > { %3064 = vsyncadd (%p2454_p3), %s2121_s3, 4294966784  ;;  %s29_s10 = sadd.s32 1, %s4155_s15   ;;  %s4158_s26 = sld [smem:[#allocation25_spill]] }
 0x5a2   : > { %p26_p7 = scmp.ge.s32.totalorder %s29_s10, 6   ;;  %s4159_s30 = sld [smem:[#allocation21_spill]] }
 0x5a3   : > { %s4160_s9 = sld [smem:[#allocation24_spill]]  ;;  %s4161_s27 = smov %s3071_s28 }
 0x5a4   : > { %s4162_s28 = smov %s3075_s29  ;;  %28 = sbr.rel (!%p26_p7) target bundleno = 16 (0x10), region = 137 }
 0x5a7   : > { %s4163_s29 = smov %s4158_s26 }
 0x5a9   :  { %2127 = vsyncpa [#allocation3], 1 }
 0x5aa   :  { %2129 = vsyncpa [#allocation3 + $0x1], 1 }
 0x5ab   :  { %2130 = vsyncpa [#allocation6], 1 }
 0x5ac   :  { %2132 = vsyncpa [#allocation6 + $0x1], 1 }
 0x5ad   :  { %2133 = vsyncpa [#allocation9], 1 }
 0x5ae   :  { %2134 = vsyncpa [#allocation12], 1 }
 0x5af   :  { %2135 = vsyncpa [#allocation4], 1 }
 0x5b0   :  { %2137 = vsyncpa [#allocation4 + $0x1], 1 }

// kernel: tpu_custom_call.1
= control target key start
LH: loop header
LB: loop body
LE: loop exit
PB: predicated region body
PF: predicated region fallthrough
CT: control target
= control target key end

     0   :  { %s4110_s0 = inlined_call_operand.hbm [shape: f32[4,32,128], index: 0, kind: input, shape index: {}]   ;;  %s4111_s1 = inlined_call_operand.hbm [shape: f32[4,32,128], index: 1, kind: input, shape index: {}]   ;;  %s4112_s2 = inlined_call_operand.hbm [shape: f32[4,32,128], index: 2, kind: input, shape index: {}]   ;;  %s4113_s3 = inlined_call_operand.hbm [shape: f32[128,128], index: 3, kind: input, shape index: {}]   ;;  %s4114_s4 = inlined_call_operand.hbm [shape: f32[128,128], index: 4, kind: input, shape index: {}]   ;;  %s4115_s5 = inlined_call_operand.hbm [shape: f32[128,128], index: 5, kind: input, shape index: {}]   ;;  %s4116_s6 = inlined_call_operand.hbm [shape: f32[128,128], index: 6, kind: input, shape index: {}]   ;;  %s4117_s7 = inlined_call_operand.vmem [shape: f32[1,128], index: 7, kind: input, shape index: {}]   ;;  %s4118_s8 = inlined_call_operand.hbm [shape: f32[4,32,128], index: 8, kind: output, shape index: {}]  }
   0x1   :  { %4130 = sst [smem:[#allocation26_spill]] %s4110_s0 }
   0x2   :  { %4131 = sst [smem:[#allocation27_spill]] %s4111_s1 }
   0x3   :  { %4132 = sst [smem:[#allocation28_spill]] %s4113_s3 }
   0x4   :  { %4133 = sst [smem:[#allocation29_spill]] %s4114_s4 }
   0x5   :  { %4134 = sst [smem:[#allocation30_spill]] %s4115_s5 }
   0x6   :  { %13 = vsyncpa [#allocation3], 0 }
   0x7   :  { %15 = vsyncpa [#allocation3 + $0x1], 0 }
   0x8   :  { %16 = vsyncpa [#allocation6], 0 }
   0x9   :  { %18 = vsyncpa [#allocation6 + $0x1], 0 }
   0xa   :  { %19 = vsyncpa [#allocation9], 0 }
   0xb   :  { %20 = vsyncpa [#allocation12], 0 }
   0xc   :  { %21 = vsyncpa [#allocation4], 0 }
   0xd   :  { %23 = vsyncpa [#allocation4 + $0x1], 0  ;;  %s3149_s27 = smov 0   ;;  %s3151_s28 = smov 0  }
   0xe   :  { %s3153_s29 = smov 0   ;;  %s3155_s30 = smov 0  }
   0xf   :  { %s3157_s9 = smov 0   ;;  %s3159_s10 = smov 0  }
  0x10 LB: > { %4135 = sst [smem:[#allocation20_spill]] %s3067_s27  ;;  %s3180_s11 = sadd.s32 4294967295, %s3087_s10   ;;  %s3087_s10 = sphi %s3159_s10, %s29_s10   ;;  %s3083_s9 = sphi %s3157_s9, %s4160_s9   ;;  %s3079_s30 = sphi %s3155_s30, %s4159_s30   ;;  %s3075_s29 = sphi %s3153_s29, %s4163_s29   ;;  %s3071_s28 = sphi %s3151_s28, %s4162_s28   ;;  %s3067_s27 = sphi %s3149_s27, %s4161_s27  }
  0x11   : > { %4136 = sst [smem:[#allocation21_spill]] %s3083_s9  ;;  %s2275_s12 = sadd.s32 4294967294, %s3087_s10  }
  0x12   : > { %4137 = sst [smem:[#allocation22_spill]] %s3087_s10  ;;  %p63_p0 = scmp.ne.s32.totalorder %s3071_s28, %s3067_s27 }
  0x13   : > { %p64_p1 = scmp.eq.s32.totalorder %s3180_s11, 0  ;;  %p246_p2 = scmp.eq.s32.totalorder %s3180_s11, 3 }
  0x14   : > { %p252_p3 = scmp.eq.s32.totalorder %s2275_s12, 3  ;;  %p2276_p5 = scmp.ge.s32.totalorder %s3087_s10, 1 }
  0x15   : > { %p3189_p4 = por %p64_p1, %p63_p0  ;;  %p259_p7 = scmp.lt.s32.totalorder %s3087_s10, 5 }
  0x16   : > { %p3194_p6 = por %p252_p3, %p63_p0  ;;  %s4141_s3 = sld [smem:[#allocation28_spill]] }
  0x17   : > { %p3202_p8 = pnand %p2276_p5, %p259_p7  ;;  %s3089_s19 = smov [#allocation8]  }
  0x18   : > { %s4139_s14 = scalar_select %p3194_p6, 1, 0 }
  0x19   : > { %p2429_p9 = pneg %p3202_p8  ;;  %s272_s20 = sshll.u32 %s3089_s19, 4  ;;  %s273_s20 = int_to_ptr.vmem [resolvable:$true] %s272_s20 }
  0x1a   : > { %4140 = sst [smem:[#allocation23_spill]] %s4139_s14  ;;  %s4119_s25 = smov 128  }
  0x1b   : > { %p3210_p10 = pnand %p2429_p9, %p64_p1  ;;  %s4144_s5 = sld [smem:[#allocation30_spill]] }
  0x1c   : > { %s270_s17 = sshll.u32 %s4141_s3, 4  ;;  %s4121_s26 = smov 8   ;;  %s271_s17 = int_to_ptr.hbm [resolvable:$true] %s270_s17 }
  0x1d   : > { %2432 = dma.hbm_to_vmem [thread:$0]  (!%p3210_p10), %s271_s17, 2048, %s273_s20, [#allocation9], %s4119_s25, %s4119_s25, %s4121_s26  }
  0x1e   : > { %s3092_s12 = smov [#allocation11]   ;;  %s41_s16 = sadd.s32 1, %s3083_s9 }
  0x1f   : > { %s300_s15 = sshll.u32 %s3092_s12, 4  ;;  %s50_s19 = sadd.s32 1, %s3075_s29  ;;  %s301_s15 = int_to_ptr.vmem [resolvable:$true] %s300_s15 }
  0x20   : > { %p43_p11 = scmp.ge.s32.totalorder %s41_s16, 4  ;;  %p57_p12 = scmp.ne.s32.totalorder %s3075_s29, %s3071_s28 }
  0x21   : > { %s298_s24 = sshll.u32 %s4144_s5, 4  ;;  %p58_p13 = scmp.eq.s32.totalorder %s3087_s10, 0  ;;  %s299_s24 = int_to_ptr.hbm [resolvable:$true] %s298_s24 }
  0x22   : > { %2438 = dma.hbm_to_vmem [thread:$0]  (!%p3210_p10), %s299_s24, 2048, %s301_s15, [#allocation12], %s4119_s25, %s4119_s25, %s4121_s26  }
  0x23   : > { %p2460_p0 = scmp.lt.s32.totalorder %s3087_s10, 4  ;;  %s4165_s16 = smov (%p43_p11, %s41_s16), 0 }
  0x24   : > { %4145 = sst [smem:[#allocation24_spill]] %s4165_s16  ;;  %p59_p3 = por %p58_p13, %p57_p12 }
  0x25   : > { %p3237_p5 = por %p246_p2, %p57_p12  ;;  %s45_s20 = ssub.s32 %s3083_s9, %s4165_s16 }
  0x26   : > { %s4123_s22 = sand.u32 1, %s3075_s29   ;;  %p48_p7 = scmp.eq.s32.totalorder %s45_s20, 0 }
  0x27   : > { %s3246_s23 = sshll.u32 %s4123_s22, 5  ;;  %s3249_s24 = sshll.u32 %s3083_s9, 5 }
  0x28   : > { %p3251_p9 = pnand %p2460_p0, %p59_p3  ;;  %s355_s25 = sand.u32 1, %s3087_s10  }
  0x29   : > { %s3256_s15 = scalar_select %p48_p7, %s3075_s29, %s50_s19  }
  0x2a   : > { %s4149_s1 = sld [smem:[#allocation27_spill]]  ;;  %s359_s5 = scalar_lea.vmem [#allocation5], %s3246_s23 }
  0x2b   : > { %4148 = sst [smem:[#allocation25_spill]] %s3256_s15  ;;  %s367_s22 = sshll.u32 %s359_s5, 4  ;;  %s368_s22 = int_to_ptr.vmem [resolvable:$true] %s367_s22 }
  0x2c   : > { %s4150_s4 = sld [smem:[#allocation29_spill]]  ;;  %s3267_s19 = scalar_lea.sflag [#allocation6], %s355_s25 }
  0x2d   : > { %s4151_s15 = smov 8   ;;  %s4152_s10 = smov 128  }
  0x2e   : > { %s3093_s3 = smov [#allocation10]   ;;  %s3094_s9 = smov [#allocation13]  }
  0x2f   : > { %s286_s5 = sshll.u32 %s3093_s3, 4  ;;  %s314_s14 = sshll.u32 %s3094_s9, 4  ;;  %s287_s5 = int_to_ptr.vmem [resolvable:$true] %s286_s5  ;;  %s315_s14 = int_to_ptr.vmem [resolvable:$true] %s314_s14 }
  0x30   : > { %s364_s20 = scalar_lea.hbm %s4149_s1, %s3249_s24  ;;  %s312_s1 = sshll.u32 %s4116_s6, 4  ;;  %s313_s1 = int_to_ptr.hbm [resolvable:$true] %s312_s1 }
  0x31   : > { %s365_s16 = sshll.u32 %s364_s20, 4  ;;  %s4153_s0 = sld [smem:[#allocation26_spill]]  ;;  %s366_s16 = int_to_ptr.hbm [resolvable:$true] %s365_s16 }
  0x32   : > { %s284_s27 = sshll.u32 %s4150_s4, 4  ;;  %s335_s26 = scalar_lea.vmem [#allocation2], %s3246_s23  ;;  %s285_s27 = int_to_ptr.hbm [resolvable:$true] %s284_s27 }
  0x33   : > { %2448 = dma.hbm_to_vmem [thread:$0]  (!%p3251_p9), %s366_s16, 512, %s368_s22, %s3267_s19, %s4152_s10, %s4152_s10, %s4151_s15  }
  0x34   : > { %2435 = dma.hbm_to_vmem [thread:$0]  (!%p3210_p10), %s285_s27, 2048, %s287_s5, [#allocation9], %s4152_s10, %s4152_s10, %s4151_s15  }
  0x35   : > { %2441 = dma.hbm_to_vmem [thread:$0]  (!%p3210_p10), %s313_s1, 2048, %s315_s14, [#allocation12], %s4152_s10, %s4152_s10, %s4151_s15  }
  0x36   : > { %s345_s20 = sshll.u32 %s335_s26, 4  ;;  %s4154_s27 = sand.u32 1, %s3075_s29   ;;  %s346_s20 = int_to_ptr.vmem [resolvable:$true] %s345_s20 }
  0x37   : > { %s342_s22 = scalar_lea.hbm %s4153_s0, %s3249_s24  ;;  %s332_s5 = scalar_lea.sflag [#allocation3], %s4154_s27 }
  0x38   : > { %s343_s3 = sshll.u32 %s342_s22, 4  ;;  %s386_s21 = scalar_lea.hbm %s4112_s2, %s3249_s24  ;;  %s344_s3 = int_to_ptr.hbm [resolvable:$true] %s343_s3 }
  0x39   : > { %2445 = dma.hbm_to_vmem [thread:$0]  (!%p3251_p9), %s344_s3, 512, %s346_s20, %s332_s5, %s4152_s10, %s4152_s10, %s4151_s15  }
  0x3a   : > { %s387_s16 = sshll.u32 %s386_s21, 4  ;;  %s381_s0 = scalar_lea.vmem [#allocation7], %s3246_s23  ;;  %s388_s16 = int_to_ptr.hbm [resolvable:$true] %s387_s16 }
  0x3b   : > { %s389_s4 = sshll.u32 %s381_s0, 4  ;;  %401 = sbr.rel (%p3202_p8) target bundleno = 1428 (0x594), region = 52  ;;  %s390_s4 = int_to_ptr.vmem [resolvable:$true] %s389_s4 }
  0x3c   : > { %2451 = dma.hbm_to_vmem [thread:$0]  (!%p3251_p9), %s388_s16, 512, %s390_s4, %s3267_s19, %s4152_s10, %s4152_s10, %s4151_s15  }
  0x3d   : > { %s3314_s1 = sand.u32 (!%p3202_p8), 1, %s3071_s28  }
  0x3e   : > { %s3317_s24 = sshll.u32 (!%p3202_p8), %s3314_s1, 5  ;;  %s404_s0 = scalar_lea.sflag (!%p3202_p8), [#allocation3], %s3314_s1 }
  0x3f   : > { %s3321_s23 = scalar_lea.vmem (!%p3202_p8), [#allocation2], %s3317_s24 }
  0x40   : > { %3046 = dma.done.wait (%p3189_p4), %s404_s0, 512  }
  0x41   : > { %3048 = vsyncadd (%p3189_p4), %s404_s0, 4294966784  ;;  %s413_s4 = sand.u32 1, %s3180_s11   ;;  %s3329_s18 = scalar_lea.vmem [#allocation5], %s3317_s24 }
  0x42   : > { %s414_s10 = scalar_lea.sflag [#allocation6], %s413_s4 }
  0x43   : > { %3050 = dma.done.wait (%p3189_p4), %s414_s10, 1024  }
  0x44   : > { %3052 = vsyncadd (%p3189_p4), %s414_s10, 4294966272  ;;  %s3336_s12 = scalar_lea.vmem [#allocation7], %s3317_s24 }
  0x45   : > { %3054 = dma.done.wait (%p64_p1), [#allocation9], 4096  }
  0x46   : > { %3056 = vsyncadd (%p64_p1), [#allocation9], 4294963200 }
  0x47   : > { %3058 = dma.done.wait (%p64_p1), [#allocation12], 4096  }
  0x48   : > { %3060 = vsyncadd (%p64_p1), [#allocation12], 4294963200  ;;  %v512_v0 = vld [vmem:[#allocation8 + $0x78] sm:$0xff]  ;;  %v511_v2 = vld [vmem:[#allocation8 + $0x70] sm:$0xff]  ;;  %s3095_s11 = smov 112   ;;  %s3096_s13 = smov 96  }
  0x49   : > { %v561_v1 = vld [vmem:[#allocation10 + $0x78] sm:$0xff]  ;;  %513 = vmatpush.msra.mxu0 %v512_v0  ;;  %v560_v3 = vld [vmem:[#allocation10 + $0x70] sm:$0xff]  ;;  %v510_v4 = vld [vmem:[#allocation8 + $0x68] sm:$0xff]  ;;  %s3097_s15 = smov 80   ;;  %s3098_s19 = smov 64   ;;  %vm640_vm0 = vcmask 130048  }
  0x4a   : > { %562 = vmatpush.msra.mxu1 %v561_v1  ;;  %v559_v5 = vld [vmem:[#allocation10 + $0x68] sm:$0xff]  ;;  %v509_v6 = vld [vmem:[#allocation8 + $0x60] sm:$0xff]  ;;  %v508_v8 = vld [vmem:[#allocation8 + $0x58] sm:$0xff]  ;;  %s3099_s14 = smov 48   ;;  %s3100_s22 = smov 32   ;;  %vm694_vm1 = vcmask 261120  }
  0x4b   : > { %514 = vmatpush.msra.mxu0 %v511_v2  ;;  %v558_v7 = vld [vmem:[#allocation10 + $0x60] sm:$0xff]  ;;  %v557_v9 = vld [vmem:[#allocation10 + $0x58] sm:$0xff]  ;;  %v507_v10 = vld [vmem:[#allocation8 + $0x50] sm:$0xff]  ;;  %s3101_s3 = smov 16   ;;  %vm2010_vm2 = vcmask 392192   ;;  %vm2015_vm3 = vcmask 523264  }
  0x4c   : > { %563 = vmatpush.msra.mxu1 %v560_v3  ;;  %v556_v11 = vld [vmem:[#allocation10 + $0x50] sm:$0xff]  ;;  %v506_v12 = vld [vmem:[#allocation8 + $0x48] sm:$0xff]  ;;  %v505_v14 = vld [vmem:[#allocation8 + $0x40] sm:$0xff]  ;;  %vm2020_vm4 = vcmask 654336   ;;  %vm2025_vm5 = vcmask 785408   ;;  %vm2030_vm6 = vcmask 916480  }
  0x4d   : > { %515 = vmatpush.msra.mxu0 %v510_v4  ;;  %v555_v13 = vld [vmem:[#allocation10 + $0x48] sm:$0xff]  ;;  %v554_v15 = vld [vmem:[#allocation10 + $0x40] sm:$0xff]  ;;  %v504_v16 = vld [vmem:[#allocation8 + $0x38] sm:$0xff]  ;;  %s490_s27 = scalar_lea.vmem [#allocation14], %s3317_s24  ;;  %s2404_s5 = sshll.u32 %s3079_s30, 5 }
  0x4e   : > { %564 = vmatpush.msra.mxu1 %v559_v5  ;;  %v553_v17 = vld [vmem:[#allocation10 + $0x38] sm:$0xff]  ;;  %v503_v18 = vld [vmem:[#allocation8 + $0x30] sm:$0xff]  ;;  %v502_v20 = vld [vmem:[#allocation8 + $0x28] sm:$0xff]  ;;  %s2102_s21 = scalar_lea.hbm %s4118_s8, %s2404_s5  ;;  %s2103_s16 = sshll.u32 %s490_s27, 4  ;;  %s2104_s16 = int_to_ptr.vmem [resolvable:$true] %s2103_s16 }
  0x4f   : > { %516 = vmatpush.msra.mxu0 %v509_v6  ;;  %v552_v19 = vld [vmem:[#allocation10 + $0x30] sm:$0xff]  ;;  %v551_v21 = vld [vmem:[#allocation10 + $0x28] sm:$0xff]  ;;  %v501_v22 = vld [vmem:[#allocation8 + $0x20] sm:$0xff]  ;;  %s2105_s0 = sshll.u32 %s2102_s21, 4  ;;  %s2089_s24 = scalar_lea.sflag [#allocation4], %s3314_s1  ;;  %s2106_s0 = int_to_ptr.hbm [resolvable:$true] %s2105_s0 }
  0x50   : > { %565 = vmatpush.msra.mxu1 %v558_v7  ;;  %v550_v23 = vld [vmem:[#allocation10 + $0x20] sm:$0xff]  ;;  %v500_v24 = vld [vmem:[#allocation8 + $0x18] sm:$0xff]  ;;  %v499_v26 = vld [vmem:[#allocation8 + $0x10] sm:$0xff] }
  0x51   : > { %517 = vmatpush.msra.mxu0 %v508_v8  ;;  %v549_v25 = vld [vmem:[#allocation10 + $0x18] sm:$0xff]  ;;  %v548_v27 = vld [vmem:[#allocation10 + $0x10] sm:$0xff]  ;;  %v498_v30 = vld [vmem:[#allocation8 + $0x8] sm:$0xff] }
  0x52   : > { %566 = vmatpush.msra.mxu1 %v557_v9  ;;  %v610_v28 = vld [vmem:[#allocation11 + $0x78] sm:$0xff]  ;;  %v609_v29 = vld [vmem:[#allocation11 + $0x70] sm:$0xff]  ;;  %v547_v31 = vld [vmem:[#allocation10 + $0x8] sm:$0xff] }
  0x53   : > { %518 = vmatpush.msra.mxu0 %v507_v10  ;;  %611 = vmatpush.msra.mxu2 %v610_v28  ;;  %v608_v32 = vld [vmem:[#allocation11 + $0x68] sm:$0xff]  ;;  %v497_v33 = vld [vmem:[#allocation8] sm:$0xff]  ;;  %v606_v38 = vld [vmem:[#allocation11 + $0x58] sm:$0xff] }
  0x54   : > { %567 = vmatpush.msra.mxu1 %v556_v11  ;;  %v546_v34 = vld [vmem:[#allocation10] sm:$0xff]  ;;  %v605_v39 = vld [vmem:[#allocation11 + $0x50] sm:$0xff]  ;;  %v604_v40 = vld [vmem:[#allocation11 + $0x48] sm:$0xff] }
  0x55   : > { %519 = vmatpush.msra.mxu0 %v506_v12  ;;  %612 = vmatpush.msra.mxu2 %v609_v29  ;;  %v493_v35 = vld [vmem:[%s3321_s23] sm:$0xff]  ;;  %v543_v41 = vld [vmem:[%s3329_s18 + $0x8] sm:$0xff]  ;;  %v602_v44 = vld [vmem:[#allocation11 + $0x38] sm:$0xff] }
  0x56   : > { %568 = vmatpush.msra.mxu1 %v555_v13  ;;  %v542_v36 = vld [vmem:[%s3329_s18] sm:$0xff]  ;;  %v494_v42 = vld [vmem:[%s3321_s23 + $0x8] sm:$0xff]  ;;  %v601_v45 = vld [vmem:[#allocation11 + $0x30] sm:$0xff] }
  0x57   : > { %520 = vmatpush.msra.mxu0 %v505_v14  ;;  %613 = vmatpush.msra.mxu2 %v608_v32  ;;  %v607_v37 = vld [vmem:[#allocation11 + $0x60] sm:$0xff]  ;;  %v600_v46 = vld [vmem:[#allocation11 + $0x28] sm:$0xff]  ;;  %v544_v47 = vld [vmem:[%s3329_s18 + $0x10] sm:$0xff] }
  0x58   : > { %569 = vmatpush.msra.mxu1 %v554_v15  ;;  %v603_v43 = vld [vmem:[#allocation11 + $0x40] sm:$0xff]  ;;  %v495_v48 = vld [vmem:[%s3321_s23 + $0x10] sm:$0xff]  ;;  %v598_v50 = vld [vmem:[#allocation11 + $0x18] sm:$0xff] }
  0x59   : > { %521 = vmatpush.msra.mxu0 %v504_v16  ;;  %614 = vmatpush.msra.mxu2 %v607_v37  ;;  %v599_v49 = vld [vmem:[#allocation11 + $0x20] sm:$0xff]  ;;  %v597_v51 = vld [vmem:[#allocation11 + $0x10] sm:$0xff]  ;;  %v596_v52 = vld [vmem:[#allocation11 + $0x8] sm:$0xff] }
  0x5a   : > { %570 = vmatpush.msra.mxu1 %v553_v17  ;;  %v545_v53 = vld [vmem:[%s3329_s18 + $0x18] sm:$0xff]  ;;  %v595_v55 = vld [vmem:[#allocation11] sm:$0xff]  ;;  %v592_v57 = vld [vmem:[%s3336_s12 + $0x8] sm:$0xff]  ;;  %s3013_s18 = scalar_lea.hbm %s4118_s8, 128 }
  0x5b   : > { %522 = vmatpush.msra.mxu0 %v503_v18  ;;  %615 = vmatpush.msra.mxu2 %v606_v38  ;;  %v496_v54 = vld [vmem:[%s3321_s23 + $0x18] sm:$0xff]  ;;  %v591_v56 = vld [vmem:[%s3336_s12] sm:$0xff]  ;;  %v593_v58 = vld [vmem:[%s3336_s12 + $0x10] sm:$0xff]  ;;  %s3007_s23 = sshra.s32 %s2106_s0, 4  ;;  %s3008_s23 = int_to_ptr.hbm [resolvable:$true] %s3007_s23 }
  0x5c   : > { %571 = vmatpush.msra.mxu1 %v552_v19  ;;  %v594_v59 = vld [vmem:[%s3336_s12 + $0x18] sm:$0xff]  ;;  %s3009_s4 = scalar_lea.hbm %s3008_s23, 32  ;;  %p3014_p8 = scmp.lt.s32.totalorder %s3008_s23, %s4118_s8 }
  0x5d   : > { %523 = vmatpush.msra.mxu0 %v502_v20  ;;  %616 = vmatpush.msra.mxu2 %v605_v39  ;;  %p3010_p1 = scmp.ne.s32.totalorder %s3008_s23, %s3009_s4  ;;  %p3015_p10 = scmp.lt.s32.totalorder %s3013_s18, %s3009_s4 }
  0x5e   : > { %572 = vmatpush.msra.mxu1 %v551_v21 }
  0x5f   : > { %524 = vmatpush.msra.mxu0 %v501_v22  ;;  %617 = vmatpush.msra.mxu2 %v604_v40  ;;  %p3011_p2 = pnand %p3010_p1, %p3237_p5  ;;  %p3016_p11 = por %p3015_p10, %p3014_p8 }
  0x60   : > { %573 = vmatpush.msra.mxu1 %v550_v23 }
  0x61   : > { %525 = vmatpush.msra.mxu0 %v500_v24  ;;  %618 = vmatpush.msra.mxu2 %v603_v43  ;;  %p3012_p4 = pneg %p3011_p2 }
  0x62   : > { %574 = vmatpush.msra.mxu1 %v549_v25 }
  0x63   : > { %526 = vmatpush.msra.mxu0 %v499_v26  ;;  %619 = vmatpush.msra.mxu2 %v602_v44  ;;  %p3017_p12 = pnand %p3016_p11, %p3012_p4 }
  0x64   : > { %575 = vmatpush.msra.mxu1 %v548_v27 }
  0x65   : > { %527 = vmatpush.msra.mxu0 %v498_v30  ;;  %620 = vmatpush.msra.mxu2 %v601_v45 }
  0x66   : > { %576 = vmatpush.msra.mxu1 %v547_v31 }
  0x67   : > { %528 = vmatpush.msra.mxu0 %v497_v33  ;;  %621 = vmatpush.msra.mxu2 %v600_v46 }
  0x68   : > { %577 = vmatpush.msra.mxu1 %v546_v34  ;;  %529 = vmatmul.f32.vlgmr.msra.gmra.mxu0 %v493_v35 }
  0x69   : > { %578 = vmatmul.f32.vlgmr.msra.gmra.mxu1 %v542_v36  ;;  %622 = vmatpush.msra.mxu2 %v599_v49 }
  0x6b   : > { %623 = vmatpush.msra.mxu2 %v598_v50 }
  0x6d   : > { %624 = vmatpush.msra.mxu2 %v597_v51 }
  0x6f   : > { %625 = vmatpush.msra.mxu2 %v596_v52 }
  0x70   : > { %532 = vmatmul.f32.gmra.mxu0 %v494_v42 }
  0x71   : > { %581 = vmatmul.f32.gmra.mxu1 %v543_v41  ;;  %626 = vmatpush.msra.mxu2 %v595_v55 }
  0x72   : > { %627 = vmatmul.f32.vlgmr.msra.gmra.mxu2 %v591_v56 }
  0x78   : > { %535 = vmatmul.f32.gmra.mxu0 %v495_v48 }
  0x79   : > { %584 = vmatmul.f32.gmra.mxu1 %v544_v47 }
  0x7a   : > { %630 = vmatmul.f32.gmra.mxu2 %v592_v57 }
  0x80   : > { %538 = vmatmul.f32.gmra.mxu0 %v496_v54 }
  0x81   : > { %587 = vmatmul.f32.gmra.mxu1 %v545_v53 }
  0x82   : > { %633 = vmatmul.f32.gmra.mxu2 %v593_v58 }
  0x8a   : > { %636 = vmatmul.f32.gmra.mxu2 %v594_v59 }
  0xe5   : > { %v530_v60 = vpop.f32.mrf.mxu0 }
  0xe6   : > { %v579_v61 = vpop.f32.mrf.mxu1  ;;  %942 = vrot.lane.b32.xlu0 %v530_v60, %s3096_s13  ;;  %780 = vrot.lane.b32.xlu2 %v530_v60, %s3095_s11 }
  0xe7   : > { %788 = vrot.lane.b32.xlu1 %v579_v61, %s3095_s11 }
  0xed   : > { %v533_v1 = vpop.f32.mrf.mxu0 }
  0xee   : > { %v582_v62 = vpop.f32.mrf.mxu1  ;;  %1100 = vrot.lane.b32.xlu0 %v530_v60, %s3097_s15  ;;  %1108 = vrot.lane.b32.xlu2 %v579_v61, %s3097_s15 }
  0xef   : > { %950 = vrot.lane.b32.xlu1 %v579_v61, %s3096_s13 }
  0xf5   : > { %v628_v2 = vpop.f32.mrf.mxu2  ;;  %v536_v4 = vpop.f32.mrf.mxu0 }
  0xf6   : > { %v585_v63 = vpop.f32.mrf.mxu1  ;;  %1424 = vrot.lane.b32.xlu0 %v579_v61, %s3099_s14  ;;  %1266 = vrot.lane.b32.xlu2 %v579_v61, %s3098_s19 }
  0xf7   : > { %1258 = vrot.lane.b32.xlu1 %v530_v60, %s3098_s19 }
  0xfd   : > { %v631_v3 = vpop.f32.mrf.mxu2  ;;  %v539_v7 = vpop.f32.mrf.mxu0 }
  0xfe   : > { %v3367_v0 = vpop.f32.mrf.mxu1  ;;  %1582 = vrot.lane.b32.xlu0 %v579_v61, %s3100_s22  ;;  %1574 = vrot.lane.b32.xlu2 %v530_v60, %s3100_s22  ;;  %v3399_v8 = vpack.i.bf16 %v628_v2, %v631_v3 }
  0xff   : > { %2300 = vmatpush.xpose.msk.msra.mxu3 %vm640_vm0, %v3367_v0  ;;  %1416 = vrot.lane.b32.xlu1 %v530_v60, %s3099_s14 }
 0x103   : > { %2301 = vmatpush.xpose.msk.msra.mxu3 %vm640_vm0, %v585_v63 }
 0x105   : > { %v634_v5 = vpop.f32.mrf.mxu2 }
 0x106   : > { %1732 = vrot.lane.b32.xlu2 %v530_v60, %s3101_s3  ;;  %782 = vrot.lane.b32.xlu0 %v533_v1, %s3095_s11 }
 0x107   : > { %2302 = vmatpush.xpose.msk.msra.mxu3 %vm640_vm0, %v582_v62  ;;  %1740 = vrot.lane.b32.xlu1 %v579_v61, %s3101_s3 }
 0x10b   : > { %2303 = vmatpush.xpose.msk.msra.mxu3 %vm640_vm0, %v579_v61 }
 0x10d   : > { %v637_v6 = vpop.f32.mrf.mxu2 }
 0x10e   : > { %2304 = vmatmul.msk.f32.vlgmr.msra.gmra.mxu3 %vm640_vm0, %v530_v60  ;;  %952 = vrot.lane.b32.xlu2 %v582_v62, %s3096_s13  ;;  %v3470_v27 = vpack.i.bf16 %v634_v5, %v637_v6 }
 0x10f   : > { %790 = vrot.lane.b32.xlu1 %v582_v62, %s3095_s11  ;;  %1110 = vrot.lane.b32.xlu0 %v582_v62, %s3097_s15 }
 0x110   : > { %763 = vmatpush.msrb.mxu3 %v637_v6 }
 0x112   : > { %764 = vmatpush.msrb.mxu3 %v634_v5 }
 0x114   : > { %765 = vmatpush.msrb.mxu3 %v631_v3 }
 0x116   : > { %2305 = vmatmul.msk.f32.gmra.mxu3 %vm640_vm0, %v533_v1  ;;  %1260 = vrot.lane.b32.xlu2 %v533_v1, %s3098_s19 }
 0x117   : > { %944 = vrot.lane.b32.xlu1 %v533_v1, %s3096_s13  ;;  %1102 = vrot.lane.b32.xlu0 %v533_v1, %s3097_s15 }
 0x118   : > { %766 = vmatpush.msrb.mxu3 %v628_v2 }
 0x11e   : > { %2306 = vmatmul.msk.f32.gmra.mxu3 %vm640_vm0, %v536_v4  ;;  %1742 = vrot.lane.b32.xlu2 %v582_v62, %s3101_s3 }
 0x11f   : > { %1426 = vrot.lane.b32.xlu1 %v582_v62, %s3099_s14  ;;  %1268 = vrot.lane.b32.xlu0 %v582_v62, %s3098_s19 }
 0x126   : > { %1428 = vrot.lane.b32.xlu2 %v585_v63, %s3099_s14  ;;  %2307 = vmatmul.msk.f32.gmra.mxu3 %vm640_vm0, %v539_v7 }
 0x127   : > { %1418 = vrot.lane.b32.xlu1 %v533_v1, %s3099_s14  ;;  %1576 = vrot.lane.b32.xlu0 %v533_v1, %s3100_s22 }
 0x12e   : > { %1262 = vrot.lane.b32.xlu2 %v536_v4, %s3098_s19 }
 0x12f   : > { %1584 = vrot.lane.b32.xlu1 %v582_v62, %s3100_s22  ;;  %792 = vrot.lane.b32.xlu0 %v585_v63, %s3095_s11 }
 0x136   : > { %1586 = vrot.lane.b32.xlu2 %v585_v63, %s3100_s22 }
 0x137   : > { %954 = vrot.lane.b32.xlu1 %v585_v63, %s3096_s13  ;;  %784 = vrot.lane.b32.xlu0 %v536_v4, %s3095_s11 }
 0x13e   : > { %1420 = vrot.lane.b32.xlu2 %v536_v4, %s3099_s14 }
 0x13f   : > { %1112 = vrot.lane.b32.xlu1 %v585_v63, %s3097_s15  ;;  %1744 = vrot.lane.b32.xlu0 %v585_v63, %s3101_s3 }
 0x140   : > { %v3407_v9 = vpop.permute.xlu2 %780 }
 0x146   : > { %2530 = vrot.lane.b32.xlu2 %v3399_v8, %s3095_s11 }
 0x147   : > { %946 = vrot.lane.b32.xlu1 %v536_v4, %s3096_s13  ;;  %794 = vrot.lane.b32.xlu0 %v3367_v0, %s3095_s11 }
 0x148   : > { %v3414_v10 = vpop.permute.xlu2 %1108 }
 0x14e   : > { %956 = vrot.lane.b32.xlu2 %v3367_v0, %s3096_s13 }
 0x14f   : > { %1270 = vrot.lane.b32.xlu1 %v585_v63, %s3098_s19  ;;  %1578 = vrot.lane.b32.xlu0 %v536_v4, %s3100_s22 }
 0x150   : > { %v3420_v11 = vpop.permute.xlu2 %1266 }
 0x156   : > { %1114 = vrot.lane.b32.xlu2 %v3367_v0, %s3097_s15 }
 0x157   : > { %1104 = vrot.lane.b32.xlu1 %v536_v4, %s3097_s15  ;;  %1736 = vrot.lane.b32.xlu0 %v536_v4, %s3101_s3 }
 0x158   : > { %v3428_v13 = vpop.permute.xlu0 %942  ;;  %v3430_v14 = vpop.permute.xlu2 %1574 }
 0x159   : > { %v3426_v12 = vpop.permute.xlu1 %788 }
 0x15e   : > { %786 = vrot.lane.b32.xlu2 %v539_v7, %s3095_s11 }
 0x15f   : > { %1734 = vrot.lane.b32.xlu1 %v533_v1, %s3101_s3  ;;  %2540 = vrot.lane.b32.xlu0 %v3399_v8, %s3097_s15 }
 0x160   : > { %v3436_v16 = vpop.permute.xlu0 %1100  ;;  %v3438_v17 = vpop.permute.xlu2 %1732 }
 0x161   : > { %v951_v15 = vpop.permute.xlu1 %950 }
 0x166   : > { %1272 = vrot.lane.b32.xlu2 %v3367_v0, %s3098_s19 }
 0x167   : > { %2535 = vrot.lane.b32.xlu1 %v3399_v8, %s3096_s13  ;;  %1430 = vrot.lane.b32.xlu0 %v3367_v0, %s3099_s14 }
 0x168   : > { %v3448_v19 = vpop.permute.xlu0 %1424  ;;  %v953_v20 = vpop.permute.xlu2 %952 }
 0x169   : > { %v3446_v18 = vpop.permute.xlu1 %1258 }
 0x16e   : > { %948 = vrot.lane.b32.xlu2 %v539_v7, %s3096_s13 }
 0x16f   : > { %1746 = vrot.lane.b32.xlu1 %v3367_v0, %s3101_s3  ;;  %1106 = vrot.lane.b32.xlu0 %v539_v7, %s3097_s15 }
 0x170   : > { %v3456_v22 = vpop.permute.xlu0 %1582  ;;  %v3458_v23 = vpop.permute.xlu2 %1260 }
 0x171   : > { %v3454_v21 = vpop.permute.xlu1 %1416 }
 0x176   : > { %1580 = vrot.lane.b32.xlu2 %v539_v7, %s3100_s22 }
 0x177   : > { %1422 = vrot.lane.b32.xlu1 %v539_v7, %s3099_s14  ;;  %1588 = vrot.lane.b32.xlu0 %v3367_v0, %s3100_s22 }
 0x178   : > { %v3466_v25 = vpop.permute.xlu2 %1742  ;;  %v3468_v26 = vpop.permute.xlu0 %782 }
 0x179   : > { %v3464_v24 = vpop.permute.xlu1 %1740 }
 0x17e   : > { %2555 = vrot.lane.b32.xlu2 %v3470_v27, %s3097_s15 }
 0x17f   : > { %1738 = vrot.lane.b32.xlu1 %v539_v7, %s3101_s3  ;;  %1264 = vrot.lane.b32.xlu0 %v539_v7, %s3098_s19 }
 0x180   : > { %v3476_v29 = vpop.permute.xlu2 %1428 }
 0x181   : > { %v791_v28 = vpop.permute.xlu1 %790  ;;  %v3478_v30 = vpop.permute.xlu0 %1110 }
 0x186   : > { %2565 = vrot.lane.b32.xlu2 %v3399_v8, %s3098_s19 }
 0x187   : > { %2545 = vrot.lane.b32.xlu1 %v3470_v27, %s3095_s11  ;;  %2550 = vrot.lane.b32.xlu0 %v3470_v27, %s3096_s13 }
 0x188   : > { %v3488_v33 = vpop.permute.xlu2 %1262 }
 0x189   : > { %v945_v31 = vpop.permute.xlu1 %944  ;;  %v3486_v32 = vpop.permute.xlu0 %1102 }
 0x18f   : > { %2560 = vrot.lane.b32.xlu1 %v3470_v27, %s3098_s19 }
 0x190   : > { %v3494_v36 = vpop.permute.xlu2 %1586 }
 0x191   : > { %v3492_v34 = vpop.permute.xlu1 %1426  ;;  %v1269_v35 = vpop.permute.xlu0 %1268 }
 0x192   : > { %v3506_v40 = vpop.f32.mrf.mxu3 }
 0x193   : > { %v695_v48 = vsel %vm694_vm1, %v3506_v40, -inf }
 0x197   : > { %2570 = vrot.lane.b32.xlu1 %v3470_v27, %s3099_s14 }
 0x198   : > { %v3502_v39 = vpop.permute.xlu2 %1420 }
 0x199   : > { %v3498_v37 = vpop.permute.xlu1 %1418  ;;  %v3500_v38 = vpop.permute.xlu0 %1576 }
 0x19a   : > { %v3512_v47 = vpop.f32.mrf.mxu3 }
 0x19b   : > { %v698_v60 = vsel %vm694_vm1, %v3512_v47, -inf }
 0x19f   : > { %2575 = vrot.lane.b32.xlu1 %v3399_v8, %s3099_s14 }
 0x1a0   : > { %v3510_v43 = vpop.permute.xlu2 %2530 }
 0x1a1   : > { %v3508_v41 = vpop.permute.xlu1 %1584  ;;  %v793_v42 = vpop.permute.xlu0 %792 }
 0x1a2   : > { %v3519_v52 = vpop.f32.mrf.mxu3 }
 0x1a3   : > { %v701_v53 = vsel %vm694_vm1, %v3519_v52, -inf }
 0x1a8   : > { %v957_v45 = vpop.permute.xlu2 %956 }
 0x1a9   : > { %v955_v44 = vpop.permute.xlu1 %954  ;;  %v785_v46 = vpop.permute.xlu0 %784  ;;  %2324 = vmatpush.xpose.msk.msrb.mxu2 %vm640_vm0, %v957_v45 }
 0x1aa   : > { %v3545_v63 = vpop.f32.mrf.mxu3 }
 0x1ab   : > { %v704_v0 = vsel %vm694_vm1, %v3545_v63, -inf }
 0x1ad   : > { %2325 = vmatpush.xpose.msk.msrb.mxu2 %vm640_vm0, %v955_v44 }
 0x1af   : > { %696 = vmax.xlane.f32.xlu2 %v695_v48 }
 0x1b0   : > { %v1115_v50 = vpop.permute.xlu2 %1114 }
 0x1b1   : > { %v1113_v49 = vpop.permute.xlu1 %1112  ;;  %v1745_v51 = vpop.permute.xlu0 %1744  ;;  %2326 = vmatpush.xpose.msk.msrb.mxu2 %vm640_vm0, %v953_v20 }
 0x1b5   : > { %2327 = vmatpush.xpose.msk.msrb.mxu2 %vm640_vm0, %v951_v15 }
 0x1b7   : > { %702 = vmax.xlane.f32.xlu2 %v701_v53 }
 0x1b8   : > { %2328 = vmatmul.msk.f32.vlgmr.msrb.gmra.mxu2 %vm640_vm0, %v3428_v13  ;;  %v787_v56 = vpop.permute.xlu2 %786 }
 0x1b9   : > { %v947_v54 = vpop.permute.xlu1 %946  ;;  %v795_v55 = vpop.permute.xlu0 %794 }
 0x1ba   : > { %2312 = vmatpush.xpose.msk.msrb.mxu0 %vm640_vm0, %v795_v55 }
 0x1be   : > { %2313 = vmatpush.xpose.msk.msrb.mxu0 %vm640_vm0, %v793_v42 }
 0x1c0   : > { %2329 = vmatmul.msk.f32.gmra.mxu2 %vm640_vm0, %v945_v31  ;;  %v1273_v59 = vpop.permute.xlu2 %1272 }
 0x1c1   : > { %v1271_v57 = vpop.permute.xlu1 %1270  ;;  %v3529_v58 = vpop.permute.xlu0 %1578  ;;  %2348 = vmatpush.xpose.msk.msra.mxu2 %vm640_vm0, %v1273_v59 }
 0x1c2   : > { %2314 = vmatpush.xpose.msk.msrb.mxu0 %vm640_vm0, %v791_v28 }
 0x1c5   : > { %2349 = vmatpush.xpose.msk.msra.mxu2 %vm640_vm0, %v1271_v57 }
 0x1c6   : > { %2315 = vmatpush.xpose.msk.msrb.mxu0 %vm640_vm0, %v3426_v12 }
 0x1c8   : > { %2330 = vmatmul.msk.f32.gmra.mxu2 %vm640_vm0, %v947_v54  ;;  %v949_v1 = vpop.permute.xlu2 %948 }
 0x1c9   : > { %v1105_v61 = vpop.permute.xlu1 %1104  ;;  %699 = vmax.xlane.f32.xlu1 %v698_v60  ;;  %2316 = vmatmul.msk.f32.vlgmr.msrb.gmra.mxu0 %vm640_vm0, %v3407_v9  ;;  %v3542_v62 = vpop.permute.xlu0 %1736 }
 0x1ca   : > { %2336 = vmatpush.xpose.msk.msra.mxu0 %vm640_vm0, %v1115_v50  ;;  %2350 = vmatpush.xpose.msk.msra.mxu2 %vm640_vm0, %v1269_v35 }
 0x1ce   : > { %2337 = vmatpush.xpose.msk.msra.mxu0 %vm640_vm0, %v1113_v49  ;;  %2351 = vmatpush.xpose.msk.msra.mxu2 %vm640_vm0, %v3420_v11 }
 0x1d0   : > { %2331 = vmatmul.msk.f32.gmra.mxu2 %vm640_vm0, %v949_v1  ;;  %v1581_v13 = vpop.permute.xlu2 %1580 }
 0x1d1   : > { %v3554_v2 = vpop.permute.xlu1 %1734  ;;  %705 = vmax.xlane.f32.xlu1 %v704_v0  ;;  %2317 = vmatmul.msk.f32.gmra.mxu0 %vm640_vm0, %v3468_v26  ;;  %v2541_v3 = vpop.permute.xlu0 %2540 }
 0x1d2   : > { %2338 = vmatpush.xpose.msk.msra.mxu0 %vm640_vm0, %v3478_v30  ;;  %v2542_v30 = vunpack.i.l.bf16 %v2541_v3  ;;  %v2543_v31 = vunpack.i.h.bf16 %v2541_v3 }
 0x1d6   : > { %2339 = vmatpush.xpose.msk.msra.mxu0 %vm640_vm0, %v3414_v10 }
 0x1d8   : > { %2352 = vmatmul.msk.f32.vlgmr.msra.gmra.mxu2 %vm640_vm0, %v3446_v18  ;;  %v2556_v28 = vpop.permute.xlu2 %2555 }
 0x1d9   : > { %v2536_v4 = vpop.permute.xlu1 %2535  ;;  %2318 = vmatmul.msk.f32.gmra.mxu0 %vm640_vm0, %v785_v46  ;;  %v1431_v5 = vpop.permute.xlu0 %1430 }
 0x1da   : > { %2360 = vmatpush.xpose.msk.msrb.mxu0 %vm640_vm0, %v1431_v5  ;;  %v2538_v26 = vunpack.i.h.bf16 %v2536_v4 }
 0x1de   : > { %2361 = vmatpush.xpose.msk.msrb.mxu0 %vm640_vm0, %v3476_v29  ;;  %v2557_v29 = vunpack.i.l.bf16 %v2556_v28 }
 0x1e0   : > { %2353 = vmatmul.msk.f32.gmra.mxu2 %vm640_vm0, %v3458_v23 }
 0x1e1   : > { %v1747_v6 = vpop.permute.xlu1 %1746  ;;  %v1107_v7 = vpop.permute.xlu0 %1106  ;;  %2319 = vmatmul.msk.f32.gmra.mxu0 %vm640_vm0, %v787_v56 }
 0x1e2   : > { %2362 = vmatpush.xpose.msk.msrb.mxu0 %vm640_vm0, %v3492_v34  ;;  %v3624_v34 = vpop.permute.xlu2 %2565 }
 0x1e6   : > { %2363 = vmatpush.xpose.msk.msrb.mxu0 %vm640_vm0, %v3448_v19 }
 0x1e8   : > { %2354 = vmatmul.msk.f32.gmra.mxu2 %vm640_vm0, %v3488_v33 }
 0x1e9   : > { %v1423_v9 = vpop.permute.xlu1 %1422  ;;  %v1589_v10 = vpop.permute.xlu0 %1588  ;;  %2340 = vmatmul.msk.f32.vlgmr.msra.gmra.mxu0 %vm640_vm0, %v3436_v16 }
 0x1ea   : > { %2384 = vmatpush.xpose.msk.msra.mxu0 %vm640_vm0, %v1747_v6  ;;  %2372 = vmatpush.xpose.msk.msrb.mxu2 %vm640_vm0, %v1589_v10 }
 0x1ee   : > { %2385 = vmatpush.xpose.msk.msra.mxu0 %vm640_vm0, %v1745_v51  ;;  %2373 = vmatpush.xpose.msk.msrb.mxu2 %vm640_vm0, %v3494_v36 }
 0x1f1   : > { %v1739_v11 = vpop.permute.xlu1 %1738  ;;  %v1265_v12 = vpop.permute.xlu0 %1264  ;;  %2341 = vmatmul.msk.f32.gmra.mxu0 %vm640_vm0, %v3486_v32 }
 0x1f2   : > { %2386 = vmatpush.xpose.msk.msra.mxu0 %vm640_vm0, %v3466_v25  ;;  %2355 = vmatmul.msk.f32.gmra.mxu2 %vm640_vm0, %v1265_v12  ;;  %v2532_v25 = vunpack.i.l.bf16 %v3510_v43 }
 0x1f3   : > { %2374 = vmatpush.xpose.msk.msrb.mxu2 %vm640_vm0, %v3508_v41 }
 0x1f6   : > { %2387 = vmatpush.xpose.msk.msra.mxu0 %vm640_vm0, %v3464_v24  ;;  %v2537_v24 = vunpack.i.l.bf16 %v2536_v4 }
 0x1f7   : > { %2375 = vmatpush.xpose.msk.msrb.mxu2 %vm640_vm0, %v3456_v22  ;;  %v2533_v22 = vunpack.i.h.bf16 %v3510_v43 }
 0x1f9   : > { %v2546_v15 = vpop.permute.xlu1 %2545  ;;  %v2551_v16 = vpop.permute.xlu0 %2550  ;;  %2342 = vmatmul.msk.f32.gmra.mxu0 %vm640_vm0, %v1105_v61 }
 0x1fa   : > { %v2547_v18 = vunpack.i.l.bf16 %v2546_v15  ;;  %v2548_v19 = vunpack.i.h.bf16 %v2546_v15  ;;  %v2553_v20 = vunpack.i.h.bf16 %v2551_v16  ;;  %v2552_v23 = vunpack.i.l.bf16 %v2551_v16  ;;  %2376 = vmatmul.msk.f32.vlgmr.msrb.gmra.mxu2 %vm640_vm0, %v3430_v14 }
 0x1fb   : > { %v2558_v14 = vunpack.i.h.bf16 %v2556_v28 }
 0x1fc   : > { %925 = vmatpush.msrb.mxu1 %v2547_v18  ;;  %1083 = vmatpush.msra.mxu3 %v2552_v23 }
 0x1fe   : > { %926 = vmatpush.msrb.mxu1 %v2548_v19  ;;  %1084 = vmatpush.msra.mxu3 %v2553_v20 }
 0x200   : > { %927 = vmatpush.msrb.mxu1 %v2532_v25  ;;  %1085 = vmatpush.msra.mxu3 %v2537_v24 }
 0x201   : > { %2343 = vmatmul.msk.f32.gmra.mxu0 %vm640_vm0, %v1107_v7  ;;  %v3614_v32 = vpop.permute.xlu1 %2560 }
 0x202   : > { %928 = vmatpush.msrb.mxu1 %v2533_v22  ;;  %1086 = vmatpush.msra.mxu3 %v2538_v26 }
 0x203   : > { %2377 = vmatmul.msk.f32.gmra.mxu2 %vm640_vm0, %v3500_v38 }
 0x204   : > { %1241 = vmatpush.msra.mxu1 %v2557_v29 }
 0x206   : > { %1242 = vmatpush.msra.mxu1 %v2558_v14 }
 0x208   : > { %1243 = vmatpush.msra.mxu1 %v2542_v30 }
 0x209   : > { %2364 = vmatmul.msk.f32.vlgmr.msrb.gmra.mxu0 %vm640_vm0, %v3454_v21  ;;  %v3618_v21 = vpop.permute.xlu1 %2570 }
 0x20a   : > { %1244 = vmatpush.msra.mxu1 %v2543_v31 }
 0x20b   : > { %2378 = vmatmul.msk.f32.gmra.mxu2 %vm640_vm0, %v3529_v58 }
 0x211   : > { %2365 = vmatmul.msk.f32.gmra.mxu0 %vm640_vm0, %v3498_v37  ;;  %v3627_v35 = vpop.permute.xlu1 %2575 }
 0x213   : > { %2379 = vmatmul.msk.f32.gmra.mxu2 %vm640_vm0, %v1581_v13 }
 0x219   : > { %2366 = vmatmul.msk.f32.gmra.mxu0 %vm640_vm0, %v3502_v39 }
 0x221   : > { %2367 = vmatmul.msk.f32.gmra.mxu0 %vm640_vm0, %v1423_v9 }
 0x222   : > { %v697_v38 = vpop.xlane.xlu2 %696 }
 0x223   : > { %v707_v42 = vsub.f32 %v3506_v40, %v697_v38 }
 0x225   : > { %v711_v49 = vmul.f32 1.442695, %v707_v42 }
 0x227   : > { %2655 = vpow2.f32 %v711_v49 }
 0x229   : > { %2388 = vmatmul.msk.f32.vlgmr.msra.gmra.mxu0 %vm640_vm0, %v3438_v17 }
 0x22a   : > { %v703_v51 = vpop.xlane.xlu2 %702 }
 0x22b   : > { %v709_v53 = vsub.f32 %v3519_v52, %v703_v51 }
 0x22d   : > { %v715_v57 = vmul.f32 1.442695, %v709_v53  ;;  %v3658_v58 = vpop.eup %2655 }
 0x22e   : > { %v719_v61 = vsel %vm694_vm1, %v3658_v58, 0.0 }
 0x231   : > { %2389 = vmatmul.msk.f32.gmra.mxu0 %vm640_vm0, %v3554_v2 }
 0x239   : > { %2390 = vmatmul.msk.f32.gmra.mxu0 %vm640_vm0, %v3542_v62 }
 0x23b   : > { %v3622_v33 = vpop.f32.mrf.mxu2 }
 0x23c   : > { %v700_v39 = vpop.xlane.xlu1 %699  ;;  %v1003_v46 = vsel %vm694_vm1, %v3622_v33, -inf }
 0x23d   : > { %v708_v44 = vsub.f32 %v3512_v47, %v700_v39 }
 0x23f   : > { %v713_v50 = vmul.f32 1.442695, %v708_v44 }
 0x241   : > { %2391 = vmatmul.msk.f32.gmra.mxu0 %vm640_vm0, %v1739_v11  ;;  %2657 = vpow2.f32 %v713_v50 }
 0x242   : > { %2659 = vpow2.f32 %v715_v57 }
 0x243   : > { %v3629_v36 = vpop.f32.mrf.mxu2 }
 0x244   : > { %v1006_v55 = vsel %vm694_vm1, %v3629_v36, -inf  ;;  %v706_v6 = vpop.xlane.xlu1 %705 }
 0x245   : > { %v710_v7 = vsub.f32 %v3545_v63, %v706_v6 }
 0x246   : > { %v3631_v17 = vpop.f32.mrf.mxu0 }
 0x247   : > { %v841_v37 = vsel %vm694_vm1, %v3631_v17, -inf  ;;  %v3660_v59 = vpop.eup %2657  ;;  %v717_v11 = vmul.f32 1.442695, %v710_v7 }
 0x248   : > { %842 = vmax.xlane.f32.xlu0 %v841_v37  ;;  %v722_v62 = vsel %vm694_vm1, %v3660_v59, 0.0  ;;  %v3670_v0 = vpop.eup %2659 }
 0x249   : > { %v725_v2 = vsel %vm694_vm1, %v3670_v0, 0.0  ;;  %2661 = vpow2.f32 %v717_v11 }
 0x24b   : > { %v3635_v41 = vpop.f32.mrf.mxu2 }
 0x24c   : > { %v1009_v43 = vsel %vm694_vm1, %v3635_v41, -inf }
 0x24d   : > { %1010 = vmax.xlane.f32.xlu1 %v1009_v43 }
 0x24e   : > { %v3641_v45 = vpop.f32.mrf.mxu0 }
 0x24f   : > { %v844_v48 = vsel %vm694_vm1, %v3641_v45, -inf  ;;  %v3693_v16 = vpop.eup %2661 }
 0x250   : > { %1004 = vmax.xlane.f32.xlu0 %v1003_v46  ;;  %845 = vmax.xlane.f32.xlu2 %v844_v48  ;;  %v728_v20 = vsel %vm694_vm1, %v3693_v16, 0.0 }
 0x253   : > { %v3647_v40 = vpop.f32.mrf.mxu2 }
 0x254   : > { %v1012_v47 = vsel %vm694_vm1, %v3647_v40, -inf }
 0x255   : > { %1013 = vmax.xlane.f32.xlu1 %v1012_v47 }
 0x256   : > { %v3652_v54 = vpop.f32.mrf.mxu0 }
 0x257   : > { %v847_v56 = vsel %vm694_vm1, %v3652_v54, -inf }
 0x258   : > { %1007 = vmax.xlane.f32.xlu2 %v1006_v55  ;;  %848 = vmax.xlane.f32.xlu0 %v847_v56 }
 0x25b   : > { %v3664_v52 = vpop.f32.mrf.mxu2 }
 0x25c   : > { %v1319_v10 = vsel %vm694_vm1, %v3664_v52, -inf }
 0x25e   : > { %v3662_v60 = vpop.f32.mrf.mxu0 }
 0x25f   : > { %v850_v3 = vsel %vm694_vm1, %v3662_v60, -inf }
 0x260   : > { %720 = vadd.xlane.f32.xlu2 %v719_v61  ;;  %723 = vadd.xlane.f32.xlu0 %v722_v62 }
 0x263   : > { %v3680_v5 = vpop.f32.mrf.mxu2 }
 0x264   : > { %v1322_v26 = vsel %vm694_vm1, %v3680_v5, -inf }
 0x266   : > { %v3672_v1 = vpop.f32.mrf.mxu0 }
 0x267   : > { %v1161_v4 = vsel %vm694_vm1, %v3672_v1, -inf }
 0x268   : > { %726 = vadd.xlane.f32.xlu0 %v725_v2  ;;  %851 = vmax.xlane.f32.xlu2 %v850_v3 }
 0x269   : > { %1162 = vmax.xlane.f32.xlu1 %v1161_v4 }
 0x26b   : > { %v3687_v12 = vpop.f32.mrf.mxu2 }
 0x26c   : > { %v1325_v39 = vsel %vm694_vm1, %v3687_v12, -inf }
 0x26e   : > { %v3683_v9 = vpop.f32.mrf.mxu0 }
 0x26f   : > { %v1164_v15 = vsel %vm694_vm1, %v3683_v9, -inf }
 0x270   : > { %1320 = vmax.xlane.f32.xlu0 %v1319_v10 }
 0x275   : > { %v3695_v18 = vpop.f32.mrf.mxu2 }
 0x276   : > { %v3689_v13 = vpop.f32.mrf.mxu0  ;;  %v1328_v24 = vsel %vm694_vm1, %v3695_v18, -inf }
 0x277   : > { %v1167_v14 = vsel %vm694_vm1, %v3689_v13, -inf }
 0x278   : > { %1165 = vmax.xlane.f32.xlu0 %v1164_v15 }
 0x27d   : > { %v3705_v25 = vpop.f32.mrf.mxu2 }
 0x27e   : > { %v3697_v63 = vpop.f32.mrf.mxu0  ;;  %v1635_v29 = vsel %vm694_vm1, %v3705_v25, -inf }
 0x27f   : > { %v1170_v19 = vsel %vm694_vm1, %v3697_v63, -inf }
 0x280   : > { %1171 = vmax.xlane.f32.xlu2 %v1170_v19  ;;  %729 = vadd.xlane.f32.xlu0 %v728_v20 }
 0x286   : > { %v3703_v23 = vpop.f32.mrf.mxu0  ;;  %v3719_v30 = vpop.f32.mrf.mxu2 }
 0x287   : > { %v1477_v22 = vsel %vm694_vm1, %v3703_v23, -inf  ;;  %v1638_v37 = vsel %vm694_vm1, %v3719_v30, -inf }
 0x288   : > { %1329 = vmax.xlane.f32.xlu2 %v1328_v24  ;;  %1478 = vmax.xlane.f32.xlu1 %v1477_v22 }
 0x289   : > { %1323 = vmax.xlane.f32.xlu0 %v1322_v26 }
 0x28e   : > { %v3713_v28 = vpop.f32.mrf.mxu0  ;;  %v3729_v42 = vpop.f32.mrf.mxu2 }
 0x28f   : > { %v1641_v44 = vsel %vm694_vm1, %v3729_v42, -inf  ;;  %v1480_v48 = vsel %vm694_vm1, %v3713_v28, -inf }
 0x290   : > { %1636 = vmax.xlane.f32.xlu2 %v1635_v29 }
 0x291   : > { %1168 = vmax.xlane.f32.xlu0 %v1167_v14 }
 0x296   : > { %v3721_v31 = vpop.f32.mrf.mxu0  ;;  %v3739_v49 = vpop.f32.mrf.mxu2 }
 0x297   : > { %v1483_v38 = vsel %vm694_vm1, %v3721_v31, -inf  ;;  %v1644_v47 = vsel %vm694_vm1, %v3739_v49, -inf }
 0x298   : > { %1639 = vmax.xlane.f32.xlu2 %v1638_v37  ;;  %1484 = vmax.xlane.f32.xlu1 %v1483_v38 }
 0x299   : > { %1326 = vmax.xlane.f32.xlu0 %v1325_v39 }
 0x29e   : > { %v3731_v43 = vpop.f32.mrf.mxu0 }
 0x29f   : > { %v1486_v46 = vsel %vm694_vm1, %v3731_v43, -inf }
 0x2a0   : > { %1642 = vmax.xlane.f32.xlu2 %v1641_v44  ;;  %1487 = vmax.xlane.f32.xlu1 %v1486_v46 }
 0x2a1   : > { %1481 = vmax.xlane.f32.xlu0 %v1480_v48 }
 0x2a6   : > { %v3741_v50 = vpop.f32.mrf.mxu0 }
 0x2a7   : > { %v1793_v51 = vsel %vm694_vm1, %v3741_v50, -inf }
 0x2a8   : > { %1794 = vmax.xlane.f32.xlu1 %v1793_v51 }
 0x2a9   : > { %1645 = vmax.xlane.f32.xlu0 %v1644_v47 }
 0x2ae   : > { %v3747_v53 = vpop.f32.mrf.mxu0 }
 0x2af   : > { %v1796_v55 = vsel %vm694_vm1, %v3747_v53, -inf }
 0x2b0   : > { %1797 = vmax.xlane.f32.xlu1 %v1796_v55 }
 0x2b6   : > { %v3751_v56 = vpop.f32.mrf.mxu0 }
 0x2b7   : > { %v1799_v57 = vsel %vm694_vm1, %v3751_v56, -inf }
 0x2b8   : > { %1800 = vmax.xlane.f32.xlu2 %v1799_v57 }
 0x2bb   : > { %v843_v61 = vpop.xlane.xlu0 %842 }
 0x2bc   : > { %v853_v62 = vsub.f32 %v3631_v17, %v843_v61 }
 0x2be   : > { %v857_v2 = vmul.f32 1.442695, %v853_v62  ;;  %v3756_v3 = vpop.f32.mrf.mxu0 }
 0x2bf   : > { %v1802_v4 = vsel %vm694_vm1, %v3756_v3, -inf }
 0x2c0   : > { %2663 = vpow2.f32 %v857_v2  ;;  %1803 = vmax.xlane.f32.xlu0 %v1802_v4  ;;  %v1011_v6 = vpop.xlane.xlu1 %1010 }
 0x2c3   : > { %v1005_v7 = vpop.xlane.xlu0 %1004  ;;  %v846_v10 = vpop.xlane.xlu2 %845 }
 0x2c4   : > { %v1015_v11 = vsub.f32 %v3622_v33, %v1005_v7  ;;  %v854_v15 = vsub.f32 %v3641_v45, %v846_v10  ;;  %v1017_v45 = vsub.f32 %v3635_v41, %v1011_v6  ;;  %v2562_v10 = vunpack.i.l.bf16 %v3614_v32 }
 0x2c6   : > { %v3762_v19 = vpop.eup %2663  ;;  %v1019_v20 = vmul.f32 1.442695, %v1015_v11  ;;  %v859_v24 = vmul.f32 1.442695, %v854_v15 }
 0x2c7   : > { %v865_v17 = vsel %vm694_vm1, %v3762_v19, 0.0 }
 0x2c8   : > { %2665 = vpow2.f32 %v1019_v20  ;;  %866 = vadd.xlane.f32.xlu2 %v865_v17  ;;  %v1014_v29 = vpop.xlane.xlu1 %1013  ;;  %v2563_v17 = vunpack.i.h.bf16 %v3614_v32 }
 0x2c9   : > { %2667 = vpow2.f32 %v859_v24  ;;  %v1018_v46 = vsub.f32 %v3647_v40, %v1014_v29 }
 0x2cb   : > { %v1008_v22 = vpop.xlane.xlu2 %1007  ;;  %v849_v26 = vpop.xlane.xlu0 %848  ;;  %v1025_v51 = vmul.f32 1.442695, %v1018_v46 }
 0x2cc   : > { %v1016_v14 = vsub.f32 %v3629_v36, %v1008_v22  ;;  %v855_v37 = vsub.f32 %v3652_v54, %v849_v26  ;;  %v1023_v54 = vmul.f32 1.442695, %v1017_v45 }
 0x2ce   : > { %v3768_v33 = vpop.eup %2665  ;;  %v1021_v38 = vmul.f32 1.442695, %v1016_v14  ;;  %v861_v39 = vmul.f32 1.442695, %v855_v37 }
 0x2cf   : > { %v3771_v44 = vpop.eup %2667  ;;  %v1027_v48 = vsel %vm694_vm1, %v3768_v33, 0.0 }
 0x2d0   : > { %2669 = vpow2.f32 %v1021_v38  ;;  %1028 = vadd.xlane.f32.xlu1 %v1027_v48  ;;  %v868_v36 = vsel %vm694_vm1, %v3771_v44, 0.0 }
 0x2d1   : > { %2671 = vpow2.f32 %v861_v39  ;;  %869 = vadd.xlane.f32.xlu0 %v868_v36 }
 0x2d3   : > { %v721_v47 = vpop.xlane.xlu2 %720  ;;  %v724_v41 = vpop.xlane.xlu0 %723 }
 0x2d4   : > { %2673 = vrcp.f32 %v721_v47 }
 0x2d5   : > { %2675 = vpow2.f32 %v1023_v54 }
 0x2d6   : > { %v3778_v55 = vpop.eup %2669  ;;  %2677 = vpow2.f32 %v1025_v51 }
 0x2d7   : > { %v3780_v57 = vpop.eup %2671  ;;  %v1030_v40 = vsel %vm694_vm1, %v3778_v55, 0.0  ;;  %2679 = vrcp.f32 %v724_v41 }
 0x2d8   : > { %v871_v61 = vsel %vm694_vm1, %v3780_v57, 0.0 }
 0x2d9   : > { %872 = vadd.xlane.f32.xlu2 %v871_v61  ;;  %1031 = vadd.xlane.f32.xlu0 %v1030_v40 }
 0x2da   : > { %v2674_v62 = vpop.eup %2673 }
 0x2db   : > { %v727_v2 = vpop.xlane.xlu0 %726  ;;  %v852_v4 = vpop.xlane.xlu2 %851  ;;  %v735_v6 = vmul.f32 %v2674_v62, %v3658_v58  ;;  %v2567_v58 = vunpack.i.l.bf16 %v3624_v34 }
 0x2dc   : > { %v3787_v7 = vpop.eup %2675  ;;  %v856_v11 = vsub.f32 %v3662_v60, %v852_v4  ;;  %v1163_v15 = vpop.xlane.xlu1 %1162 }
 0x2dd   : > { %v3791_v20 = vpop.eup %2677  ;;  %v1173_v24 = vsub.f32 %v3672_v1, %v1163_v15  ;;  %2308 = vmatmul.msk.f32.vlgmr.msrb.gmra.mxu3 %vm694_vm1, %v735_v6  ;;  %v1033_v60 = vsel %vm694_vm1, %v3787_v7, 0.0  ;;  %v2568_v1 = vunpack.i.h.bf16 %v3624_v34 }
 0x2de   : > { %v863_v22 = vmul.f32 1.442695, %v856_v11  ;;  %1399 = vmatpush.msrb.mxu3 %v2562_v10  ;;  %v2680_v29 = vpop.eup %2679  ;;  %v1036_v14 = vsel %vm694_vm1, %v3791_v20, 0.0 }
 0x2df   : > { %v1177_v26 = vmul.f32 1.442695, %v1173_v24  ;;  %v736_v37 = vmul.f32 %v2680_v29, %v3660_v59 }
 0x2e0   : > { %2681 = vpow2.f32 %v863_v22  ;;  %1400 = vmatpush.msrb.mxu3 %v2563_v17 }
 0x2e1   : > { %2683 = vpow2.f32 %v1177_v26  ;;  %1034 = vadd.xlane.f32.xlu0 %v1033_v60  ;;  %1037 = vadd.xlane.f32.xlu2 %v1036_v14 }
 0x2e2   : > { %2685 = vrcp.f32 %v727_v2  ;;  %1401 = vmatpush.msrb.mxu3 %v2567_v58 }
 0x2e3   : > { %v1321_v32 = vpop.xlane.xlu0 %1320 }
 0x2e4   : > { %v1331_v45 = vsub.f32 %v3664_v52, %v1321_v32  ;;  %1402 = vmatpush.msrb.mxu3 %v2568_v1 }
 0x2e5   : > { %2309 = vmatmul.msk.f32.gmra.mxu3 %vm694_vm1, %v736_v37 }
 0x2e6   : > { %v3805_v38 = vpop.eup %2681  ;;  %v1335_v39 = vmul.f32 1.442695, %v1331_v45 }
 0x2e7   : > { %v3807_v46 = vpop.eup %2683  ;;  %v874_v48 = vsel %vm694_vm1, %v3805_v38, 0.0 }
 0x2e8   : > { %v2686_v36 = vpop.eup %2685  ;;  %2687 = vpow2.f32 %v1335_v39  ;;  %v1185_v34 = vsel %vm694_vm1, %v3807_v46, 0.0 }
 0x2e9   : > { %875 = vadd.xlane.f32.xlu0 %v874_v48  ;;  %1186 = vadd.xlane.f32.xlu2 %v1185_v34  ;;  %v737_v52 = vmul.f32 %v2686_v36, %v3670_v0 }
 0x2eb   : > { %v1166_v59 = vpop.xlane.xlu0 %1165 }
 0x2ec   : > { %v1174_v54 = vsub.f32 %v3683_v9, %v1166_v59 }
 0x2ed   : > { %2310 = vmatmul.msk.f32.gmra.mxu3 %vm694_vm1, %v737_v52 }
 0x2ee   : > { %v3816_v51 = vpop.eup %2687  ;;  %v1179_v47 = vmul.f32 1.442695, %v1174_v54 }
 0x2ef   : > { %v1343_v41 = vsel %vm694_vm1, %v3816_v51, 0.0 }
 0x2f0   : > { %2689 = vpow2.f32 %v1179_v47 }
 0x2f1   : > { %1344 = vadd.xlane.f32.xlu2 %v1343_v41 }
 0x2f3   : > { %v730_v40 = vpop.xlane.xlu0 %729  ;;  %v1172_v10 = vpop.xlane.xlu2 %1171 }
 0x2f4   : > { %2691 = vrcp.f32 %v730_v40  ;;  %v1176_v22 = vsub.f32 %v3697_v63, %v1172_v10 }
 0x2f6   : > { %v3820_v61 = vpop.eup %2689 }
 0x2f7   : > { %v1188_v62 = vsel %vm694_vm1, %v3820_v61, 0.0 }
 0x2f8   : > { %1189 = vadd.xlane.f32.xlu1 %v1188_v62 }
 0x2fa   : > { %v2692_v0 = vpop.eup %2691 }
 0x2fb   : > { %v738_v9 = vmul.f32 %v2692_v0, %v3693_v16  ;;  %v1479_v11 = vpop.xlane.xlu1 %1478  ;;  %v1330_v29 = vpop.xlane.xlu2 %1329 }
 0x2fc   : > { %v1324_v2 = vpop.xlane.xlu0 %1323 }
 0x2fd   : > { %v1332_v4 = vsub.f32 %v3680_v5, %v1324_v2  ;;  %2311 = vmatmul.msk.f32.gmra.mxu3 %vm694_vm1, %v738_v9  ;;  %v1183_v5 = vmul.f32 1.442695, %v1176_v22 }
 0x2ff   : > { %v1337_v6 = vmul.f32 1.442695, %v1332_v4 }
 0x301   : > { %2693 = vpow2.f32 %v1337_v6 }
 0x303   : > { %v3849_v34 = vpop.xlane.xlu2 %1636 }
 0x304   : > { %v1169_v15 = vpop.xlane.xlu0 %1168 }
 0x305   : > { %v1175_v24 = vsub.f32 %v3689_v13, %v1169_v15  ;;  %v1334_v13 = vsub.f32 %v3695_v18, %v1330_v29  ;;  %v1489_v18 = vsub.f32 %v3703_v23, %v1479_v11 }
 0x307   : > { %v3828_v17 = vpop.eup %2693  ;;  %v1181_v26 = vmul.f32 1.442695, %v1175_v24  ;;  %v1341_v45 = vmul.f32 1.442695, %v1334_v13  ;;  %v1493_v52 = vmul.f32 1.442695, %v1489_v18  ;;  %v2578_v18 = vunpack.i.h.bf16 %v3627_v35 }
 0x308   : > { %v1346_v16 = vsel %vm694_vm1, %v3828_v17, 0.0 }
 0x309   : > { %2695 = vpow2.f32 %v1181_v26  ;;  %1347 = vadd.xlane.f32.xlu0 %v1346_v16  ;;  %2585 = vrot.lane.b32.xlu2 %v3399_v8, %s3100_s22 }
 0x30a   : > { %2697 = vpow2.f32 %v1183_v5 }
 0x30b   : > { %v1485_v58 = vpop.xlane.xlu1 %1484  ;;  %v3865_v4 = vpop.xlane.xlu2 %1639 }
 0x30c   : > { %v1327_v60 = vpop.xlane.xlu0 %1326  ;;  %v1491_v32 = vsub.f32 %v3721_v31, %v1485_v58 }
 0x30d   : > { %v1333_v14 = vsub.f32 %v3687_v12, %v1327_v60 }
 0x30e   : > { %v1497_v39 = vmul.f32 1.442695, %v1491_v32 }
 0x30f   : > { %v3837_v1 = vpop.eup %2695  ;;  %v1339_v63 = vmul.f32 1.442695, %v1333_v14 }
 0x310   : > { %v1191_v37 = vsel %vm694_vm1, %v3837_v1, 0.0  ;;  %v3844_v36 = vpop.eup %2697 }
 0x311   : > { %2699 = vpow2.f32 %v1339_v63  ;;  %1192 = vadd.xlane.f32.xlu1 %v1191_v37  ;;  %v1194_v31 = vsel %vm694_vm1, %v3844_v36, 0.0  ;;  %v2572_v63 = vunpack.i.l.bf16 %v3618_v21  ;;  %v2573_v37 = vunpack.i.h.bf16 %v3618_v21 }
 0x312   : > { %2701 = vpow2.f32 %v1341_v45  ;;  %v2577_v45 = vunpack.i.l.bf16 %v3627_v35  ;;  %v1647_v35 = vsub.f32 %v3705_v25, %v3849_v34 }
 0x313   : > { %v3842_v48 = vpop.xlane.xlu1 %1487  ;;  %2703 = vpow2.f32 %v1497_v39  ;;  %v1643_v15 = vpop.xlane.xlu2 %1642 }
 0x314   : > { %v1482_v23 = vpop.xlane.xlu0 %1481  ;;  %2705 = vpow2.f32 %v1493_v52  ;;  %v1492_v25 = vsub.f32 %v3731_v43, %v3842_v48 }
 0x315   : > { %v1490_v0 = vsub.f32 %v3713_v28, %v1482_v23 }
 0x317   : > { %v3846_v12 = vpop.eup %2699  ;;  %v1495_v6 = vmul.f32 1.442695, %v1490_v0 }
 0x318   : > { %v1349_v59 = vsel %vm694_vm1, %v3846_v12, 0.0  ;;  %v3855_v47 = vpop.eup %2701 }
 0x319   : > { %1195 = vadd.xlane.f32.xlu1 %v1194_v31  ;;  %1350 = vadd.xlane.f32.xlu0 %v1349_v59  ;;  %v3858_v40 = vpop.eup %2703  ;;  %v1352_v9 = vsel %vm694_vm1, %v3855_v47, 0.0 }
 0x31a   : > { %v1507_v2 = vsel %vm694_vm1, %v3858_v40, 0.0 }
 0x31b   : > { %v1795_v54 = vpop.xlane.xlu1 %1794 }
 0x31c   : > { %v1805_v41 = vsub.f32 %v3741_v50, %v1795_v54  ;;  %v3867_v50 = vpop.eup %2705  ;;  %v3881_v16 = vpop.xlane.xlu0 %1645 }
 0x31d   : > { %v1501_v28 = vsel %vm694_vm1, %v3867_v50, 0.0 }
 0x31e   : > { %v1809_v62 = vmul.f32 1.442695, %v1805_v41 }
 0x320   : > { %2707 = vpow2.f32 %v1809_v62  ;;  %v1649_v62 = vsub.f32 %v3729_v42, %v1643_v15 }
 0x321   : > { %1353 = vadd.xlane.f32.xlu0 %v1352_v9  ;;  %1508 = vadd.xlane.f32.xlu1 %v1507_v2  ;;  %2709 = vpow2.f32 %v1495_v6 }
 0x322   : > { %v1655_v2 = vmul.f32 1.442695, %v1649_v62 }
 0x323   : > { %v3883_v5 = vpop.xlane.xlu1 %1797 }
 0x324   : > { %v1806_v42 = vsub.f32 %v3747_v53, %v3883_v5 }
 0x326   : > { %v3869_v10 = vpop.eup %2707  ;;  %v1811_v15 = vmul.f32 1.442695, %v1806_v42 }
 0x327   : > { %v1817_v11 = vsel %vm694_vm1, %v3869_v10, 0.0  ;;  %v3875_v24 = vpop.eup %2709 }
 0x328   : > { %v1504_v22 = vsel %vm694_vm1, %v3875_v24, 0.0 }
 0x329   : > { %1502 = vadd.xlane.f32.xlu0 %v1501_v28  ;;  %1818 = vadd.xlane.f32.xlu1 %v1817_v11 }
 0x32b   : > { %v3879_v26 = vpop.xlane.xlu2 %1800 }
 0x332   : > { %1505 = vadd.xlane.f32.xlu2 %v1504_v22 }
 0x333   : > { %v3885_v58 = vpop.xlane.xlu0 %1803 }
 0x33b   : > { %v867_v29 = vpop.xlane.xlu2 %866 }
 0x33c   : > { %2711 = vrcp.f32 %v867_v29 }
 0x33d   : > { %2580 = vrot.lane.b32.xlu0 %v3470_v27, %s3100_s22 }
 0x342   : > { %v2712_v60 = vpop.eup %2711  ;;  %2590 = vrot.lane.b32.xlu1 %v3470_v27, %s3101_s3 }
 0x343   : > { %v1029_v14 = vpop.xlane.xlu1 %1028  ;;  %v881_v13 = vmul.f32 %v2712_v60, %v3762_v19 }
 0x344   : > { %v870_v32 = vpop.xlane.xlu0 %869  ;;  %2713 = vrcp.f32 %v1029_v14 }
 0x345   : > { %2715 = vrcp.f32 %v870_v32  ;;  %2320 = vmatmul.msk.f32.vlgmr.msrb.gmra.mxu1 %vm694_vm1, %v881_v13 }
 0x346   : > { %1557 = vmatpush.msrb.mxu1 %v2572_v63  ;;  %v1650_v63 = vsub.f32 %v3739_v49, %v3881_v16  ;;  %v1807_v16 = vsub.f32 %v3751_v56, %v3879_v26 }
 0x348   : > { %1558 = vmatpush.msrb.mxu1 %v2573_v37 }
 0x34a   : > { %v2714_v39 = vpop.eup %2713  ;;  %1559 = vmatpush.msrb.mxu1 %v2577_v45  ;;  %2595 = vrot.lane.b32.xlu2 %v3399_v8, %s3101_s3  ;;  %v1657_v45 = vmul.f32 1.442695, %v1650_v63 }
 0x34b   : > { %v2716_v27 = vpop.eup %2715  ;;  %v1043_v19 = vmul.f32 %v2714_v39, %v3768_v33 }
 0x34c   : > { %1560 = vmatpush.msrb.mxu1 %v2578_v18  ;;  %v873_v31 = vpop.xlane.xlu2 %872  ;;  %v1032_v59 = vpop.xlane.xlu0 %1031  ;;  %v882_v52 = vmul.f32 %v2716_v27, %v3771_v44  ;;  %v1651_v44 = vmul.f32 1.442695, %v1647_v35  ;;  %v1813_v27 = vmul.f32 1.442695, %v1807_v16 }
 0x34d   : > { %2717 = vrcp.f32 %v873_v31  ;;  %2332 = vmatmul.msk.f32.vlgmr.msra.gmra.mxu3 %vm694_vm1, %v1043_v19  ;;  %v1808_v31 = vsub.f32 %v3756_v3, %v3885_v58 }
 0x34e   : > { %2719 = vrcp.f32 %v1032_v59  ;;  %2321 = vmatmul.msk.f32.gmra.mxu1 %vm694_vm1, %v882_v52 }
 0x34f   : > { %v1815_v56 = vmul.f32 1.442695, %v1808_v31 }
 0x353   : > { %v2718_v21 = vpop.eup %2717 }
 0x354   : > { %v2720_v54 = vpop.eup %2719  ;;  %v1035_v8 = vpop.xlane.xlu0 %1034  ;;  %v883_v33 = vmul.f32 %v2718_v21, %v3780_v57 }
 0x355   : > { %v1038_v41 = vpop.xlane.xlu2 %1037  ;;  %2721 = vrcp.f32 %v1035_v8  ;;  %v1044_v23 = vmul.f32 %v2720_v54, %v3778_v55  ;;  %v1499_v55 = vmul.f32 1.442695, %v1492_v25 }
 0x356   : > { %2322 = vmatmul.msk.f32.gmra.mxu1 %vm694_vm1, %v883_v33  ;;  %2723 = vpow2.f32 %v1651_v44 }
 0x357   : > { %2333 = vmatmul.msk.f32.gmra.mxu3 %vm694_vm1, %v1044_v23  ;;  %2725 = vrcp.f32 %v1038_v41 }
 0x35b   : > { %v2722_v0 = vpop.eup %2721 }
 0x35c   : > { %v876_v34 = vpop.xlane.xlu0 %875  ;;  %v1045_v57 = vmul.f32 %v2722_v0, %v3787_v7  ;;  %v3914_v6 = vpop.eup %2723  ;;  %v1648_v7 = vsub.f32 %v3719_v30, %v3865_v4 }
 0x35d   : > { %v1187_v9 = vpop.xlane.xlu2 %1186  ;;  %2727 = vrcp.f32 %v876_v34  ;;  %v2726_v11 = vpop.eup %2725  ;;  %v1659_v53 = vsel %vm694_vm1, %v3914_v6, 0.0 }
 0x35e   : > { %2729 = vpow2.f32 %v1655_v2  ;;  %v1046_v22 = vmul.f32 %v2726_v11, %v3791_v20  ;;  %v1653_v60 = vmul.f32 1.442695, %v1648_v7 }
 0x35f   : > { %2334 = vmatmul.msk.f32.gmra.mxu3 %vm694_vm1, %v1045_v57  ;;  %2731 = vrcp.f32 %v1187_v9 }
 0x360   : > { %2733 = vpow2.f32 %v1499_v55  ;;  %v3978_v11 = vpop.f32.mrf.mxu3 }
 0x363   : > { %v2728_v28 = vpop.eup %2727 }
 0x364   : > { %v884_v48 = vmul.f32 %v2728_v28, %v3805_v38  ;;  %v3926_v5 = vpop.eup %2729 }
 0x365   : > { %v1345_v43 = vpop.xlane.xlu2 %1344  ;;  %v2732_v29 = vpop.eup %2731  ;;  %v1665_v4 = vsel %vm694_vm1, %v3926_v5, 0.0 }
 0x366   : > { %2735 = vrcp.f32 %v1345_v43  ;;  %2323 = vmatmul.msk.f32.gmra.mxu1 %vm694_vm1, %v884_v48  ;;  %v3928_v38 = vpop.eup %2733  ;;  %v1201_v14 = vmul.f32 %v2732_v29, %v3807_v46 }
 0x367   : > { %2335 = vmatmul.msk.f32.gmra.mxu3 %vm694_vm1, %v1046_v22  ;;  %1660 = vadd.xlane.f32.xlu0 %v1659_v53  ;;  %2737 = vpow2.f32 %v1811_v15  ;;  %v1510_v32 = vsel %vm694_vm1, %v3928_v38, 0.0 }
 0x36b   : > { %v1190_v20 = vpop.xlane.xlu1 %1189 }
 0x36c   : > { %v2736_v30 = vpop.eup %2735  ;;  %1666 = vadd.xlane.f32.xlu1 %v1665_v4  ;;  %2739 = vrcp.f32 %v1190_v20 }
 0x36d   : > { %v1359_v13 = vmul.f32 %v2736_v30, %v3816_v51  ;;  %2741 = vpow2.f32 %v1653_v60  ;;  %v3939_v37 = vpop.eup %2737  ;;  %v2586_v57 = vpop.permute.xlu2 %2585 }
 0x36e   : > { %2344 = vmatmul.msk.f32.vlgmr.msra.gmra.mxu1 %vm694_vm1, %v1201_v14  ;;  %v1820_v51 = vsel %vm694_vm1, %v3939_v37, 0.0  ;;  %2743 = vpow2.f32 %v1657_v45  ;;  %v2587_v22 = vunpack.i.l.bf16 %v2586_v57  ;;  %v3983_v60 = vpop.f32.mrf.mxu3  ;;  %v2588_v30 = vunpack.i.h.bf16 %v2586_v57 }
 0x36f   : > { %2356 = vmatmul.msk.f32.vlgmr.msrb.gmra.mxu3 %vm694_vm1, %v1359_v13  ;;  %1511 = vadd.xlane.f32.xlu0 %v1510_v32  ;;  %2745 = vpow2.f32 %v1813_v27 }
 0x372   : > { %v2740_v46 = vpop.eup %2739 }
 0x373   : > { %v3944_v39 = vpop.eup %2741  ;;  %1821 = vadd.xlane.f32.xlu2 %v1820_v51  ;;  %v1202_v49 = vmul.f32 %v2740_v46, %v3820_v61 }
 0x374   : > { %v1662_v18 = vsel %vm694_vm1, %v3944_v39, 0.0  ;;  %v3952_v19 = vpop.eup %2743 }
 0x375   : > { %v1668_v61 = vsel %vm694_vm1, %v3952_v19, 0.0  ;;  %v3958_v26 = vpop.eup %2745 }
 0x376   : > { %2345 = vmatmul.msk.f32.gmra.mxu1 %vm694_vm1, %v1202_v49  ;;  %v1823_v3 = vsel %vm694_vm1, %v3958_v26, 0.0  ;;  %v3986_v13 = vpop.f32.mrf.mxu3 }
 0x377   : > { %1663 = vadd.xlane.f32.xlu0 %v1662_v18 }
 0x37c   : > { %v1348_v59 = vpop.xlane.xlu0 %1347 }
 0x37d   : > { %2747 = vrcp.f32 %v1348_v59 }
 0x37e   : > { %2749 = vpow2.f32 %v1815_v56 }
 0x37f   : > { %1669 = vadd.xlane.f32.xlu0 %v1668_v61 }
 0x380   : > { %v3988_v32 = vpop.f32.mrf.mxu3 }
 0x383   : > { %v2748_v52 = vpop.eup %2747 }
 0x384   : > { %v1193_v21 = vpop.xlane.xlu1 %1192  ;;  %v1360_v35 = vmul.f32 %v2748_v52, %v3828_v17  ;;  %v3964_v58 = vpop.eup %2749 }
 0x385   : > { %2751 = vrcp.f32 %v1193_v21  ;;  %v1826_v17 = vsel %vm694_vm1, %v3964_v58, 0.0 }
 0x386   : > { %2357 = vmatmul.msk.f32.gmra.mxu3 %vm694_vm1, %v1360_v35 }
 0x387   : > { %1824 = vadd.xlane.f32.xlu0 %v1823_v3 }
 0x38b   : > { %v2752_v54 = vpop.eup %2751 }
 0x38c   : > { %v1351_v8 = vpop.xlane.xlu0 %1350  ;;  %v1196_v41 = vpop.xlane.xlu1 %1195  ;;  %v1203_v33 = vmul.f32 %v2752_v54, %v3837_v1 }
 0x38d   : > { %2753 = vrcp.f32 %v1351_v8 }
 0x38e   : > { %2755 = vrcp.f32 %v1196_v41  ;;  %2346 = vmatmul.msk.f32.gmra.mxu1 %vm694_vm1, %v1203_v33 }
 0x38f   : > { %1827 = vadd.xlane.f32.xlu0 %v1826_v17 }
 0x393   : > { %v2754_v23 = vpop.eup %2753 }
 0x394   : > { %v2756_v44 = vpop.eup %2755  ;;  %v1354_v62 = vpop.xlane.xlu0 %1353  ;;  %v1361_v0 = vmul.f32 %v2754_v23, %v3846_v12 }
 0x395   : > { %2757 = vrcp.f32 %v1354_v62  ;;  %v1204_v25 = vmul.f32 %v2756_v44, %v3844_v36  ;;  %v1509_v2 = vpop.xlane.xlu1 %1508 }
 0x396   : > { %2358 = vmatmul.msk.f32.gmra.mxu3 %vm694_vm1, %v1361_v0 }
 0x397   : > { %2347 = vmatmul.msk.f32.gmra.mxu1 %vm694_vm1, %v1204_v25 }
 0x39b   : > { %v2758_v1 = vpop.eup %2757 }
 0x39c   : > { %v1503_v34 = vpop.xlane.xlu0 %1502  ;;  %v1362_v9 = vmul.f32 %v2758_v1, %v3855_v47 }
 0x39d   : > { %2759 = vrcp.f32 %v1503_v34  ;;  %v1819_v28 = vpop.xlane.xlu1 %1818 }
 0x39e   : > { %2359 = vmatmul.msk.f32.gmra.mxu3 %vm694_vm1, %v1362_v9 }
 0x3a3   : > { %v2760_v55 = vpop.eup %2759 }
 0x3a4   : > { %v1517_v42 = vmul.f32 %v2760_v55, %v3867_v50 }
 0x3a5   : > { %v1506_v12 = vpop.xlane.xlu2 %1505 }
 0x3a6   : > { %2761 = vrcp.f32 %v1506_v12  ;;  %2368 = vmatmul.msk.f32.vlgmr.msrb.gmra.mxu1 %vm694_vm1, %v1517_v42 }
 0x3a7   : > { %2763 = vrcp.f32 %v1509_v2 }
 0x3ac   : > { %v2762_v36 = vpop.eup %2761 }
 0x3ad   : > { %v1518_v43 = vmul.f32 %v2762_v36, %v3875_v24  ;;  %v2764_v7 = vpop.eup %2763  ;;  %v2596_v4 = vpop.permute.xlu2 %2595 }
 0x3ae   : > { %v1519_v29 = vmul.f32 %v2764_v7, %v3858_v40  ;;  %v2597_v20 = vunpack.i.l.bf16 %v2596_v4  ;;  %v2598_v14 = vunpack.i.h.bf16 %v2596_v4 }
 0x3af   : > { %v2581_v47 = vpop.permute.xlu0 %2580  ;;  %2369 = vmatmul.msk.f32.gmra.mxu1 %vm694_vm1, %v1518_v43 }
 0x3b0   : > { %v2582_v48 = vunpack.i.l.bf16 %v2581_v47  ;;  %v2583_v15 = vunpack.i.h.bf16 %v2581_v47 }
 0x3b2   : > { %1715 = vmatpush.msra.mxu3 %v2582_v48 }
 0x3b4   : > { %1716 = vmatpush.msra.mxu3 %v2583_v15  ;;  %v2591_v50 = vpop.permute.xlu1 %2590 }
 0x3b5   : > { %v2592_v53 = vunpack.i.l.bf16 %v2591_v50  ;;  %v2593_v24 = vunpack.i.h.bf16 %v2591_v50 }
 0x3b6   : > { %1717 = vmatpush.msra.mxu3 %v2587_v22 }
 0x3b7   : > { %2370 = vmatmul.msk.f32.gmra.mxu1 %vm694_vm1, %v1519_v29 }
 0x3b8   : > { %1873 = vmatpush.msra.mxu1 %v2592_v53  ;;  %1718 = vmatpush.msra.mxu3 %v2588_v30 }
 0x3ba   : > { %1874 = vmatpush.msra.mxu1 %v2593_v24 }
 0x3bc   : > { %1875 = vmatpush.msra.mxu1 %v2597_v20 }
 0x3be   : > { %1876 = vmatpush.msra.mxu1 %v2598_v14 }
 0x3c2   : > { %v930_v63 = vpop.f32.mrf.mxu1 }
 0x3cb   : > { %v933_v40 = vpop.f32.mrf.mxu1 }
 0x3cc   : > { %v2599_v45 = vpack.i.bf16 %v933_v40, %v930_v63 }
 0x3ce   : > { %2600 = vrot.lane.b32.xlu2 %v2599_v45, %s3101_s3 }
 0x3d0   : > { %v1088_v46 = vpop.f32.mrf.mxu3 }
 0x3d3   : > { %v3991_v16 = vpop.f32.mrf.mxu1 }
 0x3da   : > { %v1091_v51 = vpop.f32.mrf.mxu3  ;;  %v1661_v49 = vpop.xlane.xlu0 %1660 }
 0x3db   : > { %v2604_v18 = vpack.i.bf16 %v1091_v51, %v1088_v46  ;;  %2765 = vrcp.f32 %v1661_v49  ;;  %v2050_v51 = vld [vmem:[#allocation13 + $0x78] sm:$0xff] }
 0x3dc   : > { %2055 = vmatpush.msra.mxu2 %v2050_v51 }
 0x3dd   : > { %2605 = vrot.lane.b32.xlu0 %v2604_v18, %s3100_s22  ;;  %v2048_v18 = vld [vmem:[#allocation13 + $0x68] sm:$0xff] }
 0x3df   : > { %v1667_v41 = vpop.xlane.xlu1 %1666 }
 0x3e1   : > { %v2766_v27 = vpop.eup %2765 }
 0x3e2   : > { %v1675_v31 = vmul.f32 %v2766_v27, %v3914_v6  ;;  %v3995_v59 = vpop.f32.mrf.mxu3  ;;  %v1512_v61 = vpop.xlane.xlu0 %1511  ;;  %v2047_v27 = vld [vmem:[#allocation13 + $0x60] sm:$0xff] }
 0x3e3   : > { %2767 = vrcp.f32 %v1512_v61  ;;  %v939_v56 = vpop.f32.mrf.mxu1  ;;  %v2044_v61 = vld [vmem:[#allocation13 + $0x48] sm:$0xff] }
 0x3e4   : > { %v2624_v52 = vpack.i.bf16 %v939_v56, %v3991_v16  ;;  %2380 = vmatmul.msk.f32.vlgmr.msra.gmra.mxu3 %vm694_vm1, %v1675_v31  ;;  %2769 = vrcp.f32 %v1819_v28  ;;  %v2049_v16 = vld [vmem:[#allocation13 + $0x70] sm:$0xff]  ;;  %v2046_v31 = vld [vmem:[#allocation13 + $0x58] sm:$0xff]  ;;  %v2043_v56 = vld [vmem:[#allocation13 + $0x40] sm:$0xff] }
 0x3e5   : > { %2056 = vmatpush.msra.mxu2 %v2049_v16 }
 0x3e6   : > { %v1822_v33 = vpop.xlane.xlu2 %1821 }
 0x3e7   : > { %2057 = vmatpush.msra.mxu2 %v2048_v18 }
 0x3e9   : > { %v2768_v21 = vpop.eup %2767  ;;  %2058 = vmatpush.msra.mxu2 %v2047_v27 }
 0x3ea   : > { %v3999_v35 = vpop.f32.mrf.mxu3  ;;  %v1664_v3 = vpop.xlane.xlu0 %1663  ;;  %v1520_v54 = vmul.f32 %v2768_v21, %v3928_v38  ;;  %v2041_v21 = vld [vmem:[#allocation13 + $0x30] sm:$0xff] }
 0x3eb   : > { %v2634_v8 = vpack.i.bf16 %v3999_v35, %v3995_v59  ;;  %2771 = vrcp.f32 %v1664_v3  ;;  %v1246_v6 = vpop.f32.mrf.mxu1  ;;  %v2770_v17 = vpop.eup %2769  ;;  %2059 = vmatpush.msra.mxu2 %v2046_v31  ;;  %v2045_v59 = vld [vmem:[#allocation13 + $0x50] sm:$0xff]  ;;  %v2040_v35 = vld [vmem:[#allocation13 + $0x28] sm:$0xff]  ;;  %v2039_v3 = vld [vmem:[#allocation13 + $0x20] sm:$0xff] }
 0x3ec   : > { %2371 = vmatmul.msk.f32.gmra.mxu1 %vm694_vm1, %v1520_v54  ;;  %2773 = vrcp.f32 %v1667_v41  ;;  %v1833_v44 = vmul.f32 %v2770_v17, %v3869_v10  ;;  %v2038_v54 = vld [vmem:[#allocation13 + $0x18] sm:$0xff]  ;;  %v2035_v41 = vld [vmem:[#allocation13] sm:$0xff] }
 0x3ed   : > { %2775 = vrcp.f32 %v1822_v33  ;;  %2060 = vmatpush.msra.mxu2 %v2045_v59 }
 0x3ef   : > { %2061 = vmatpush.msra.mxu2 %v2044_v61 }
 0x3f1   : > { %v2772_v23 = vpop.eup %2771  ;;  %2062 = vmatpush.msra.mxu2 %v2043_v56 }
 0x3f2   : > { %v1670_v62 = vpop.xlane.xlu0 %1669  ;;  %v1676_v0 = vmul.f32 %v2772_v23, %v3944_v39  ;;  %v2774_v1 = vpop.eup %2773 }
 0x3f3   : > { %v1249_v25 = vpop.f32.mrf.mxu1  ;;  %v2776_v34 = vpop.eup %2775  ;;  %2777 = vrcp.f32 %v1670_v62  ;;  %v1677_v57 = vmul.f32 %v2774_v1, %v3926_v5 }
 0x3f4   : > { %v2609_v38 = vpack.i.bf16 %v1249_v25, %v1246_v6  ;;  %2381 = vmatmul.msk.f32.gmra.mxu3 %vm694_vm1, %v1676_v0  ;;  %2392 = vmatmul.msk.f32.vlgmr.msra.gmra.mxu1 %vm694_vm1, %v1833_v44  ;;  %v1834_v2 = vmul.f32 %v2776_v34, %v3939_v37  ;;  %v1404_v55 = vpop.f32.mrf.mxu3  ;;  %v2036_v6 = vld [vmem:[#allocation13 + $0x8] sm:$0xff] }
 0x3f6   : > { %2610 = vrot.lane.b32.xlu1 %v2609_v38, %s3099_s14 }
 0x3f9   : > { %v2778_v10 = vpop.eup %2777 }
 0x3fa   : > { %v1825_v9 = vpop.xlane.xlu0 %1824  ;;  %v1678_v12 = vmul.f32 %v2778_v10, %v3952_v19 }
 0x3fb   : > { %2779 = vrcp.f32 %v1825_v9 }
 0x3fc   : > { %2382 = vmatmul.msk.f32.gmra.mxu3 %vm694_vm1, %v1677_v57  ;;  %2393 = vmatmul.msk.f32.gmra.mxu1 %vm694_vm1, %v1834_v2 }
 0x401   : > { %v2780_v39 = vpop.eup %2779 }
 0x402   : > { %v1828_v42 = vpop.xlane.xlu0 %1827  ;;  %v1835_v36 = vmul.f32 %v2780_v39, %v3958_v26 }
 0x403   : > { %2781 = vrcp.f32 %v1828_v42 }
 0x404   : > { %2383 = vmatmul.msk.f32.gmra.mxu3 %vm694_vm1, %v1678_v12  ;;  %2394 = vmatmul.msk.f32.gmra.mxu1 %vm694_vm1, %v1835_v36 }
 0x409   : > { %v2782_v5 = vpop.eup %2781  ;;  %v1407_v37 = vpop.f32.mrf.mxu3 }
 0x40a   : > { %v2614_v28 = vpack.i.bf16 %v1407_v37, %v1404_v55  ;;  %v1836_v43 = vmul.f32 %v2782_v5, %v3964_v58 }
 0x40b   : > { %v1252_v47 = vpop.f32.mrf.mxu1 }
 0x40c   : > { %2615 = vrot.lane.b32.xlu2 %v2614_v28, %s3098_s19  ;;  %2395 = vmatmul.msk.f32.gmra.mxu1 %vm694_vm1, %v1836_v43 }
 0x414   : > { %v1255_v48 = vpop.f32.mrf.mxu1 }
 0x415   : > { %v2644_v7 = vpack.i.bf16 %v1255_v48, %v1252_v47 }
 0x419   : > { %v1410_v22 = vpop.f32.mrf.mxu3 }
 0x421   : > { %v1413_v50 = vpop.f32.mrf.mxu3 }
 0x422   : > { %v2649_v53 = vpack.i.bf16 %v1413_v50, %v1410_v22 }
 0x423   : > { %v1562_v19 = vpop.f32.mrf.mxu1 }
 0x428   : > { %v2601_v33 = vpop.permute.xlu2 %2600 }
 0x429   : > { %v2602_v0 = vunpack.i.l.bf16 %v2601_v33  ;;  %v2603_v42 = vunpack.i.h.bf16 %v2601_v33 }
 0x42b   : > { %v2002_v34 = vsel %vm640_vm0, %v3978_v11, %v2602_v0  ;;  %v2003_v47 = vsel %vm640_vm0, %v3983_v60, %v2603_v42 }
 0x42c   : > { %v1565_v15 = vpop.f32.mrf.mxu1 }
 0x42d   : > { %v2619_v26 = vpack.i.bf16 %v1565_v15, %v1562_v19 }
 0x42f   : > { %2620 = vrot.lane.b32.xlu0 %v2619_v26, %s3097_s15 }
 0x434   : > { %v1568_v58 = vpop.f32.mrf.mxu1 }
 0x437   : > { %2625 = vrot.lane.b32.xlu0 %v2624_v52, %s3101_s3  ;;  %v2042_v52 = vld [vmem:[#allocation13 + $0x38] sm:$0xff] }
 0x438   : > { %2063 = vmatpush.msra.mxu2 %v2042_v52 }
 0x43a   : > { %2064 = vmatpush.msra.mxu2 %v2041_v21 }
 0x43c   : > { %2065 = vmatpush.msra.mxu2 %v2040_v35 }
 0x43e   : > { %2066 = vmatpush.msra.mxu2 %v2039_v3 }
 0x43f   : > { %2650 = vrot.lane.b32.xlu0 %v2649_v53, %s3098_s19 }
 0x440   : > { %2067 = vmatpush.msra.mxu2 %v2038_v54 }
 0x44f   : > { %v2606_v17 = vpop.permute.xlu0 %2605 }
 0x450   : > { %v2607_v25 = vunpack.i.l.bf16 %v2606_v17  ;;  %v2608_v12 = vunpack.i.h.bf16 %v2606_v17 }
 0x452   : > { %v2006_v9 = vsel %vm694_vm1, %v2002_v34, %v2607_v25  ;;  %v2007_v19 = vsel %vm694_vm1, %v2003_v47, %v2608_v12 }
 0x466   : > { %v2616_v23 = vpop.permute.xlu2 %2615 }
 0x467   : > { %v1720_v30 = vpop.f32.mrf.mxu3  ;;  %v2617_v39 = vunpack.i.l.bf16 %v2616_v23  ;;  %v2618_v50 = vunpack.i.h.bf16 %v2616_v23 }
 0x468   : > { %v2611_v62 = vpop.permute.xlu1 %2610 }
 0x469   : > { %v1571_v29 = vpop.f32.mrf.mxu1  ;;  %v2612_v38 = vunpack.i.l.bf16 %v2611_v62  ;;  %v2613_v37 = vunpack.i.h.bf16 %v2611_v62 }
 0x46b   : > { %v2011_v57 = vsel %vm2010_vm2, %v2006_v9, %v2612_v38  ;;  %v2012_v15 = vsel %vm2010_vm2, %v2007_v19, %v2613_v37 }
 0x46c   : > { %v2016_v36 = vsel %vm2015_vm3, %v2011_v57, %v2617_v39 }
 0x471   : > { %v1878_v4 = vpop.f32.mrf.mxu1 }
 0x477   : > { %v1723_v24 = vpop.f32.mrf.mxu3 }
 0x478   : > { %v2629_v20 = vpack.i.bf16 %v1723_v24, %v1720_v30  ;;  %v2017_v24 = vsel %vm2015_vm3, %v2012_v15, %v2618_v50 }
 0x479   : > { %v1881_v14 = vpop.f32.mrf.mxu1 }
 0x47a   : > { %v2639_v63 = vpack.i.bf16 %v1881_v14, %v1878_v4  ;;  %2630 = vrot.lane.b32.xlu2 %v2629_v20, %s3096_s13 }
 0x47c   : > { %2640 = vrot.lane.b32.xlu1 %v2639_v63, %s3095_s11 }
 0x47f   : > { %v1726_v45 = vpop.f32.mrf.mxu3 }
 0x481   : > { %v1884_v40 = vpop.f32.mrf.mxu1 }
 0x482   : > { %2635 = vrot.lane.b32.xlu2 %v2634_v8, %s3100_s22  ;;  %1994 = vrot.lane.b32.xlu0 %v1884_v40, %s3095_s11  ;;  %v2037_v8 = vld [vmem:[#allocation13 + $0x10] sm:$0xff] }
 0x483   : > { %2068 = vmatpush.msra.mxu2 %v2037_v8 }
 0x484   : > { %2645 = vrot.lane.b32.xlu1 %v2644_v7, %s3099_s14 }
 0x485   : > { %2069 = vmatpush.msra.mxu2 %v2036_v6 }
 0x487   : > { %v1729_v49 = vpop.f32.mrf.mxu3  ;;  %2070 = vmatpush.msra.mxu2 %v2035_v41 }
 0x489   : > { %v1887_v46 = vpop.f32.mrf.mxu1 }
 0x48a   : > { %1962 = vrot.lane.b32.xlu2 %v1568_v58, %s3097_s15  ;;  %1996 = vrot.lane.b32.xlu0 %v1887_v46, %s3095_s11 }
 0x48c   : > { %1978 = vrot.lane.b32.xlu1 %v1726_v45, %s3096_s13 }
 0x492   : > { %1964 = vrot.lane.b32.xlu2 %v1571_v29, %s3097_s15 }
 0x494   : > { %1980 = vrot.lane.b32.xlu1 %v1729_v49, %s3096_s13 }
 0x4a1   : > { %v2621_v44 = vpop.permute.xlu0 %2620 }
 0x4a2   : > { %v2622_v2 = vunpack.i.l.bf16 %v2621_v44  ;;  %v2623_v26 = vunpack.i.h.bf16 %v2621_v44  ;;  %v2654_v44 = vld [vmem:[%s4117_s7] ss:$0 sm:$0xff] }
 0x4a4   : > { %v2021_v11 = vsel %vm2020_vm4, %v2016_v36, %v2622_v2  ;;  %v2022_v14 = vsel %vm2020_vm4, %v2017_v24, %v2623_v26 }
 0x4a9   : > { %v2626_v10 = vpop.permute.xlu0 %2625 }
 0x4aa   : > { %v2627_v22 = vunpack.i.l.bf16 %v2626_v10  ;;  %v2628_v49 = vunpack.i.h.bf16 %v2626_v10 }
 0x4ac   : > { %v2004_v60 = vsel %vm640_vm0, %v3986_v13, %v2627_v22  ;;  %v2005_v59 = vsel %vm640_vm0, %v3988_v32, %v2628_v49 }
 0x4b1   : > { %v2651_v29 = vpop.permute.xlu0 %2650 }
 0x4b2   : > { %v2652_v45 = vunpack.i.l.bf16 %v2651_v29  ;;  %v2653_v54 = vunpack.i.h.bf16 %v2651_v29 }
 0x4d4   : > { %v2631_v1 = vpop.permute.xlu2 %2630 }
 0x4d5   : > { %v2632_v55 = vunpack.i.l.bf16 %v2631_v1  ;;  %v2633_v53 = vunpack.i.h.bf16 %v2631_v1 }
 0x4d7   : > { %v2026_v43 = vsel %vm2025_vm5, %v2021_v11, %v2632_v55  ;;  %v2027_v40 = vsel %vm2025_vm5, %v2022_v14, %v2633_v53 }
 0x4dc   : > { %v2636_v48 = vpop.permute.xlu2 %2635 }
 0x4dd   : > { %v2637_v58 = vunpack.i.l.bf16 %v2636_v48  ;;  %v2638_v16 = vunpack.i.h.bf16 %v2636_v48 }
 0x4df   : > { %v2008_v63 = vsel %vm694_vm1, %v2004_v60, %v2637_v58  ;;  %v2009_v52 = vsel %vm694_vm1, %v2005_v59, %v2638_v16 }
 0x4e4   : > { %v1963_v18 = vpop.permute.xlu2 %1962 }
 0x4ec   : > { %v1965_v6 = vpop.permute.xlu2 %1964 }
 0x4ee   : > { %v2641_v5 = vpop.permute.xlu1 %2640 }
 0x4ef   : > { %v2642_v28 = vunpack.i.l.bf16 %v2641_v5  ;;  %v2643_v30 = vunpack.i.h.bf16 %v2641_v5 }
 0x4f1   : > { %v2031_v7 = vsel %vm2030_vm6, %v2026_v43, %v2642_v28  ;;  %v2032_v51 = vsel %vm2030_vm6, %v2027_v40, %v2643_v30 }
 0x4f2   : > { %2071 = vmatmul.f32.vlgmr.msra.gmra.mxu2 %v2031_v7 }
 0x4f4   : > { %v1995_v13 = vpop.permute.xlu0 %1994 }
 0x4f6   : > { %v2646_v4 = vpop.permute.xlu1 %2645 }
 0x4f7   : > { %v2647_v20 = vunpack.i.l.bf16 %v2646_v4  ;;  %v2648_v31 = vunpack.i.h.bf16 %v2646_v4 }
 0x4f9   : > { %v2013_v46 = vsel %vm2010_vm2, %v2008_v63, %v2647_v20  ;;  %v2014_v35 = vsel %vm2010_vm2, %v2009_v52, %v2648_v31 }
 0x4fa   : > { %2074 = vmatmul.f32.gmra.mxu2 %v2032_v51  ;;  %v2018_v27 = vsel %vm2015_vm3, %v2013_v46, %v2652_v45  ;;  %v2019_v8 = vsel %vm2015_vm3, %v2014_v35, %v2653_v54 }
 0x4fb   : > { %v2023_v56 = vsel %vm2020_vm4, %v2018_v27, %v1963_v18  ;;  %v2024_v32 = vsel %vm2020_vm4, %v2019_v8, %v1965_v6 }
 0x4fc   : > { %v1997_v33 = vpop.permute.xlu0 %1996 }
 0x4fe   : > { %v1979_v61 = vpop.permute.xlu1 %1978 }
 0x4ff   : > { %v2028_v21 = vsel %vm2025_vm5, %v2023_v56, %v1979_v61 }
 0x500   : > { %v2033_v3 = vsel %vm2030_vm6, %v2028_v21, %v1995_v13 }
 0x502   : > { %2077 = vmatmul.f32.gmra.mxu2 %v2033_v3 }
 0x506   : > { %v1981_v41 = vpop.permute.xlu1 %1980 }
 0x507   : > { %v2029_v17 = vsel %vm2025_vm5, %v2024_v32, %v1981_v41 }
 0x508   : > { %v2034_v23 = vsel %vm2030_vm6, %v2029_v17, %v1997_v33 }
 0x50a   : > { %2080 = vmatmul.f32.gmra.mxu2 %v2034_v23 }
 0x575   : > { %v2072_v62 = vpop.f32.mrf.mxu2 }
 0x576   : > { %v2073_v0 = vadd.f32 %v2654_v44, %v2072_v62 }
 0x578   : > { %2084 = vst [vmem:[%s490_s27] sm:$0xff] %v2073_v0 }
 0x57d   : > { %v2075_v25 = vpop.f32.mrf.mxu2 }
 0x57e   : > { %v2076_v38 = vadd.f32 %v2654_v44, %v2075_v25 }
 0x580   : > { %2085 = vst [vmem:[%s490_s27 + $0x8] sm:$0xff] %v2076_v38 }
 0x585   : > { %v2078_v1 = vpop.f32.mrf.mxu2 }
 0x586   : > { %v2079_v34 = vadd.f32 %v2654_v44, %v2078_v1 }
 0x588   : > { %2086 = vst [vmem:[%s490_s27 + $0x10] sm:$0xff] %v2079_v34 }
 0x58d   : > { %v2081_v9 = vpop.f32.mrf.mxu2 }
 0x58e   : > { %v2082_v57 = vadd.f32 %v2654_v44, %v2081_v9 }
 0x590   : > { %2087 = vst [vmem:[%s490_s27 + $0x18] sm:$0xff] %v2082_v57 }
 0x591   : > { %3020 = shalt.err (!%p3017_p12)
}
 0x592   : > { %s3102_s1 = smov 128   ;;  %s3103_s13 = smov 8  }
 0x593   : > { %2427 = dma.vmem_to_hbm [thread:$0]  (%p3237_p5), %s2104_s16, 512, %s2106_s0, %s2089_s24, %s3102_s1, %s3102_s1, %s3103_s13  }
 0x594 PF: > { %s4155_s15 = sld [smem:[#allocation22_spill]] }
 0x595   : > { %s4156_s19 = sld [smem:[#allocation20_spill]] }
 0x59a   : > { %p2465_p13 = scmp.ge.s32.totalorder %s4155_s15, 2 }
 0x59b   : > { %s2120_s22 = sand.u32 1, %s4156_s19  }
 0x59c   : > { %p2453_p0 = pnand %p2465_p13, %p3194_p6  ;;  %s2121_s3 = scalar_lea.sflag [#allocation4], %s2120_s22 }
 0x59e   : > { %p2454_p3 = pneg %p2453_p0 }
 0x5a0   : > { %3062 = dma.done.wait (%p2454_p3), %s2121_s3, 512  }
 0x5a1   : > { %3064 = vsyncadd (%p2454_p3), %s2121_s3, 4294966784  ;;  %s29_s10 = sadd.s32 1, %s4155_s15   ;;  %s4158_s26 = sld [smem:[#allocation25_spill]] }
 0x5a2   : > { %p26_p7 = scmp.ge.s32.totalorder %s29_s10, 6   ;;  %s4159_s30 = sld [smem:[#allocation21_spill]] }
 0x5a3   : > { %s4160_s9 = sld [smem:[#allocation24_spill]]  ;;  %s4161_s27 = smov %s3071_s28 }
 0x5a4   : > { %s4162_s28 = smov %s3075_s29  ;;  %28 = sbr.rel (!%p26_p7) target bundleno = 16 (0x10), region = 137 }
 0x5a7   : > { %s4163_s29 = smov %s4158_s26 }
 0x5a9   :  { %2127 = vsyncpa [#allocation3], 1 }
 0x5aa   :  { %2129 = vsyncpa [#allocation3 + $0x1], 1 }
 0x5ab   :  { %2130 = vsyncpa [#allocation6], 1 }
 0x5ac   :  { %2132 = vsyncpa [#allocation6 + $0x1], 1 }
 0x5ad   :  { %2133 = vsyncpa [#allocation9], 1 }
 0x5ae   :  { %2134 = vsyncpa [#allocation12], 1 }
 0x5af   :  { %2135 = vsyncpa [#allocation4], 1 }
 0x5b0   :  { %2137 = vsyncpa [#allocation4 + $0x1], 1 }

</bundles_post_ra>
